<compile_context>
chip_gen: v7x
topology: tpu7x:2x2x1
jax: 0.10.0
libtpu: 0.0.40
codegen_flags: <defaults>
</compile_context>

<pallas_src>
import math

import jax
import jax.numpy as jnp
from jax.experimental import pallas as pl
from jax.experimental.pallas import tpu as pltpu


def _round_up(x, m):
    return ((x + m - 1) // m) * m


def timestep_embedder_kernel(t_ref, freqs_ref, w1_ref, b1_ref, w2_ref, b2_ref,
                             out_ref, emb_ref, h_ref):
    # t_ref:     (TN, 1)    f32 timesteps for this batch tile
    # freqs_ref: (1, half)  f32 precomputed frequencies
    # w1_ref:    (D, H)     bf16 full first-layer weight (cos rows | sin rows)
    # b1_ref:    (1, H)     f32
    # w2_ref:    (H, TH)    bf16 output-dim tile of second-layer weight
    # b2_ref:    (1, TH)    f32
    # out_ref:   (TN, TH)
    # emb_ref:   (TN, D)    bf16 scratch: [cos | sin] embedding (lane-aligned halves)
    # h_ref:     (TN, H)    bf16 scratch: post-SiLU hidden activations (reused across j)
    half = freqs_ref.shape[1]

    @pl.when(pl.program_id(1) == 0)
    def _():
        # Argument math + transcendentals in f32 (accuracy for large timestep values).
        args = t_ref[...] * freqs_ref[...]                    # (TN, half) outer product
        emb_ref[:, :half] = jnp.cos(args).astype(emb_ref.dtype)
        emb_ref[:, half:] = jnp.sin(args).astype(emb_ref.dtype)
        # Linear 1 as a single K=D contraction (fills the 256-wide MXU on v6e/v7x).
        h = jnp.dot(emb_ref[...], w1_ref[...], preferred_element_type=jnp.float32)
        h = h + b1_ref[...]                                   # f32 bias add
        h = h * jax.nn.sigmoid(h)                             # SiLU in f32 (EUP)
        h_ref[...] = h.astype(h_ref.dtype)

    # Linear 2 on the current output-dim tile.
    out = jnp.dot(h_ref[...], w2_ref[...], preferred_element_type=jnp.float32)
    out_ref[...] = (out + b2_ref[...]).astype(out_ref.dtype)


def timestep_embedder(t, params, *, frequency_embedding_size=256, tile_n=512,
                      tile_h=None, matmul_dtype=jnp.bfloat16, out_dtype=jnp.bfloat16,
                      vmem_limit_bytes=None):
    """t: (N,) float timesteps. Returns (N, hidden_size) in out_dtype."""
    w1, b1, w2, b2 = params
    D = frequency_embedding_size
    assert D % 2 == 0, "odd frequency_embedding_size not supported"
    # TODO(synk): implement the odd-dim zero-pad branch of the PyTorch module if ever needed.
    half = D // 2
    H = w1.shape[1]
    assert w1.shape[0] == D and w2.shape == (H, H)
    N = t.shape[0]

    # --- batch tiling ---
    tile = min(tile_n, _round_up(max(N, 1), 8))
    if N >= 16 and _round_up(N, tile) // tile < 2:
        # Megacore ("parallel") only helps if there are >= 2 grid steps to shard (v7x: 2 TCs).
        tile = min(tile, _round_up(-(-N // 2), 8))
    n_pad = _round_up(N, tile)

    # --- hidden (W2 output-dim) tiling: keeps large H inside v7x's 64 MiB VMEM ---
    if tile_h is None:
        if H * H * jnp.dtype(matmul_dtype).itemsize <= (8 << 20) or H % 512 != 0:
            tile_h = H            # W2 fully resident (demo-sized H, v5e/v6e large H)
        else:
            tile_h = 512          # tile W2's output dim; h is computed once per batch tile
    assert H % tile_h == 0
    n_h = H // tile_h
    grid = (n_pad // tile, n_h)

    # Precompute frequencies (same formula as the PyTorch module), kept in f32.
    freqs = jnp.exp(
        -math.log(10000.0) * jnp.arange(half, dtype=jnp.float32) / half
    ).reshape(1, half)

    t2d = t.astype(jnp.float32).reshape(N, 1)
    if n_pad != N:
        t2d = jnp.pad(t2d, ((0, n_pad - N), (0, 0)))   # padded rows sliced off after the call

    # MXU operands stored in bf16, biases in f32.
    w1_m = w1.astype(matmul_dtype)
    w2_m = w2.astype(matmul_dtype)
    b1_2d = b1.reshape(1, H).astype(jnp.float32)
    b2_2d = b2.reshape(1, H).astype(jnp.float32)

    if vmem_limit_bytes is None:
        itm = jnp.dtype(matmul_dtype).itemsize
        o_itm = jnp.dtype(out_dtype).itemsize
        weight_bytes = D * H * itm + H * 4 + 2 * (H * tile_h * itm + tile_h * 4)
        act_bytes = (2 * tile * 4 + half * 4
                     + tile * D * itm + tile * H * itm          # emb / h scratches
                     + 2 * tile * tile_h * o_itm                # double-buffered output
                     + 3 * tile * max(D, H) * 4)                # f32 temporaries (args/cos/sin/h)
        need = int(weight_bytes + act_bytes) + (4 << 20)
        try:
            cap = int(pltpu.get_tpu_info().vmem_capacity_bytes)
        except Exception:
            cap = 64 << 20                                      # v7x physical VMEM (safe floor)
        vmem_limit_bytes = max(16 << 20, min(cap - (8 << 20), need))

    def _run(single_buffer_invariant):
        inv = pl.Buffered(1) if single_buffer_invariant else None
        w2_mode = inv if n_h == 1 else None   # W2/b2 are only grid-invariant when not tiled
        return pl.pallas_call(
            timestep_embedder_kernel,
            out_shape=jax.ShapeDtypeStruct((n_pad, H), out_dtype),
            grid_spec=pltpu.PrefetchScalarGridSpec(
                num_scalar_prefetch=0,
                grid=grid,
                in_specs=[
                    pl.BlockSpec((tile, 1), lambda i, j: (i, 0)),                      # t tile
                    pl.BlockSpec((1, half), lambda i, j: (0, 0), pipeline_mode=inv),   # freqs
                    pl.BlockSpec((D, H), lambda i, j: (0, 0), pipeline_mode=inv),      # W1
                    pl.BlockSpec((1, H), lambda i, j: (0, 0), pipeline_mode=inv),      # b1
                    pl.BlockSpec((H, tile_h), lambda i, j: (0, j), pipeline_mode=w2_mode),  # W2
                    pl.BlockSpec((1, tile_h), lambda i, j: (0, j), pipeline_mode=w2_mode),  # b2
                ],
                out_specs=pl.BlockSpec((tile, tile_h), lambda i, j: (i, j)),
                scratch_shapes=[
                    pltpu.VMEM((tile, D), matmul_dtype),   # [cos | sin] embedding
                    pltpu.VMEM((tile, H), matmul_dtype),   # post-SiLU activations
                ],
            ),
            compiler_params=pltpu.CompilerParams(
                dimension_semantics=("parallel", "arbitrary"),
                vmem_limit_bytes=int(vmem_limit_bytes),
            ),
        )(t2d, freqs, w1_m, b1_2d, w2_m, b2_2d)

    try:
        out = _run(True)      # single-buffer grid-invariant weights (halves their VMEM)
    except Exception:
        out = _run(False)     # fall back to default double-buffering if Buffered(1) rejected

    return out[:N] if n_pad != N else out


def init_params(key, hidden_size, frequency_embedding_size=256):
    """Deterministic synthetic parameters (shapes match the PyTorch module)."""
    k1, k2, k3, k4 = jax.random.split(key, 4)
    D, H = frequency_embedding_size, hidden_size
    # stored as (in, out); equivalent to PyTorch W.T
    w1 = jax.random.normal(k1, (D, H), jnp.float32) * (1.0 / math.sqrt(D))
    b1 = jax.random.normal(k2, (H,), jnp.float32) * 0.01
    w2 = jax.random.normal(k3, (H, H), jnp.float32) * (1.0 / math.sqrt(H))
    b2 = jax.random.normal(k4, (H,), jnp.float32) * 0.01
    return w1, b1, w2, b2


def reference(t, params, frequency_embedding_size=256, matmul_dtype=None):
    """Pure-JAX reference mirroring the PyTorch forward.

    matmul_dtype=None -> exact f32 module semantics; matmul_dtype=jnp.bfloat16 mirrors the
    kernel's MXU operand casts.
    """
    w1, b1, w2, b2 = params
    half = frequency_embedding_size // 2
    freqs = jnp.exp(-math.log(10000.0) * jnp.arange(half, dtype=jnp.float32) / half)
    args = t[:, None].astype(jnp.float32) * freqs[None]
    emb = jnp.concatenate([jnp.cos(args), jnp.sin(args)], axis=-1)
    if matmul_dtype is not None:
        emb = emb.astype(matmul_dtype)
        w1 = w1.astype(matmul_dtype)
        w2 = w2.astype(matmul_dtype)
    h = jnp.dot(emb, w1, preferred_element_type=jnp.float32) + b1
    h = h * jax.nn.sigmoid(h)
    if matmul_dtype is not None:
        h = h.astype(matmul_dtype)
    return jnp.dot(h, w2, preferred_element_type=jnp.float32) + b2


if __name__ == "__main__":
    N = 200        # exercises padding + a 2-step "parallel" batch grid
    HIDDEN = 128   # multiple of 128 -> lane-dense output stores
    FREQ = 256

    key = jax.random.PRNGKey(0)
    k_t, k_p = jax.random.split(key)
    t = jax.random.uniform(k_t, (N,), jnp.float32, minval=0.0, maxval=1000.0)
    params = init_params(k_p, HIDDEN, FREQ)

    out = timestep_embedder(t, params, frequency_embedding_size=FREQ)
    out = jax.block_until_ready(out)
    assert out.shape == (N, HIDDEN)
    assert out.dtype == jnp.bfloat16
    out_f32 = out.astype(jnp.float32)

    # Tight check vs a reference that mirrors the kernel's bf16 MXU operands + bf16 output.
    ref_bf16 = reference(t, params, FREQ, matmul_dtype=jnp.bfloat16)
    ref_bf16_q = ref_bf16.astype(jnp.bfloat16).astype(jnp.float32)
    assert jnp.allclose(out_f32, ref_bf16_q, atol=3e-2, rtol=3e-2), \
        "mismatch vs bf16-matmul reference"

    # Loose check vs the pure-f32 module semantics (only bf16 quantization error remains).
    ref_f32 = reference(t, params, FREQ)
    assert jnp.allclose(out_f32, ref_f32, atol=8e-2, rtol=8e-2), \
        "mismatch vs f32 module reference"

    print("KERNEL_OK")
</pallas_src>

<mosaic_0001>
module attributes {stable_mosaic.version = 11 : i64} {
  func.func @timestep_embedder_kernel(%arg0: i32, %arg1: i32, %arg2: memref<104x1xf32, #tpu.memory_space<vmem>>, %arg3: memref<1x128xf32, #tpu.memory_space<vmem>>, %arg4: memref<256x128xbf16, #tpu.memory_space<vmem>>, %arg5: memref<1x128xf32, #tpu.memory_space<vmem>>, %arg6: memref<128x128xbf16, #tpu.memory_space<vmem>>, %arg7: memref<1x128xf32, #tpu.memory_space<vmem>>, %arg8: memref<104x128xbf16, #tpu.memory_space<vmem>>, %arg9: memref<104x256xbf16, #tpu.memory_space<vmem>>, %arg10: memref<104x128xbf16, #tpu.memory_space<vmem>>) attributes {dimension_semantics = [#tpu.dimension_semantics<parallel>, #tpu.dimension_semantics<arbitrary>], iteration_bounds = array<i64: 2, 1>, scalar_prefetch = 0 : i64, scratch_operands = 2 : i64, tpu.core_type = #tpu.core_type<tc>, window_params = [{transform_indices = @transform_0, window_bounds = array<i64: 104, 1>}, {pipeline_mode = #tpu.pipeline_mode<synchronous>, transform_indices = @transform_1, window_bounds = array<i64: 1, 128>}, {pipeline_mode = #tpu.pipeline_mode<synchronous>, transform_indices = @transform_2, window_bounds = array<i64: 256, 128>}, {pipeline_mode = #tpu.pipeline_mode<synchronous>, transform_indices = @transform_3, window_bounds = array<i64: 1, 128>}, {pipeline_mode = #tpu.pipeline_mode<synchronous>, transform_indices = @transform_4, window_bounds = array<i64: 128, 128>}, {pipeline_mode = #tpu.pipeline_mode<synchronous>, transform_indices = @transform_5, window_bounds = array<i64: 1, 128>}, {transform_indices = @transform_6, window_bounds = array<i64: 104, 128>}]} {
    %c0_i32 = arith.constant 0 : i32
    %0 = arith.cmpi eq, %arg1, %c0_i32 : i32
    %1 = arith.extui %0 : i1 to i32
    %c0_i32_0 = arith.constant 0 : i32
    %2 = arith.cmpi ne, %1, %c0_i32_0 : i32
    scf.if %2 {
      %c0_8 = arith.constant 0 : index
      %c0_9 = arith.constant 0 : index
      %11 = vector.load %arg2[%c0_8, %c0_9] : memref<104x1xf32, #tpu.memory_space<vmem>>, vector<104x1xf32>
      %c0_10 = arith.constant 0 : index
      %c0_11 = arith.constant 0 : index
      %12 = vector.load %arg3[%c0_10, %c0_11] : memref<1x128xf32, #tpu.memory_space<vmem>>, vector<1x128xf32>
      %13 = vector.broadcast %11 : vector<104x1xf32> to vector<104x128xf32>
      %14 = vector.broadcast %12 : vector<1x128xf32> to vector<104x128xf32>
      %15 = arith.mulf %13, %14 : vector<104x128xf32>
      %16 = math.cos %15 : vector<104x128xf32>
      %17 = arith.truncf %16 : vector<104x128xf32> to vector<104x128xbf16>
      %c0_12 = arith.constant 0 : index
      %c0_13 = arith.constant 0 : index
      %18 = vector.load %arg9[%c0_12, %c0_13] : memref<104x256xbf16, #tpu.memory_space<vmem>>, vector<104x128xbf16>
      tpu.vector_store %arg9[%c0_12, %c0_13], %17 {strides = array<i32>} : memref<104x256xbf16, #tpu.memory_space<vmem>>, vector<104x128xbf16>,
      %19 = math.sin %15 : vector<104x128xf32>
      %20 = arith.truncf %19 : vector<104x128xf32> to vector<104x128xbf16>
      %c0_14 = arith.constant 0 : index
      %c128 = arith.constant 128 : index
      %21 = vector.load %arg9[%c0_14, %c128] : memref<104x256xbf16, #tpu.memory_space<vmem>>, vector<104x128xbf16>
      tpu.vector_store %arg9[%c0_14, %c128], %20 {strides = array<i32>} : memref<104x256xbf16, #tpu.memory_space<vmem>>, vector<104x128xbf16>,
      %c0_15 = arith.constant 0 : index
      %c0_16 = arith.constant 0 : index
      %22 = vector.load %arg9[%c0_15, %c0_16] : memref<104x256xbf16, #tpu.memory_space<vmem>>, vector<104x256xbf16>
      %c0_17 = arith.constant 0 : index
      %c0_18 = arith.constant 0 : index
      %23 = vector.load %arg4[%c0_17, %c0_18] : memref<256x128xbf16, #tpu.memory_space<vmem>>, vector<256x128xbf16>
      %cst_19 = arith.constant dense<0.000000e+00> : vector<104x128xf32>
      %24 = tpu.matmul %22, %23, %cst_19 {dimension_numbers = #tpu.dot_dimension_numbers<[1], [0], [0], [1], [0, 0, 1, 1], [], []>} : vector<104x256xbf16>, vector<256x128xbf16>, vector<104x128xf32> -> vector<104x128xf32>
      %c0_20 = arith.constant 0 : index
      %c0_21 = arith.constant 0 : index
      %25 = vector.load %arg5[%c0_20, %c0_21] : memref<1x128xf32, #tpu.memory_space<vmem>>, vector<1x128xf32>
      %26 = vector.broadcast %25 : vector<1x128xf32> to vector<104x128xf32>
      %27 = arith.addf %24, %26 : vector<104x128xf32>
      %28 = arith.negf %27 : vector<104x128xf32>
      %29 = math.exp %28 : vector<104x128xf32>
      %cst_22 = arith.constant 1.000000e+00 : f32
      %30 = vector.broadcast %cst_22 : f32 to vector<104x128xf32>
      %31 = arith.addf %30, %29 : vector<104x128xf32>
      %32 = arith.divf %30, %31 : vector<104x128xf32>
      %33 = arith.mulf %27, %32 : vector<104x128xf32>
      %34 = arith.truncf %33 : vector<104x128xf32> to vector<104x128xbf16>
      %c0_23 = arith.constant 0 : index
      %c0_24 = arith.constant 0 : index
      %35 = vector.load %arg10[%c0_23, %c0_24] : memref<104x128xbf16, #tpu.memory_space<vmem>>, vector<104x128xbf16>
      tpu.vector_store %arg10[%c0_23, %c0_24], %34 {strides = array<i32>} : memref<104x128xbf16, #tpu.memory_space<vmem>>, vector<104x128xbf16>,
    } else {
    }
    %c0 = arith.constant 0 : index
    %c0_1 = arith.constant 0 : index
    %3 = vector.load %arg10[%c0, %c0_1] : memref<104x128xbf16, #tpu.memory_space<vmem>>, vector<104x128xbf16>
    %c0_2 = arith.constant 0 : index
    %c0_3 = arith.constant 0 : index
    %4 = vector.load %arg6[%c0_2, %c0_3] : memref<128x128xbf16, #tpu.memory_space<vmem>>, vector<128x128xbf16>
    %cst = arith.constant dense<0.000000e+00> : vector<104x128xf32>
    %5 = tpu.matmul %3, %4, %cst {dimension_numbers = #tpu.dot_dimension_numbers<[1], [0], [0], [1], [0, 0, 1, 1], [], []>} : vector<104x128xbf16>, vector<128x128xbf16>, vector<104x128xf32> -> vector<104x128xf32>
    %c0_4 = arith.constant 0 : index
    %c0_5 = arith.constant 0 : index
    %6 = vector.load %arg7[%c0_4, %c0_5] : memref<1x128xf32, #tpu.memory_space<vmem>>, vector<1x128xf32>
    %7 = vector.broadcast %6 : vector<1x128xf32> to vector<104x128xf32>
    %8 = arith.addf %5, %7 : vector<104x128xf32>
    %9 = arith.truncf %8 : vector<104x128xf32> to vector<104x128xbf16>
    %c0_6 = arith.constant 0 : index
    %c0_7 = arith.constant 0 : index
    %10 = vector.load %arg8[%c0_6, %c0_7] : memref<104x128xbf16, #tpu.memory_space<vmem>>, vector<104x128xbf16>
    tpu.vector_store %arg8[%c0_6, %c0_7], %9 {strides = array<i32>} : memref<104x128xbf16, #tpu.memory_space<vmem>>, vector<104x128xbf16>,
    return
  }
  func.func @transform_0(%arg0: i32, %arg1: i32) -> (i32, i32) {
    %c0_i32 = arith.constant 0 : i32
    %c0_i32_0 = arith.constant 0 : i32
    return %arg0, %c0_i32 : i32, i32
  }
  func.func @transform_1(%arg0: i32, %arg1: i32) -> (i32, i32) {
    %c0_i32 = arith.constant 0 : i32
    %c0_i32_0 = arith.constant 0 : i32
    %c0_i32_1 = arith.constant 0 : i32
    return %c0_i32, %c0_i32_0 : i32, i32
  }
  func.func @transform_2(%arg0: i32, %arg1: i32) -> (i32, i32) {
    %c0_i32 = arith.constant 0 : i32
    %c0_i32_0 = arith.constant 0 : i32
    %c0_i32_1 = arith.constant 0 : i32
    return %c0_i32, %c0_i32_0 : i32, i32
  }
  func.func @transform_3(%arg0: i32, %arg1: i32) -> (i32, i32) {
    %c0_i32 = arith.constant 0 : i32
    %c0_i32_0 = arith.constant 0 : i32
    %c0_i32_1 = arith.constant 0 : i32
    return %c0_i32, %c0_i32_0 : i32, i32
  }
  func.func @transform_4(%arg0: i32, %arg1: i32) -> (i32, i32) {
    %c0_i32 = arith.constant 0 : i32
    %c0_i32_0 = arith.constant 0 : i32
    return %c0_i32, %arg1 : i32, i32
  }
  func.func @transform_5(%arg0: i32, %arg1: i32) -> (i32, i32) {
    %c0_i32 = arith.constant 0 : i32
    %c0_i32_0 = arith.constant 0 : i32
    return %c0_i32, %arg1 : i32, i32
  }
  func.func @transform_6(%arg0: i32, %arg1: i32) -> (i32, i32) {
    %c0_i32 = arith.constant 0 : i32
    return %arg0, %arg1 : i32, i32
  }
}

module attributes {stable_mosaic.version = 11 : i64} {
  func.func @timestep_embedder_kernel(%arg0: i32, %arg1: i32, %arg2: memref<104x1xf32, #tpu.memory_space<vmem>>, %arg3: memref<1x128xf32, #tpu.memory_space<vmem>>, %arg4: memref<256x128xbf16, #tpu.memory_space<vmem>>, %arg5: memref<1x128xf32, #tpu.memory_space<vmem>>, %arg6: memref<128x128xbf16, #tpu.memory_space<vmem>>, %arg7: memref<1x128xf32, #tpu.memory_space<vmem>>, %arg8: memref<104x128xbf16, #tpu.memory_space<vmem>>, %arg9: memref<104x256xbf16, #tpu.memory_space<vmem>>, %arg10: memref<104x128xbf16, #tpu.memory_space<vmem>>) attributes {dimension_semantics = [#tpu.dimension_semantics<parallel>, #tpu.dimension_semantics<arbitrary>], iteration_bounds = array<i64: 2, 1>, scalar_prefetch = 0 : i64, scratch_operands = 2 : i64, tpu.core_type = #tpu.core_type<tc>, window_params = [{transform_indices = @transform_0, window_bounds = array<i64: 104, 1>}, {pipeline_mode = #tpu.pipeline_mode<synchronous>, transform_indices = @transform_1, window_bounds = array<i64: 1, 128>}, {pipeline_mode = #tpu.pipeline_mode<synchronous>, transform_indices = @transform_2, window_bounds = array<i64: 256, 128>}, {pipeline_mode = #tpu.pipeline_mode<synchronous>, transform_indices = @transform_3, window_bounds = array<i64: 1, 128>}, {transform_indices = @transform_4, window_bounds = array<i64: 128, 128>}, {transform_indices = @transform_5, window_bounds = array<i64: 1, 128>}, {transform_indices = @transform_6, window_bounds = array<i64: 104, 128>}]} {
    %c0_i32 = arith.constant 0 : i32
    %0 = arith.cmpi eq, %arg1, %c0_i32 : i32
    %1 = arith.extui %0 : i1 to i32
    %c0_i32_0 = arith.constant 0 : i32
    %2 = arith.cmpi ne, %1, %c0_i32_0 : i32
    scf.if %2 {
      %c0_8 = arith.constant 0 : index
      %c0_9 = arith.constant 0 : index
      %11 = vector.load %arg2[%c0_8, %c0_9] : memref<104x1xf32, #tpu.memory_space<vmem>>, vector<104x1xf32>
      %c0_10 = arith.constant 0 : index
      %c0_11 = arith.constant 0 : index
      %12 = vector.load %arg3[%c0_10, %c0_11] : memref<1x128xf32, #tpu.memory_space<vmem>>, vector<1x128xf32>
      %13 = vector.broadcast %11 : vector<104x1xf32> to vector<104x128xf32>
      %14 = vector.broadcast %12 : vector<1x128xf32> to vector<104x128xf32>
      %15 = arith.mulf %13, %14 : vector<104x128xf32>
      %16 = math.cos %15 : vector<104x128xf32>
      %17 = arith.truncf %16 : vector<104x128xf32> to vector<104x128xbf16>
      %c0_12 = arith.constant 0 : index
      %c0_13 = arith.constant 0 : index
      %18 = vector.load %arg9[%c0_12, %c0_13] : memref<104x256xbf16, #tpu.memory_space<vmem>>, vector<104x128xbf16>
      tpu.vector_store %arg9[%c0_12, %c0_13], %17 {strides = array<i32>} : memref<104x256xbf16, #tpu.memory_space<vmem>>, vector<104x128xbf16>,
      %19 = math.sin %15 : vector<104x128xf32>
      %20 = arith.truncf %19 : vector<104x128xf32> to vector<104x128xbf16>
      %c0_14 = arith.constant 0 : index
      %c128 = arith.constant 128 : index
      %21 = vector.load %arg9[%c0_14, %c128] : memref<104x256xbf16, #tpu.memory_space<vmem>>, vector<104x128xbf16>
      tpu.vector_store %arg9[%c0_14, %c128], %20 {strides = array<i32>} : memref<104x256xbf16, #tpu.memory_space<vmem>>, vector<104x128xbf16>,
      %c0_15 = arith.constant 0 : index
      %c0_16 = arith.constant 0 : index
      %22 = vector.load %arg9[%c0_15, %c0_16] : memref<104x256xbf16, #tpu.memory_space<vmem>>, vector<104x256xbf16>
      %c0_17 = arith.constant 0 : index
      %c0_18 = arith.constant 0 : index
      %23 = vector.load %arg4[%c0_17, %c0_18] : memref<256x128xbf16, #tpu.memory_space<vmem>>, vector<256x128xbf16>
      %cst_19 = arith.constant dense<0.000000e+00> : vector<104x128xf32>
      %24 = tpu.matmul %22, %23, %cst_19 {dimension_numbers = #tpu.dot_dimension_numbers<[1], [0], [0], [1], [0, 0, 1, 1], [], []>} : vector<104x256xbf16>, vector<256x128xbf16>, vector<104x128xf32> -> vector<104x128xf32>
      %c0_20 = arith.constant 0 : index
      %c0_21 = arith.constant 0 : index
      %25 = vector.load %arg5[%c0_20, %c0_21] : memref<1x128xf32, #tpu.memory_space<vmem>>, vector<1x128xf32>
      %26 = vector.broadcast %25 : vector<1x128xf32> to vector<104x128xf32>
      %27 = arith.addf %24, %26 : vector<104x128xf32>
      %28 = arith.negf %27 : vector<104x128xf32>
      %29 = math.exp %28 : vector<104x128xf32>
      %cst_22 = arith.constant 1.000000e+00 : f32
      %30 = vector.broadcast %cst_22 : f32 to vector<104x128xf32>
      %31 = arith.addf %30, %29 : vector<104x128xf32>
      %32 = arith.divf %30, %31 : vector<104x128xf32>
      %33 = arith.mulf %27, %32 : vector<104x128xf32>
      %34 = arith.truncf %33 : vector<104x128xf32> to vector<104x128xbf16>
      %c0_23 = arith.constant 0 : index
      %c0_24 = arith.constant 0 : index
      %35 = vector.load %arg10[%c0_23, %c0_24] : memref<104x128xbf16, #tpu.memory_space<vmem>>, vector<104x128xbf16>
      tpu.vector_store %arg10[%c0_23, %c0_24], %34 {strides = array<i32>} : memref<104x128xbf16, #tpu.memory_space<vmem>>, vector<104x128xbf16>,
    } else {
    }
    %c0 = arith.constant 0 : index
    %c0_1 = arith.constant 0 : index
    %3 = vector.load %arg10[%c0, %c0_1] : memref<104x128xbf16, #tpu.memory_space<vmem>>, vector<104x128xbf16>
    %c0_2 = arith.constant 0 : index
    %c0_3 = arith.constant 0 : index
    %4 = vector.load %arg6[%c0_2, %c0_3] : memref<128x128xbf16, #tpu.memory_space<vmem>>, vector<128x128xbf16>
    %cst = arith.constant dense<0.000000e+00> : vector<104x128xf32>
    %5 = tpu.matmul %3, %4, %cst {dimension_numbers = #tpu.dot_dimension_numbers<[1], [0], [0], [1], [0, 0, 1, 1], [], []>} : vector<104x128xbf16>, vector<128x128xbf16>, vector<104x128xf32> -> vector<104x128xf32>
    %c0_4 = arith.constant 0 : index
    %c0_5 = arith.constant 0 : index
    %6 = vector.load %arg7[%c0_4, %c0_5] : memref<1x128xf32, #tpu.memory_space<vmem>>, vector<1x128xf32>
    %7 = vector.broadcast %6 : vector<1x128xf32> to vector<104x128xf32>
    %8 = arith.addf %5, %7 : vector<104x128xf32>
    %9 = arith.truncf %8 : vector<104x128xf32> to vector<104x128xbf16>
    %c0_6 = arith.constant 0 : index
    %c0_7 = arith.constant 0 : index
    %10 = vector.load %arg8[%c0_6, %c0_7] : memref<104x128xbf16, #tpu.memory_space<vmem>>, vector<104x128xbf16>
    tpu.vector_store %arg8[%c0_6, %c0_7], %9 {strides = array<i32>} : memref<104x128xbf16, #tpu.memory_space<vmem>>, vector<104x128xbf16>,
    return
  }
  func.func @transform_0(%arg0: i32, %arg1: i32) -> (i32, i32) {
    %c0_i32 = arith.constant 0 : i32
    %c0_i32_0 = arith.constant 0 : i32
    return %arg0, %c0_i32 : i32, i32
  }
  func.func @transform_1(%arg0: i32, %arg1: i32) -> (i32, i32) {
    %c0_i32 = arith.constant 0 : i32
    %c0_i32_0 = arith.constant 0 : i32
    %c0_i32_1 = arith.constant 0 : i32
    return %c0_i32, %c0_i32_0 : i32, i32
  }
  func.func @transform_2(%arg0: i32, %arg1: i32) -> (i32, i32) {
    %c0_i32 = arith.constant 0 : i32
    %c0_i32_0 = arith.constant 0 : i32
    %c0_i32_1 = arith.constant 0 : i32
    return %c0_i32, %c0_i32_0 : i32, i32
  }
  func.func @transform_3(%arg0: i32, %arg1: i32) -> (i32, i32) {
    %c0_i32 = arith.constant 0 : i32
    %c0_i32_0 = arith.constant 0 : i32
    %c0_i32_1 = arith.constant 0 : i32
    return %c0_i32, %c0_i32_0 : i32, i32
  }
  func.func @transform_4(%arg0: i32, %arg1: i32) -> (i32, i32) {
    %c0_i32 = arith.constant 0 : i32
    %c0_i32_0 = arith.constant 0 : i32
    return %c0_i32, %arg1 : i32, i32
  }
  func.func @transform_5(%arg0: i32, %arg1: i32) -> (i32, i32) {
    %c0_i32 = arith.constant 0 : i32
    %c0_i32_0 = arith.constant 0 : i32
    return %c0_i32, %arg1 : i32, i32
  }
  func.func @transform_6(%arg0: i32, %arg1: i32) -> (i32, i32) {
    %c0_i32 = arith.constant 0 : i32
    return %arg0, %arg1 : i32, i32
  }
}

</mosaic_0001>

<bundles_post_ra>
// kernel: tpu_custom_call.1
= control target key start
LH: loop header
LB: loop body
LE: loop exit
PB: predicated region body
PF: predicated region fallthrough
CT: control target
= control target key end

     0   :  { %11 = vsyncpa [#allocation5], 0  ;;  %s6465_s0 = inlined_call_operand.vmem [shape: f32[208,1], index: 0, kind: input, shape index: {}]   ;;  %s6466_s1 = inlined_call_operand.vmem [shape: f32[1,128], index: 1, kind: input, shape index: {}]   ;;  %s6467_s2 = inlined_call_operand.vmem [shape: bf16[256,128], index: 2, kind: input, shape index: {}]   ;;  %s6468_s3 = inlined_call_operand.vmem [shape: f32[1,128], index: 3, kind: input, shape index: {}]   ;;  %s6469_s4 = inlined_call_operand.vmem [shape: bf16[128,128], index: 4, kind: input, shape index: {}]   ;;  %s6470_s5 = inlined_call_operand.vmem [shape: f32[1,128], index: 5, kind: input, shape index: {}]   ;;  %s6471_s6 = inlined_call_operand.hbm [shape: bf16[208,128], index: 6, kind: output, shape index: {}]  }
   0x1   :  { %13 = vsyncpa [#allocation5 + $0x1], 0  ;;  %s4949_s21 = smov 0   ;;  %s4951_s22 = smov 0  }
   0x2   :  { %s4953_s23 = smov 0   ;;  %s4955_s24 = smov 0  }
   0x3   :  { %s4957_s25 = smov 0   ;;  %s4959_s26 = smov 0  }
   0x4 LB: > { %s4076_s27 = sadd.s32 4294967295, %s4900_s26   ;;  %s4077_s28 = sadd.s32 4294967294, %s4900_s26   ;;  %s4900_s26 = sphi %s4959_s26, %s19_s26   ;;  %s4896_s25 = sphi %s4957_s25, %s6500_s25   ;;  %s4892_s24 = sphi %s4955_s24, %s6499_s24   ;;  %s4888_s23 = sphi %s4953_s23, %s6498_s23   ;;  %s4884_s22 = sphi %s4951_s22, %s6497_s22   ;;  %s4880_s21 = sphi %s4949_s21, %s6496_s21  }
   0x5   : > { %s31_s29 = sadd.s32 1, %s4896_s25  ;;  %s181_s30 = sadd.s32 1, %s4888_s23 }
   0x6   : > { %p33_p0 = scmp.ge.s32.totalorder %s31_s29, 2  ;;  %p191_p1 = scmp.ne.s32.totalorder %s4888_s23, %s4884_s22 }
   0x7   : > { %p192_p2 = scmp.eq.s32.totalorder %s4076_s27, 1  ;;  %p197_p3 = scmp.ne.s32.totalorder %s4884_s22, %s4880_s21 }
   0x8   : > { %s6502_s29 = smov (%p33_p0, %s31_s29), 0  ;;  %p198_p5 = scmp.eq.s32.totalorder %s4077_s28, 1 }
   0x9   : > { %p4989_p4 = por %p192_p2, %p191_p1  ;;  %s176_s8 = ssub.s32 %s4896_s25, %s6502_s29 }
   0xa   : > { %p4082_p6 = scmp.ge.s32.totalorder %s4900_s26, 1  ;;  %p179_p7 = scmp.eq.s32.totalorder %s176_s8, 0 }
   0xb   : > { %p4996_p8 = por %p198_p5, %p197_p3  ;;  %p247_p9 = scmp.lt.s32.totalorder %s4900_s26, 3 }
   0xc   : > { %s5002_s10 = scalar_select %p179_p7, %s4888_s23, %s181_s30  }
   0xd   : > { %p248_p10 = pnand %p4082_p6, %p247_p9 }
   0xe   : > { %s284_s11 = smul.u32 (!%p248_p10), 13, %s4892_s24  ;;  %v4902_v0 = vmov (!%p248_p10), 0   ;;  %v5011_v14 = vld [vmem:[%s6466_s1] ss:$0 sm:$0xff] (!%p248_p10)  ;;  %v4903_v49 = vmov (!%p248_p10), 683565275  }
   0xf   : > { %251 = sbr.rel (%p248_p10) target bundleno = 1043 (0x413), region = 44  ;;  %4664 = vset.pattern.permute.xlu1 (!%p248_p10), %v4902_v0  ;;  %4663 = vset.pattern.permute.xlu0 (!%p248_p10), %v4902_v0  ;;  %v4904_v51 = vmov (!%p248_p10), 2475754826   ;;  %v4905_v53 = vmov (!%p248_p10), 2131351028   ;;  %s281_s16 = sand.u32 (!%p248_p10), 1, %s4884_s22  }
  0x10   : > { %p285_p11 = scmp.lt.s32.totalorder (!%p248_p10), %s284_s11, 25  ;;  %v4906_v55 = vmov (!%p248_p10), 2102212464   ;;  %v4907_v57 = vmov (!%p248_p10), 920167782   ;;  %s4544_s19 = smul.u32 (!%p248_p10), 52, %s281_s16 }
  0x11   : > { %s4356_s27 = smul.u32 (!%p248_p10), 832, %s4892_s24  ;;  %s6419_s24 = scalar_lea.sflag (!%p248_p10), [#allocation5], %s281_s16 }
  0x12   : > { %s6399_s20 = scalar_lea.vmem (!%p248_p10), [#allocation4], %s4544_s19  ;;  %s4911_s13 = smov (!%p248_p10), [#allocation4]  }
  0x13   : > { %s3977_s28 = sshll.u32 (!%p248_p10), %s6399_s20, 4  ;;  %s4826_s14 = sshll.u32 (!%p248_p10), %s4911_s13, 4  ;;  %s6409_s28 = int_to_ptr.vmem [resolvable:$true] %s3977_s28  ;;  %s4827_s14 = int_to_ptr.vmem [resolvable:$false] %s4826_s14 }
  0x14   : > { %p4829_p1 = scmp.lt.s32.totalorder (!%p248_p10), %s6409_s28, %s4827_s14 }
  0x16   : > { %s6504_s11 = smov (!%p285_p11, %s284_s11), 25 }
  0x17   : > { %s4083_s12 = sshll.u32 %s6504_s11, 3  ;;  %s6414_s11 = scalar_lea.hbm %s6471_s6, %s4356_s27 }
  0x18   : > { %s288_s15 = scalar_lea.vmem %s6465_s0, %s4083_s12  ;;  %s4822_s12 = scalar_lea.vmem %s6409_s28, 832 }
  0x19   : > { %v305_v1 = vld [vmem:[%s288_s15 + $0x10] sm:$0xff]  ;;  %v303_v2 = vld [vmem:[%s288_s15] sm:$0xff]  ;;  %v306_v3 = vld [vmem:[%s288_s15 + $0x18] sm:$0xff]  ;;  %p4823_p12 = scmp.ne.s32.totalorder %s6409_s28, %s4822_s12 }
  0x1a   : > { %329 = vperm.xlu1 %4664, %v305_v1   ;;  %319 = vperm.xlu0 %4663, %v303_v2   ;;  %v304_v4 = vld [vmem:[%s288_s15 + $0x8] sm:$0xff]  ;;  %v307_v6 = vld [vmem:[%s288_s15 + $0x20] sm:$0xff]  ;;  %v310_v7 = vld [vmem:[%s288_s15 + $0x38] sm:$0xff]  ;;  %v4908_v1 = vmov 1326507024  }
  0x1b   : > { %v308_v5 = vld [vmem:[%s288_s15 + $0x28] sm:$0xff]  ;;  %v309_v8 = vld [vmem:[%s288_s15 + $0x30] sm:$0xff]  ;;  %v311_v10 = vld [vmem:[%s288_s15 + $0x40] sm:$0xff]  ;;  %p4824_p13 = pnand %p4823_p12, %p4989_p4 }
  0x1c   : > { %v312_v9 = vld [vmem:[%s288_s15 + $0x48] sm:$0xff]  ;;  %v314_v11 = vld [vmem:[%s288_s15 + $0x58] sm:$0xff]  ;;  %v313_v12 = vld [vmem:[%s288_s15 + $0x50] sm:$0xff] }
  0x1d   : > { %v315_v13 = vld [vmem:[%s288_s15 + $0x60] sm:$0xff]  ;;  %p4825_p0 = pneg %p4824_p13  ;;  %s4828_s15 = scalar_lea.vmem %s4827_s14, 1664 }
  0x1e   : > { %334 = vperm.xlu1 %4664, %v306_v3   ;;  %324 = vperm.xlu0 %4663, %v304_v4   ;;  %p4830_p2 = scmp.lt.s32.totalorder %s4828_s15, %s4822_s12 }
  0x20   : > { %p4831_p3 = por %p4830_p2, %p4829_p1 }
  0x22   : > { %344 = vperm.xlu1 %4664, %v308_v5   ;;  %339 = vperm.xlu0 %4663, %v307_v6   ;;  %p4832_p5 = pnand %p4831_p3, %p4825_p0 }
  0x26   : > { %354 = vperm.xlu1 %4664, %v310_v7   ;;  %349 = vperm.xlu0 %4663, %v309_v8  }
  0x2a   : > { %364 = vperm.xlu1 %4664, %v312_v9   ;;  %359 = vperm.xlu0 %4663, %v311_v10  }
  0x2e   : > { %374 = vperm.xlu1 %4664, %v314_v11   ;;  %369 = vperm.xlu0 %4663, %v313_v12  }
  0x32   : > { %379 = vperm.xlu0 %4663, %v315_v13  }
  0x99   : > { %v330_v15 = vpop.permute.xlu1 %329  ;;  %v320_v16 = vpop.permute.xlu0 %319 }
  0x9a   : > { %v5014_v17 = vmul.f32 %v5011_v14, %v330_v15  ;;  %v5017_v18 = vmul.f32 %v5011_v14, %v320_v16 }
  0x9c   : > { %v607_v19 = vand.u32 2147483647, %v5014_v17  ;;  %v610_v20 = vand.u32 2139095040, %v5014_v17  ;;  %v401_v21 = vand.u32 2147483647, %v5017_v18  ;;  %v404_v22 = vand.u32 2139095040, %v5017_v18 }
  0x9d   : > { %v335_v23 = vpop.permute.xlu1 %334  ;;  %v325_v33 = vpop.permute.xlu0 %324  ;;  %vm609_vm14 = vcmp.lt.s32.totalorder %v5014_v17, 0  ;;  %vm403_vm15 = vcmp.lt.s32.totalorder %v5017_v18, 0 }
  0x9e   : > { %v611_v24 = vshrl.u32 %v610_v20, 23  ;;  %v5024_v25 = vmul.f32 %v5011_v14, %v335_v23  ;;  %v614_v26 = vand.u32 8388607, %v607_v19  ;;  %v405_v27 = vshrl.u32 %v404_v22, 23 }
  0x9f   : > { %v408_v28 = vand.u32 8388607, %v401_v21  ;;  %v5032_v39 = vmul.f32 %v5011_v14, %v325_v33  ;;  %vm5121_vm13 = vcmp.le.f32.partialorder %v607_v19, 0.7853982 }
  0xa0   : > { %v4093_v29 = vadd.s32 4294967169, %v611_v24  ;;  %v4085_v30 = vadd.s32 4294967169, %v405_v27  ;;  %v713_v31 = vand.u32 2139095040, %v5024_v25  ;;  %v615_v34 = vor.u32 8388608, %v614_v26 }
  0xa1   : > { %v409_v35 = vor.u32 8388608, %v408_v28  ;;  %v710_v43 = vand.u32 2147483647, %v5024_v25 }
  0xa2   : > { %v617_v32 = vadd.s32 1, %v4093_v29  ;;  %v411_v36 = vadd.s32 1, %v4085_v30  ;;  %v714_v37 = vshrl.u32 %v713_v31, 23  ;;  %v5035_v44 = vshll.u32 %v615_v34, 8 }
  0xa3   : > { %v5039_v46 = vshll.u32 %v409_v35, 8 }
  0xa4   : > { %vm618_vm0 = vcmp.gt.s32.totalorder %v617_v32, 0  ;;  %vm412_vm1 = vcmp.gt.s32.totalorder %v411_v36, 0  ;;  %v4097_v47 = vadd.s32 4294967169, %v714_v37 }
  0xa5   : > { %v619_v38 = vsel %vm618_vm0, %v617_v32, 0  ;;  %v413_v42 = vsel %vm412_vm1, %v411_v36, 0  ;;  %vm5152_vm1 = vcmp.le.f32.partialorder %v401_v21, 0.7853982 }
  0xa6   : > { %v620_v40 = vshrl.u32 %v619_v38, 5  ;;  %v621_v41 = vand.u32 31, %v619_v38  ;;  %v5037_v45 = vand.u32 31, %v413_v42  ;;  %v5046_v59 = vshrl.u32 %v413_v42, 5 }
  0xa7   : > { %v720_v9 = vadd.s32 1, %v4097_v47 }
  0xa8   : > { %v622_v48 = vsub.s32 32, %v621_v41  ;;  %v624_v50 = vshll.u32 %v4903_v49, %v621_v41  ;;  %v627_v52 = vshll.u32 %v4904_v51, %v621_v41  ;;  %v630_v54 = vshll.u32 %v4905_v53, %v621_v41 }
  0xa9   : > { %v633_v56 = vshll.u32 %v4906_v55, %v621_v41  ;;  %v636_v58 = vshll.u32 %v4907_v57, %v621_v41  ;;  %vm639_vm2 = vcmp.lt.s32.totalorder %v620_v40, 1  ;;  %vm641_vm3 = vcmp.lt.s32.totalorder %v620_v40, 3 }
  0xaa   : > { %v623_v60 = vshrl.u32 %v4903_v49, %v622_v48  ;;  %v625_v61 = vshrl.u32 %v4904_v51, %v622_v48  ;;  %v628_v62 = vshrl.u32 %v4905_v53, %v622_v48  ;;  %v631_v63 = vshrl.u32 %v4906_v55, %v622_v48 }
  0xab   : > { %v634_v0 = vshrl.u32 %v4907_v57, %v622_v48  ;;  %v637_v2 = vshrl.u32 %v4908_v1, %v622_v48  ;;  %vm642_vm4 = vcmp.lt.s32.totalorder %v620_v40, 4  ;;  %v416_v6 = vsub.s32 32, %v5037_v45 }
  0xac   : > { %v626_v3 = vor.u32 %v625_v61, %v624_v50  ;;  %v629_v4 = vor.u32 %v628_v62, %v627_v52  ;;  %v632_v5 = vor.u32 %v631_v63, %v630_v54  ;;  %vm640_vm5 = vcmp.lt.s32.totalorder %v620_v40, 2 }
  0xad   : > { %v635_v7 = vor.u32 %v634_v0, %v633_v56  ;;  %v638_v8 = vor.u32 %v637_v2, %v636_v58  ;;  %v418_v22 = vshll.u32 %v4903_v49, %v5037_v45  ;;  %v419_v26 = vshrl.u32 %v4904_v51, %v416_v6 }
  0xae   : > { %v643_v10 = vsel %vm639_vm2, %v623_v60, %v626_v3  ;;  %v644_v11 = vsel %vm642_vm4, %v632_v5, 2102212464  ;;  %v647_v12 = vsel %vm639_vm2, %v626_v3, %v629_v4  ;;  %v651_v13 = vsel %vm639_vm2, %v629_v4, %v632_v5 }
  0xaf   : > { %v645_v15 = vsel %vm641_vm3, %v629_v4, %v644_v11  ;;  %v648_v16 = vsel %vm642_vm4, %v635_v7, 920167782  ;;  %v652_v20 = vsel %vm642_vm4, %v638_v8, 1326507024  ;;  %v421_v27 = vshll.u32 %v4904_v51, %v5037_v45 }
  0xb0   : > { %v649_v23 = vsel %vm641_vm3, %v632_v5, %v648_v16  ;;  %v653_v24 = vsel %vm641_vm3, %v635_v7, %v652_v20  ;;  %v646_v28 = vsel %vm640_vm5, %v643_v10, %v645_v15  ;;  %v422_v31 = vshrl.u32 %v4905_v53, %v416_v6 }
  0xb1   : > { %v650_v29 = vsel %vm640_vm5, %v647_v12, %v649_v23  ;;  %v654_v30 = vsel %vm640_vm5, %v651_v13, %v653_v24  ;;  %v420_v36 = vor.u32 %v419_v26, %v418_v22  ;;  %v424_v38 = vshll.u32 %v4905_v53, %v5037_v45 }
  0xb2   : > { %v5071_v32 = vmul.u32.u64.low %v5035_v44, %v654_v30  ;;  %v5072_v33 = vmul.u32.u64.high %v5035_v44, %v654_v30, %v5071_v32  ;;  %v5075_v34 = vmul.u32.u64.low %v5035_v44, %v650_v29  ;;  %v5076_v35 = vmul.u32.u64.high %v5035_v44, %v650_v29, %v5075_v34 }
  0xb3   : > { %v423_v37 = vor.u32 %v422_v31, %v421_v27  ;;  %v425_v41 = vshrl.u32 %v4906_v55, %v416_v6  ;;  %v417_v40 = vshrl.u32 %v4903_v49, %v416_v6  ;;  %v427_v42 = vshll.u32 %v4906_v55, %v5037_v45 }
  0xb4   : > { %v428_v47 = vshrl.u32 %v4907_v57, %v416_v6  ;;  %v431_v48 = vshrl.u32 %v4908_v1, %v416_v6  ;;  %v662_v50 = vmul.u32 %v5035_v44, %v646_v28  ;;  %v430_v54 = vshll.u32 %v4907_v57, %v5037_v45 }
  0xb5   : > { %v426_v52 = vor.u32 %v425_v41, %v424_v38  ;;  %vm433_vm6 = vcmp.lt.s32.totalorder %v5046_v59, 1  ;;  %vm664_vm7 = vc.u32 %v5072_v33, %v5075_v34  ;;  %v665_v56 = vadd.s32 1, %v5076_v35 }
  0xb6   : > { %v429_v58 = vor.u32 %v428_v47, %v427_v42  ;;  %vm434_vm8 = vcmp.lt.s32.totalorder %v5046_v59, 2  ;;  %v432_v60 = vor.u32 %v431_v48, %v430_v54  ;;  %vm435_vm9 = vcmp.lt.s32.totalorder %v5046_v59, 3 }
  0xb7   : > { %vm436_vm10 = vcmp.lt.s32.totalorder %v5046_v59, 4  ;;  %v441_v44 = vsel %vm433_vm6, %v420_v36, %v423_v37  ;;  %v666_v61 = vsel %vm664_vm7, %v665_v56, %v5076_v35  ;;  %v445_v63 = vsel %vm433_vm6, %v423_v37, %v426_v52 }
  0xb8   : > { %v438_v62 = vsel %vm436_vm10, %v426_v52, 2102212464  ;;  %v442_v45 = vsel %vm436_vm10, %v429_v58, 920167782  ;;  %v667_v0 = vadd.s32 %v666_v61, %v662_v50  ;;  %v437_v2 = vsel %vm433_vm6, %v417_v40, %v420_v36 }
  0xb9   : > { %v443_v3 = vsel %vm435_vm9, %v426_v52, %v442_v45  ;;  %v446_v4 = vsel %vm436_vm10, %v432_v60, 1326507024  ;;  %v439_v5 = vsel %vm435_vm9, %v423_v37, %v438_v62  ;;  %vm721_vm11 = vcmp.gt.s32.totalorder %v720_v9, 0 }
  0xba   : > { %v444_v6 = vsel %vm434_vm8, %v441_v44, %v443_v3  ;;  %v447_v7 = vsel %vm435_vm9, %v429_v58, %v446_v4  ;;  %v668_v8 = vadd.s32 536870912, %v667_v0  ;;  %v440_v20 = vsel %vm434_vm8, %v437_v2, %v439_v5 }
  0xbb   : > { %v448_v10 = vsel %vm434_vm8, %v445_v63, %v447_v7  ;;  %v5103_v11 = vmul.u32.u64.low %v5039_v46, %v444_v6  ;;  %v5104_v12 = vmul.u32.u64.high %v5039_v46, %v444_v6, %v5103_v11  ;;  %v722_v22 = vsel %vm721_vm11, %v720_v9, 0 }
  0xbc   : > { %v5107_v13 = vmul.u32.u64.low %v5039_v46, %v448_v10  ;;  %v5108_v15 = vmul.u32.u64.high %v5039_v46, %v448_v10, %v5107_v13  ;;  %v669_v16 = vshrl.u32 %v668_v8, 30  ;;  %v717_v23 = vand.u32 8388607, %v710_v43 }
  0xbd   : > { %v459_v26 = vadd.s32 1, %v5104_v12  ;;  %v507_v27 = vand.u32 2139095040, %v5032_v39  ;;  %v456_v28 = vmul.u32 %v5039_v46, %v440_v20  ;;  %v724_v29 = vand.u32 31, %v722_v22 }
  0xbe   : > { %v670_v24 = vshll.u32 %v669_v16, 30  ;;  %vm458_vm12 = vc.u32 %v5108_v15, %v5103_v11  ;;  %v718_v59 = vor.u32 8388608, %v717_v23  ;;  %v693_v36 = vsub.s32 4, %v669_v16 }
  0xbf   : > { %v460_v31 = vsel %vm458_vm12, %v459_v26, %v5104_v12  ;;  %v508_v9 = vshrl.u32 %v507_v27, 23  ;;  %v725_v38 = vsub.s32 32, %v724_v29  ;;  %v504_v40 = vand.u32 2147483647, %v5032_v39 }
  0xc0   : > { %v671_v30 = vsub.s32 %v667_v0, %v670_v24  ;;  %v461_v32 = vadd.s32 %v460_v31, %v456_v28  ;;  %v663_v42 = vadd.s32 %v5075_v34, %v5072_v33  ;;  %v5129_v48 = vshrl.u32 %v722_v22, 5 }
  0xc1   : > { %v5131_v50 = vshll.u32 %v718_v59, 8  ;;  %v727_v54 = vshll.u32 %v4903_v49, %v724_v29  ;;  %v730_v19 = vshll.u32 %v4904_v51, %v724_v29  ;;  %v5135_v56 = vadd.s32 4294967169, %v508_v9 }
  0xc2   : > { %v673_v35 = vsub.s32 0, %v671_v30  ;;  %v462_v37 = vadd.s32 536870912, %v461_v32  ;;  %v694_v58 = vsel %vm609_vm14, %v693_v36, %v669_v16  ;;  %v728_v33 = vshrl.u32 %v4904_v51, %v725_v38 }
  0xc3   : > { %v731_v34 = vshrl.u32 %v4905_v53, %v725_v38  ;;  %v733_v61 = vshll.u32 %v4905_v53, %v724_v29  ;;  %v736_v62 = vshll.u32 %v4906_v55, %v724_v29  ;;  %v737_v45 = vshrl.u32 %v4907_v57, %v725_v38 }
  0xc4   : > { %v4094_v46 = vmin.u32 %v673_v35, %v671_v30  ;;  %v463_v47 = vshrl.u32 %v462_v37, 30  ;;  %v734_v0 = vshrl.u32 %v4906_v55, %v725_v38  ;;  %v739_v2 = vshll.u32 %v4907_v57, %v724_v29 }
  0xc5   : > { %v740_v3 = vshrl.u32 %v4908_v1, %v725_v38  ;;  %v457_v5 = vadd.s32 %v5103_v11, %v5108_v15  ;;  %v726_v6 = vshrl.u32 %v4903_v49, %v725_v38  ;;  %v5160_v7 = vand.u32 8388607, %v504_v40 }
  0xc6   : > { %v675_v52 = vclz %v4094_v46  ;;  %v464_v60 = vshll.u32 %v463_v47, 30  ;;  %v696_v10 = vsel %vm5121_vm13, 0, %v694_v58  ;;  %v729_v13 = vor.u32 %v728_v33, %v727_v54 }
  0xc7   : > { %v487_v20 = vsub.s32 4, %v463_v47  ;;  %v738_v22 = vor.u32 %v737_v45, %v736_v62  ;;  %v732_v11 = vor.u32 %v731_v34, %v730_v19  ;;  %v735_v15 = vor.u32 %v734_v0, %v733_v61 }
  0xc8   : > { %v4095_v44 = vadd.s32 4294967294, %v675_v52  ;;  %v5145_v63 = vsub.s32 %v461_v32, %v464_v60  ;;  %v741_v24 = vor.u32 %v740_v3, %v739_v2  ;;  %vm742_vm2 = vcmp.lt.s32.totalorder %v5129_v48, 1 }
  0xc9   : > { %vm743_vm3 = vcmp.lt.s32.totalorder %v5129_v48, 2  ;;  %vm744_vm4 = vcmp.lt.s32.totalorder %v5129_v48, 3  ;;  %vm745_vm5 = vcmp.lt.s32.totalorder %v5129_v48, 4  ;;  %v488_v59 = vsel %vm403_vm15, %v487_v20, %v463_v47 }
  0xca   : > { %vm4096_vm0 = vcmp.lt.s32.totalorder %v4095_v44, 0  ;;  %v467_v12 = vsub.s32 0, %v5145_v63  ;;  %v751_v35 = vsel %vm745_vm5, %v738_v22, 920167782  ;;  %v746_v36 = vsel %vm742_vm2, %v726_v6, %v729_v13 }
  0xcb   : > { %v678_v8 = vsel %vm4096_vm0, 0, %v4095_v44  ;;  %v754_v37 = vsel %vm742_vm2, %v732_v11, %v735_v15  ;;  %v747_v46 = vsel %vm745_vm5, %v735_v15, 2102212464  ;;  %v755_v52 = vsel %vm745_vm5, %v741_v24, 1326507024 }
  0xcc   : > { %v679_v16 = vsub.s32 32, %v678_v8  ;;  %v683_v21 = vsub.s32 4294967266, %v678_v8  ;;  %v4086_v23 = vmin.u32 %v467_v12, %v5145_v63  ;;  %v680_v26 = vshll.u32 %v671_v30, %v678_v8 }
  0xcd   : > { %v750_v30 = vsel %vm742_vm2, %v729_v13, %v732_v11  ;;  %v490_v19 = vsel %vm5152_vm1, 0, %v488_v59  ;;  %v756_v58 = vsel %vm744_vm4, %v738_v22, %v755_v52  ;;  %v748_v62 = vsel %vm744_vm4, %v732_v11, %v747_v46 }
  0xce   : > { %v681_v27 = vshrl.u32 %v663_v42, %v679_v16  ;;  %v684_v28 = vadd.s32 127, %v683_v21  ;;  %v469_v29 = vclz %v4086_v23  ;;  %v752_v42 = vsel %vm744_vm4, %v735_v15, %v751_v35 }
  0xcf   : > { %v753_v33 = vsel %vm743_vm3, %v750_v30, %v752_v42  ;;  %v757_v34 = vsel %vm743_vm3, %v754_v37, %v756_v58  ;;  %v514_v45 = vadd.s32 1, %v5135_v56  ;;  %v2107_v20 = vadd.s32 3, %v696_v10 }
  0xd0   : > { %v682_v31 = vor.u32 %v681_v27, %v680_v26  ;;  %v685_v32 = vshll.u32 %v684_v28, 23  ;;  %v4087_v9 = vadd.s32 4294967294, %v469_v29  ;;  %v749_v56 = vsel %vm743_vm3, %v746_v36, %v748_v62  ;;  %v345_v28 = vpop.permute.xlu1 %344 }
  0xd1   : > { %v5187_v3 = vmul.u32.u64.low %v5131_v50, %v757_v34  ;;  %v5188_v6 = vmul.u32.u64.high %v5131_v50, %v757_v34, %v5187_v3  ;;  %v5191_v13 = vmul.u32.u64.low %v5131_v50, %v753_v33  ;;  %v5192_v16 = vmul.u32.u64.high %v5131_v50, %v753_v33, %v5191_v13 }
  0xd2   : > { %v686_v38 = vor.u32 4788187, %v685_v32  ;;  %v689_v54 = vcvt.s32.f32 %v682_v31  ;;  %vm4088_vm6 = vcmp.lt.s32.totalorder %v4087_v9, 0  ;;  %vm515_vm7 = vcmp.gt.s32.totalorder %v514_v45, 0 }
  0xd3   : > { %v472_v60 = vsel %vm4088_vm6, 0, %v4087_v9  ;;  %v5199_v15 = vand.u32 3, %v696_v10  ;;  %vm767_vm8 = vc.u32 %v5188_v6, %v5191_v13  ;;  %v768_v27 = vadd.s32 1, %v5192_v16 }
  0xd4   : > { %v687_v47 = vand.u32 2147483647, %v686_v38  ;;  %v473_v44 = vsub.s32 32, %v472_v60  ;;  %v477_v61 = vsub.s32 4294967266, %v472_v60  ;;  %v474_v2 = vshll.u32 %v5145_v63, %v472_v60 }
  0xd5   : > { %v516_v63 = vsel %vm515_vm7, %v514_v45, 0  ;;  %v512_v48 = vor.u32 8388608, %v5160_v7  ;;  %v5208_v29 = vand.u32 3, %v2107_v20  ;;  %v765_v10 = vmul.u32 %v5131_v50, %v749_v56 }
  0xd6   : > { %v690_v0 = vmul.f32 %v689_v54, %v687_v47  ;;  %v475_v8 = vshrl.u32 %v457_v5, %v473_v44  ;;  %v478_v12 = vadd.s32 127, %v477_v61  ;;  %v1899_v5 = vadd.s32 3, %v490_v19 }
  0xd7   : > { %v518_v31 = vand.u32 31, %v516_v63  ;;  %v769_v35 = vsel %vm767_vm8, %v768_v27, %v5192_v16  ;;  %v5215_v36 = vmul.f32 %v5011_v14, %v345_v28  ;;  %v5217_v7 = vand.u32 3, %v490_v19 }
  0xd8   : > { %v691_v21 = vxor.u32 2147483648, %v690_v0  ;;  %v476_v22 = vor.u32 %v475_v8, %v474_v2  ;;  %v479_v23 = vshll.u32 %v478_v12, 23  ;;  %v770_v9 = vadd.s32 %v769_v35, %v765_v10 }
  0xd9   : > { %v5212_v41 = vsub.s32 32, %v518_v31  ;;  %v5219_v37 = vand.u32 3, %v1899_v5  ;;  %v5221_v38 = vshll.u32 %v512_v48, 8  ;;  %vm705_vm9 = vcmp.eq.s32.totalorder %v5199_v15, 2 }
  0xda   : > { %v692_v11 = vsel %vm609_vm14, %v691_v21, %v690_v0  ;;  %v480_v26 = vor.u32 4788187, %v479_v23  ;;  %v483_v59 = vcvt.s32.f32 %v476_v22  ;;  %vm2113_vm10 = vcmp.eq.s32.totalorder %v5208_v29, 2 }
  0xdb   : > { %v695_v24 = vsel %vm5121_vm13, %v5014_v17, %v692_v11  ;;  %v771_v50 = vadd.s32 536870912, %v770_v9  ;;  %v5225_v46 = vshrl.u32 %v516_v63, 5  ;;  %v522_v42 = vshrl.u32 %v4904_v51, %v5212_v41 }
  0xdc   : > { %4716 = vcosq.f32 %v695_v24  ;;  %v481_v32 = vand.u32 2147483647, %v480_v26  ;;  %v530_v52 = vshll.u32 %v4906_v55, %v518_v31  ;;  %vm702_vm11 = vcmp.eq.s32.totalorder %v5199_v15, 0 }
  0xdd   : > { %4718 = vsinq.f32 %v695_v24  ;;  %vm2110_vm12 = vcmp.eq.s32.totalorder %v5208_v29, 0  ;;  %v525_v19 = vshrl.u32 %v4905_v53, %v5212_v41  ;;  %v528_v58 = vshrl.u32 %v4906_v55, %v5212_v41 }
  0xde   : > { %v484_v30 = vmul.f32 %v483_v59, %v481_v32  ;;  %v531_v47 = vshrl.u32 %v4907_v57, %v5212_v41  ;;  %vm701_vm13 = vcmp.lt.s32.totalorder %v5199_v15, 2  ;;  %vm2109_vm14 = vcmp.lt.s32.totalorder %v5208_v29, 2 }
  0xdf   : > { %vm712_vm0 = vcmp.lt.s32.totalorder %v5024_v25, 0  ;;  %v772_v60 = vshrl.u32 %v771_v50, 30  ;;  %v521_v33 = vshll.u32 %v4903_v49, %v518_v31  ;;  %v916_v34 = vand.u32 2147483647, %v5215_v36 }
  0xe0   : > { %v485_v54 = vxor.u32 2147483648, %v484_v30  ;;  %v919_v44 = vand.u32 2139095040, %v5215_v36  ;;  %vm699_vm2 = vweird.f32 %v5014_v17  ;;  %v524_v62 = vshll.u32 %v4904_v51, %v518_v31 }
  0xe1   : > { %v527_v45 = vshll.u32 %v4905_v53, %v518_v31  ;;  %v532_v0 = vor.u32 %v531_v47, %v530_v52  ;;  %v773_v3 = vshll.u32 %v772_v60, 30  ;;  %v523_v8 = vor.u32 %v522_v42, %v521_v33 }
  0xe2   : > { %v486_v61 = vsel %vm403_vm15, %v485_v54, %v484_v30  ;;  %v534_v12 = vshrl.u32 %v4908_v1, %v5212_v41  ;;  %v526_v16 = vor.u32 %v525_v19, %v524_v62  ;;  %vm539_vm3 = vcmp.lt.s32.totalorder %v5225_v46, 4 }
  0xe3   : > { %v489_v2 = vsel %vm5152_vm1, %v5017_v18, %v486_v61  ;;  %v529_v21 = vor.u32 %v528_v58, %v527_v45  ;;  %vm5257_vm15 = vcmp.le.f32.partialorder %v710_v43, 0.7853982  ;;  %v5261_v4 = vsub.s32 %v770_v9, %v773_v3 }
  0xe4   : > { %4720 = vcosq.f32 %v489_v2  ;;  %v533_v23 = vshll.u32 %v4907_v57, %v518_v31  ;;  %v545_v56 = vsel %vm539_vm3, %v532_v0, 920167782  ;;  %v796_v5 = vsub.s32 4, %v772_v60 }
  0xe5   : > { %4722 = vsinq.f32 %v489_v2  ;;  %vm536_vm1 = vcmp.lt.s32.totalorder %v5225_v46, 1  ;;  %vm537_vm4 = vcmp.lt.s32.totalorder %v5225_v46, 2  ;;  %v776_v43 = vsub.s32 0, %v5261_v4 }
  0xe6   : > { %v4717_v20 = vpop.eup %4716  ;;  %v535_v26 = vor.u32 %v534_v12, %v533_v23  ;;  %vm538_vm5 = vcmp.lt.s32.totalorder %v5225_v46, 3  ;;  %vm499_vm6 = vcmp.eq.s32.totalorder %v5217_v7, 2  ;;  %vm1905_vm7 = vcmp.eq.s32.totalorder %v5219_v37, 2 }
  0xe7   : > { %v4719_v63 = vpop.eup %4718  ;;  %v706_v11 = vxor.u32 2147483648, %v4717_v20  ;;  %v544_v28 = vsel %vm536_vm1, %v523_v8, %v526_v16  ;;  %v546_v10 = vsel %vm538_vm5, %v529_v21, %v545_v56  ;;  %vm496_vm8 = vcmp.eq.s32.totalorder %v5217_v7, 0 }
  0xe8   : > { %v703_v24 = vxor.u32 2147483648, %v4719_v63  ;;  %v4098_v59 = vmin.u32 %v776_v43, %v5261_v4  ;;  %v520_v35 = vshrl.u32 %v4903_v49, %v5212_v41  ;;  %v797_v50 = vsel %vm712_vm0, %v796_v5, %v772_v60 }
  0xe9   : > { %v707_v27 = vsel %vm705_vm9, %v706_v11, %v4719_v63  ;;  %v2115_v48 = vsel %vm2113_vm10, %v706_v11, %v4719_v63  ;;  %vm1902_vm9 = vcmp.eq.s32.totalorder %v5219_v37, 0  ;;  %vm495_vm10 = vcmp.lt.s32.totalorder %v5217_v7, 2 }
  0xea   : > { %v704_v31 = vsel %vm702_vm11, %v4717_v20, %v703_v24  ;;  %v2112_v32 = vsel %vm2110_vm12, %v4717_v20, %v703_v24  ;;  %vm1901_vm11 = vcmp.lt.s32.totalorder %v5219_v37, 2  ;;  %v541_v42 = vsel %vm539_vm3, %v529_v21, 2102212464 }
  0xeb   : > { %v708_v9 = vsel %vm701_vm13, %v704_v31, %v707_v27  ;;  %v2116_v30 = vsel %vm2109_vm14, %v2112_v32, %v2115_v48  ;;  %vm493_vm12 = vweird.f32 %v5017_v18  ;;  %v778_v29 = vclz %v4098_v59  ;;  %v340_v18 = vpop.permute.xlu0 %339 }
  0xec   : > { %v709_v52 = vsel %vm699_vm2, nan, %v708_v9  ;;  %v2117_v15 = vsel %vm699_vm2, nan, %v2116_v30  ;;  %v547_v41 = vsel %vm537_vm4, %v544_v28, %v546_v10  ;;  %v548_v58 = vsel %vm536_vm1, %v526_v16, %v529_v21 }
  0xed   : > { %v4306_v54 = vpack.c.bf16 %v709_v52, %v709_v52  ;;  %v4319_v19 = vpack.c.bf16 %v2117_v15, %v2117_v15  ;;  %v549_v47 = vsel %vm539_vm3, %v535_v26, 1326507024  ;;  %v766_v60 = vadd.s32 %v5191_v13, %v5188_v6 }
  0xee   : > { %v4099_v33 = vadd.s32 4294967294, %v778_v29  ;;  %v540_v17 = vsel %vm536_vm1, %v520_v35, %v523_v8  ;;  %v542_v61 = vsel %vm538_vm5, %v526_v16, %v541_v42  ;;  %v4721_v62 = vpop.eup %4720  ;;  %v799_v45 = vsel %vm5257_vm15, 0, %v797_v50 }
  0xef   : > { %1795 = vst [vmem:[#allocation2 + $0x10] sm:$0xf] %v4306_v54  ;;  %3213 = vst [vmem:[#allocation2 + $0x14] sm:$0xf] %v4319_v19  ;;  %v550_v2 = vsel %vm538_vm5, %v532_v0, %v549_v47  ;;  %v5321_v3 = vmul.u32.u64.low %v5221_v38, %v547_v41  ;;  %v5322_v12 = vmul.u32.u64.high %v5221_v38, %v547_v41, %v5321_v3  ;;  %v4723_v6 = vpop.eup %4722  ;;  %v500_v13 = vxor.u32 2147483648, %v4721_v62 }
  0xf0   : > { %vm4100_vm13 = vcmp.lt.s32.totalorder %v4099_v33, 0  ;;  %v551_v8 = vsel %vm537_vm4, %v548_v58, %v550_v2  ;;  %v920_v16 = vshrl.u32 %v919_v44, 23  ;;  %v497_v21 = vxor.u32 2147483648, %v4723_v6 }
  0xf1   : > { %v781_v20 = vsel %vm4100_vm13, 0, %v4099_v33  ;;  %v5329_v23 = vmul.u32.u64.low %v5221_v38, %v551_v8  ;;  %v5330_v56 = vmul.u32.u64.high %v5221_v38, %v551_v8, %v5329_v23  ;;  %v501_v0 = vsel %vm499_vm6, %v500_v13, %v4723_v6 }
  0xf2   : > { %v1907_v63 = vsel %vm1905_vm7, %v500_v13, %v4723_v6  ;;  %v782_v11 = vsub.s32 32, %v781_v20  ;;  %v543_v5 = vsel %vm537_vm4, %v540_v17, %v542_v61  ;;  %v498_v24 = vsel %vm496_vm8, %v4721_v62, %v497_v21 }
  0xf3   : > { %v1904_v44 = vsel %vm1902_vm9, %v4721_v62, %v497_v21  ;;  %v786_v43 = vsub.s32 4294967266, %v781_v20  ;;  %v562_v26 = vadd.s32 1, %v5322_v12  ;;  %v502_v27 = vsel %vm495_vm10, %v498_v24, %v501_v0 }
  0xf4   : > { %v1908_v48 = vsel %vm1901_vm11, %v1904_v44, %v1907_v63  ;;  %v784_v28 = vshrl.u32 %v766_v60, %v782_v11  ;;  %v4105_v10 = vadd.s32 4294967169, %v920_v16  ;;  %v503_v46 = vsel %vm493_vm12, nan, %v502_v27 }
  0xf5   : > { %v1909_v31 = vsel %vm493_vm12, nan, %v1908_v48  ;;  %v783_v32 = vshll.u32 %v5261_v4, %v781_v20  ;;  %v787_v59 = vadd.s32 127, %v786_v43  ;;  %v4304_v35 = vpack.c.bf16 %v503_v46, %v503_v46 }
  0xf6   : > { %v4317_v9 = vpack.c.bf16 %v1909_v31, %v1909_v31  ;;  %v559_v30 = vmul.u32 %v5221_v38, %v543_v5  ;;  %vm561_vm14 = vc.u32 %v5330_v56, %v5321_v3  ;;  %v926_v42 = vadd.s32 1, %v4105_v10 }
  0xf7   : > { %v785_v7 = vor.u32 %v784_v28, %v783_v32  ;;  %v788_v37 = vshll.u32 %v787_v59, 23  ;;  %v563_v50 = vsel %vm561_vm14, %v562_v26, %v5322_v12  ;;  %1793 = vst [vmem:[#allocation2] sm:$0xf] %v4304_v35  ;;  %v2211_v29 = vadd.s32 3, %v799_v45 }
  0xf8   : > { %3211 = vst [vmem:[#allocation2 + $0x4] sm:$0xf] %v4317_v9  ;;  %v564_v52 = vadd.s32 %v563_v50, %v559_v30  ;;  %vm927_vm2 = vcmp.gt.s32.totalorder %v926_v42, 0  ;;  %v923_v38 = vand.u32 8388607, %v916_v34  ;;  %v5358_v60 = vmul.f32 %v5011_v14, %v340_v18 }
  0xf9   : > { %v789_v15 = vor.u32 4788187, %v788_v37  ;;  %v928_v41 = vsel %vm927_vm2, %v926_v42, 0  ;;  %v792_v19 = vcvt.s32.f32 %v785_v7  ;;  %v5360_v61 = vand.u32 3, %v799_v45 }
  0xfa   : > { %v565_v4 = vadd.s32 536870912, %v564_v52  ;;  %v930_v58 = vand.u32 31, %v928_v41  ;;  %v5362_v62 = vand.u32 3, %v2211_v29  ;;  %vm506_vm3 = vcmp.lt.s32.totalorder %v5032_v39, 0 }
  0xfb   : > { %v790_v54 = vand.u32 2147483647, %v789_v15  ;;  %v5366_v6 = vadd.s32 %v5321_v3, %v5330_v56  ;;  %v924_v13 = vor.u32 8388608, %v923_v38  ;;  %v816_v45 = vand.u32 2139095040, %v5358_v60 }
  0xfc   : > { %v566_v47 = vshrl.u32 %v565_v4, 30  ;;  %v931_v17 = vsub.s32 32, %v930_v58  ;;  %v933_v23 = vshll.u32 %v4903_v49, %v930_v58  ;;  %v936_v0 = vshll.u32 %v4904_v51, %v930_v58 }
  0xfd   : > { %v793_v33 = vmul.f32 %v792_v19, %v790_v54  ;;  %vm5384_vm1 = vcmp.le.f32.partialorder %v504_v40, 0.7853982  ;;  %v939_v24 = vshll.u32 %v4905_v53, %v930_v58  ;;  %v929_v44 = vshrl.u32 %v928_v41, 5 }
  0xfe   : > { %v567_v2 = vshll.u32 %v566_v47, 30  ;;  %v934_v8 = vshrl.u32 %v4904_v51, %v931_v17  ;;  %v937_v14 = vshrl.u32 %v4905_v53, %v931_v17  ;;  %v940_v21 = vshrl.u32 %v4906_v55, %v931_v17 }
  0xff   : > { %v794_v12 = vxor.u32 2147483648, %v793_v33  ;;  %v943_v3 = vshrl.u32 %v4907_v57, %v931_v17  ;;  %v590_v5 = vsub.s32 4, %v566_v47  ;;  %v942_v26 = vshll.u32 %v4906_v55, %v930_v58 }
 0x100   : > { %v5369_v16 = vsub.s32 %v564_v52, %v567_v2  ;;  %v935_v43 = vor.u32 %v934_v8, %v933_v23  ;;  %v938_v27 = vor.u32 %v937_v14, %v936_v0  ;;  %v941_v48 = vor.u32 %v940_v21, %v939_v24 }
 0x101   : > { %v795_v20 = vsel %vm712_vm0, %v794_v12, %v793_v33  ;;  %v944_v28 = vor.u32 %v943_v3, %v942_v26  ;;  %v945_v40 = vshll.u32 %v4907_v57, %v930_v58  ;;  %v946_v10 = vshrl.u32 %v4908_v1, %v931_v17 }
 0x102   : > { %v798_v56 = vsel %vm5257_vm15, %v5024_v25, %v795_v20  ;;  %v570_v11 = vsub.s32 0, %v5369_v16  ;;  %v5394_v46 = vshll.u32 %v924_v13, 8  ;;  %v591_v32 = vsel %vm506_vm3, %v590_v5, %v566_v47 }
 0x103   : > { %4724 = vcosq.f32 %v798_v56  ;;  %v932_v59 = vshrl.u32 %v4903_v49, %v931_v17  ;;  %v817_v35 = vshrl.u32 %v816_v45, 23  ;;  %vm808_vm0 = vcmp.eq.s32.totalorder %v5360_v61, 2 }
 0x104   : > { %4726 = vsinq.f32 %v798_v56  ;;  %v4090_v22 = vmin.u32 %v570_v11, %v5369_v16  ;;  %vm2217_vm15 = vcmp.eq.s32.totalorder %v5362_v62, 2  ;;  %v947_v9 = vor.u32 %v946_v10, %v945_v40 }
 0x105   : > { %vm948_vm4 = vcmp.lt.s32.totalorder %v929_v44, 1  ;;  %vm950_vm5 = vcmp.lt.s32.totalorder %v929_v44, 3  ;;  %vm951_vm6 = vcmp.lt.s32.totalorder %v929_v44, 4  ;;  %vm805_vm7 = vcmp.eq.s32.totalorder %v5360_v61, 0 }
 0x106   : > { %v572_v31 = vclz %v4090_v22  ;;  %vm2214_vm8 = vcmp.eq.s32.totalorder %v5362_v62, 0  ;;  %v952_v7 = vsel %vm948_vm4, %v932_v59, %v935_v43  ;;  %v953_v37 = vsel %vm951_vm6, %v941_v48, 2102212464 }
 0x107   : > { %v956_v50 = vsel %vm948_vm4, %v935_v43, %v938_v27  ;;  %vm804_vm9 = vcmp.lt.s32.totalorder %v5360_v61, 2  ;;  %vm2213_vm10 = vcmp.lt.s32.totalorder %v5362_v62, 2  ;;  %v954_v42 = vsel %vm950_vm5, %v938_v27, %v953_v37 }
 0x108   : > { %v4091_v30 = vadd.s32 4294967294, %v572_v31  ;;  %v957_v52 = vsel %vm951_vm6, %v944_v28, 920167782  ;;  %v960_v15 = vsel %vm948_vm4, %v938_v27, %v941_v48  ;;  %v961_v18 = vsel %vm951_vm6, %v947_v9, 1326507024 }
 0x109   : > { %vm802_vm11 = vweird.f32 %v5024_v25  ;;  %vm949_vm13 = vcmp.lt.s32.totalorder %v929_v44, 2  ;;  %v958_v29 = vsel %vm950_vm5, %v941_v48, %v957_v52  ;;  %v962_v4 = vsel %vm950_vm5, %v944_v28, %v961_v18 }
 0x10a   : > { %vm4092_vm12 = vcmp.lt.s32.totalorder %v4091_v30, 0  ;;  %v593_v54 = vsel %vm5384_vm1, 0, %v591_v32  ;;  %v959_v19 = vsel %vm949_vm13, %v956_v50, %v958_v29  ;;  %v963_v38 = vsel %vm949_vm13, %v960_v15, %v962_v4 }
 0x10b   : > { %v575_v41 = vsel %vm4092_vm12, 0, %v4091_v30  ;;  %v955_v33 = vsel %vm949_vm13, %v952_v7, %v954_v42  ;;  %v4101_v17 = vadd.s32 4294967169, %v817_v35  ;;  %v2003_v56 = vadd.s32 3, %v593_v54 }
 0x10c   : > { %v576_v58 = vsub.s32 32, %v575_v41  ;;  %v580_v47 = vsub.s32 4294967266, %v575_v41  ;;  %v5412_v12 = vmul.u32.u64.low %v5394_v46, %v963_v38  ;;  %v5413_v13 = vmul.u32.u64.high %v5394_v46, %v963_v38, %v5412_v12 }
 0x10d   : > { %v4725_v2 = vpop.eup %4724  ;;  %v5416_v8 = vmul.u32.u64.low %v5394_v46, %v959_v19  ;;  %v5417_v14 = vmul.u32.u64.high %v5394_v46, %v959_v19, %v5416_v8  ;;  %v577_v20 = vshll.u32 %v5369_v16, %v575_v41  ;;  %v813_v11 = vand.u32 2147483647, %v5358_v60 }
 0x10e   : > { %v4727_v21 = vpop.eup %4726  ;;  %v809_v45 = vxor.u32 2147483648, %v4725_v2  ;;  %v578_v23 = vshrl.u32 %v5366_v6, %v576_v58  ;;  %v581_v0 = vadd.s32 127, %v580_v47  ;;  %v823_v5 = vadd.s32 1, %v4101_v17 }
 0x10f   : > { %v806_v3 = vxor.u32 2147483648, %v4727_v21  ;;  %v971_v16 = vmul.u32 %v5394_v46, %v955_v33  ;;  %vm973_vm14 = vc.u32 %v5413_v13, %v5416_v8  ;;  %v974_v32 = vadd.s32 1, %v5417_v14 }
 0x110   : > { %v810_v24 = vsel %vm808_vm0, %v809_v45, %v4727_v21  ;;  %v2219_v44 = vsel %vm2217_vm15, %v809_v45, %v4727_v21  ;;  %v579_v43 = vor.u32 %v578_v23, %v577_v20  ;;  %v582_v26 = vshll.u32 %v581_v0, 23 }
 0x111   : > { %v807_v22 = vsel %vm805_vm7, %v4725_v2, %v806_v3  ;;  %v2216_v6 = vsel %vm2214_vm8, %v4725_v2, %v806_v3  ;;  %vm824_vm2 = vcmp.gt.s32.totalorder %v823_v5, 0  ;;  %v975_v61 = vsel %vm973_vm14, %v974_v32, %v5417_v14 }
 0x112   : > { %v811_v27 = vsel %vm804_vm9, %v807_v22, %v810_v24  ;;  %v2220_v48 = vsel %vm2213_vm10, %v2216_v6, %v2219_v44  ;;  %v583_v28 = vor.u32 4788187, %v582_v26  ;;  %v586_v40 = vcvt.s32.f32 %v579_v43  ;;  %v5480_v44 = vld [vmem:[%s6466_s1] ss:$0 sm:$0xff] }
 0x113   : > { %v812_v10 = vsel %vm802_vm11, nan, %v811_v27  ;;  %v2221_v31 = vsel %vm802_vm11, nan, %v2220_v48  ;;  %v825_v9 = vsel %vm824_vm2, %v823_v5, 0  ;;  %v976_v7 = vadd.s32 %v975_v61, %v971_v16 }
 0x114   : > { %v4307_v46 = vpack.c.bf16 %v812_v10, %v812_v10  ;;  %v4320_v59 = vpack.c.bf16 %v2221_v31, %v2221_v31  ;;  %v584_v35 = vand.u32 2147483647, %v583_v28  ;;  %v827_v30 = vand.u32 31, %v825_v9 }
 0x115   : > { %v5444_v37 = vand.u32 3, %v593_v54  ;;  %v5446_v50 = vand.u32 3, %v2003_v56  ;;  %v820_v25 = vand.u32 8388607, %v813_v11  ;;  %v977_v15 = vadd.s32 536870912, %v976_v7  ;;  %v355_v56 = vpop.permute.xlu1 %354 }
 0x116   : > { %1796 = vst [vmem:[#allocation2 + $0x18] sm:$0xf] %v4307_v46  ;;  %3214 = vst [vmem:[#allocation2 + $0x1c] sm:$0xf] %v4320_v59  ;;  %v587_v62 = vmul.f32 %v586_v40, %v584_v35  ;;  %v828_v42 = vsub.s32 32, %v827_v30  ;;  %v5450_v18 = vshrl.u32 %v825_v9, 5  ;;  %v830_v29 = vshll.u32 %v4903_v49, %v827_v30  ;;  %v350_v40 = vpop.permute.xlu0 %349 }
 0x117   : > { %v833_v41 = vshll.u32 %v4904_v51, %v827_v30  ;;  %v5459_v58 = vshrl.u32 %v977_v15, 30  ;;  %v836_v2 = vshll.u32 %v4905_v53, %v827_v30  ;;  %v839_v12 = vshll.u32 %v4906_v55, %v827_v30 }
 0x118   : > { %v588_v52 = vxor.u32 2147483648, %v587_v62  ;;  %v831_v4 = vshrl.u32 %v4904_v51, %v828_v42  ;;  %v834_v19 = vshrl.u32 %v4905_v53, %v828_v42  ;;  %v837_v54 = vshrl.u32 %v4906_v55, %v828_v42 }
 0x119   : > { %v840_v47 = vshrl.u32 %v4907_v57, %v828_v42  ;;  %v843_v33 = vshrl.u32 %v4908_v1, %v828_v42  ;;  %v842_v14 = vshll.u32 %v4907_v57, %v827_v30  ;;  %v979_v21 = vshll.u32 %v5459_v58, 30 }
 0x11a   : > { %v589_v38 = vsel %vm506_vm3, %v588_v52, %v587_v62  ;;  %v832_v45 = vor.u32 %v831_v4, %v830_v29  ;;  %v835_v20 = vor.u32 %v834_v19, %v833_v41  ;;  %v838_v23 = vor.u32 %v837_v54, %v836_v2 }
 0x11b   : > { %v592_v17 = vsel %vm5384_vm1, %v5032_v39, %v589_v38  ;;  %v841_v0 = vor.u32 %v840_v47, %v839_v12  ;;  %v844_v3 = vor.u32 %v843_v33, %v842_v14  ;;  %v5470_v5 = vsub.s32 %v976_v7, %v979_v21 }
 0x11c   : > { %4728 = vcosq.f32 %v592_v17  ;;  %v821_v63 = vor.u32 8388608, %v820_v25  ;;  %vm918_vm3 = vcmp.lt.s32.totalorder %v5215_v36, 0  ;;  %vm602_vm1 = vcmp.eq.s32.totalorder %v5444_v37, 2 }
 0x11d   : > { %4730 = vsinq.f32 %v592_v17  ;;  %v982_v24 = vsub.s32 0, %v5470_v5  ;;  %vm845_vm0 = vcmp.lt.s32.totalorder %v5450_v18, 1  ;;  %vm848_vm15 = vcmp.lt.s32.totalorder %v5450_v18, 4 }
 0x11e   : > { %v5483_v43 = vmul.f32 %v5480_v44, %v355_v56  ;;  %vm599_vm4 = vcmp.eq.s32.totalorder %v5444_v37, 0  ;;  %vm2006_vm5 = vcmp.eq.s32.totalorder %v5446_v50, 0  ;;  %v853_v26 = vsel %vm845_vm0, %v832_v45, %v835_v20 }
 0x11f   : > { %v854_v22 = vsel %vm848_vm15, %v841_v0, 920167782  ;;  %v857_v6 = vsel %vm845_vm0, %v835_v20, %v838_v23  ;;  %v858_v16 = vsel %vm848_vm15, %v844_v3, 1326507024  ;;  %vm598_vm6 = vcmp.lt.s32.totalorder %v5444_v37, 2 }
 0x120   : > { %vm2005_vm7 = vcmp.lt.s32.totalorder %v5446_v50, 2  ;;  %v4106_v27 = vmin.u32 %v982_v24, %v5470_v5  ;;  %v829_v48 = vshrl.u32 %v4903_v49, %v828_v42  ;;  %vm847_vm8 = vcmp.lt.s32.totalorder %v5450_v18, 3 }
 0x121   : > { %v861_v28 = vshll.u32 %v821_v63, 8  ;;  %vm596_vm9 = vweird.f32 %v5032_v39  ;;  %vm846_vm10 = vcmp.lt.s32.totalorder %v5450_v18, 2  ;;  %v850_v10 = vsel %vm848_vm15, %v838_v23, 2102212464 }
 0x122   : > { %v855_v31 = vsel %vm847_vm8, %v838_v23, %v854_v22  ;;  %v859_v32 = vsel %vm847_vm8, %v841_v0, %v858_v16  ;;  %v984_v46 = vclz %v4106_v27  ;;  %v1002_v59 = vsub.s32 4, %v5459_v58 }
 0x123   : > { %v856_v35 = vsel %vm846_vm10, %v853_v26, %v855_v31  ;;  %v860_v9 = vsel %vm846_vm10, %v857_v6, %v859_v32  ;;  %vm2009_vm11 = vcmp.eq.s32.totalorder %v5446_v50, 2  ;;  %vm5516_vm12 = vcmp.le.f32.partialorder %v916_v34, 0.7853982 }
 0x124   : > { %v849_v30 = vsel %vm845_vm0, %v829_v48, %v832_v45  ;;  %v1125_v62 = vand.u32 2139095040, %v5483_v43  ;;  %v5524_v7 = vmul.f32 %v5480_v44, %v350_v40  ;;  %v4107_v42 = vadd.s32 4294967294, %v984_v46 }
 0x125   : > { %v851_v52 = vsel %vm847_vm8, %v835_v20, %v850_v10  ;;  %v5528_v15 = vmul.u32.u64.low %v861_v28, %v860_v9  ;;  %v5529_v29 = vmul.u32.u64.high %v861_v28, %v860_v9, %v5528_v15  ;;  %v972_v47 = vadd.s32 %v5416_v8, %v5413_v13 }
 0x126   : > { %v4729_v25 = vpop.eup %4728  ;;  %v5531_v41 = vmul.u32.u64.low %v861_v28, %v856_v35  ;;  %v5532_v19 = vmul.u32.u64.high %v861_v28, %v856_v35, %v5531_v41  ;;  %v1126_v54 = vshrl.u32 %v1125_v62, 23  ;;  %vm4108_vm13 = vcmp.lt.s32.totalorder %v4107_v42, 0 }
 0x127   : > { %v4731_v34 = vpop.eup %4730  ;;  %v603_v4 = vxor.u32 2147483648, %v4729_v25  ;;  %v1003_v33 = vsel %vm918_vm3, %v1002_v59, %v5459_v58  ;;  %v987_v12 = vsel %vm4108_vm13, 0, %v4107_v42  ;;  %v852_v14 = vsel %vm846_vm10, %v849_v30, %v851_v52 }
 0x128   : > { %v600_v38 = vxor.u32 2147483648, %v4731_v34  ;;  %v988_v8 = vsub.s32 32, %v987_v12  ;;  %v4113_v45 = vadd.s32 4294967169, %v1126_v54  ;;  %v989_v23 = vshll.u32 %v5470_v5, %v987_v12 }
 0x129   : > { %v604_v17 = vsel %vm602_vm1, %v603_v4, %v4731_v34  ;;  %v2011_v2 = vsel %vm2009_vm11, %v603_v4, %v4731_v34  ;;  %v992_v0 = vsub.s32 4294967266, %v987_v12  ;;  %vm870_vm14 = vc.u32 %v5529_v29, %v5531_v41 }
 0x12a   : > { %v601_v21 = vsel %vm599_vm4, %v4729_v25, %v600_v38  ;;  %v2008_v13 = vsel %vm2006_vm5, %v4729_v25, %v600_v38  ;;  %v990_v56 = vshrl.u32 %v972_v47, %v988_v8  ;;  %v871_v26 = vadd.s32 1, %v5532_v19 }
 0x12b   : > { %v605_v58 = vsel %vm598_vm6, %v601_v21, %v604_v17  ;;  %v2012_v20 = vsel %vm2005_vm7, %v2008_v13, %v2011_v2  ;;  %v993_v37 = vadd.s32 127, %v992_v0  ;;  %v1005_v50 = vsel %vm5516_vm12, 0, %v1003_v33 }
 0x12c   : > { %v606_v18 = vsel %vm596_vm9, nan, %v605_v58  ;;  %v2013_v3 = vsel %vm596_vm9, nan, %v2012_v20  ;;  %v868_v5 = vmul.u32 %v861_v28, %v852_v14  ;;  %v1122_v22 = vand.u32 2147483647, %v5483_v43 }
 0x12d   : > { %v4305_v63 = vpack.c.bf16 %v606_v18, %v606_v18  ;;  %v4318_v24 = vpack.c.bf16 %v2013_v3, %v2013_v3  ;;  %v1132_v6 = vadd.s32 1, %v4113_v45  ;;  %v991_v39 = vor.u32 %v990_v56, %v989_v23 }
 0x12e   : > { %v994_v16 = vshll.u32 %v993_v37, 23  ;;  %v872_v27 = vsel %vm870_vm14, %v871_v26, %v5532_v19  ;;  %v2419_v10 = vadd.s32 3, %v1005_v50  ;;  %v1129_v46 = vand.u32 8388607, %v1122_v22 }
 0x12f   : > { %1794 = vst [vmem:[#allocation2 + $0x8] sm:$0xf] %v4305_v63  ;;  %3212 = vst [vmem:[#allocation2 + $0xc] sm:$0xf] %v4318_v24  ;;  %v873_v48 = vadd.s32 %v872_v27, %v868_v5  ;;  %vm1133_vm2 = vcmp.gt.s32.totalorder %v1132_v6, 0  ;;  %v1022_v28 = vand.u32 2139095040, %v5524_v7  ;;  %v998_v9 = vcvt.s32.f32 %v991_v39 }
 0x130   : > { %v995_v40 = vor.u32 4788187, %v994_v16  ;;  %v1134_v31 = vsel %vm1133_vm2, %v1132_v6, 0  ;;  %v5571_v42 = vand.u32 3, %v1005_v50  ;;  %v5573_v52 = vand.u32 3, %v2419_v10 }
 0x131   : > { %v874_v32 = vadd.s32 536870912, %v873_v48  ;;  %v1136_v59 = vand.u32 31, %v1134_v31  ;;  %v1130_v34 = vor.u32 8388608, %v1129_v46  ;;  %v1023_v4 = vshrl.u32 %v1022_v28, 23 }
 0x132   : > { %v996_v35 = vand.u32 2147483647, %v995_v40  ;;  %v1135_v17 = vshrl.u32 %v1134_v31, 5  ;;  %vm815_vm1 = vcmp.lt.s32.totalorder %v5358_v60, 0  ;;  %v869_v56 = vadd.s32 %v5531_v41, %v5529_v29 }
 0x133   : > { %v5569_v30 = vshrl.u32 %v874_v32, 30  ;;  %v1137_v62 = vsub.s32 32, %v1136_v59  ;;  %v1139_v2 = vshll.u32 %v4903_v49, %v1136_v59  ;;  %v1142_v21 = vshll.u32 %v4904_v51, %v1136_v59 }
 0x134   : > { %v999_v25 = vmul.f32 %v998_v9, %v996_v35  ;;  %v1145_v13 = vshll.u32 %v4905_v53, %v1136_v59  ;;  %v1148_v20 = vshll.u32 %v4906_v55, %v1136_v59  ;;  %v1151_v23 = vshll.u32 %v4907_v57, %v1136_v59 }
 0x135   : > { %v876_v15 = vshll.u32 %v5569_v30, 30  ;;  %v1140_v54 = vshrl.u32 %v4904_v51, %v1137_v62  ;;  %v1143_v38 = vshrl.u32 %v4905_v53, %v1137_v62  ;;  %v1146_v47 = vshrl.u32 %v4906_v55, %v1137_v62 }
 0x136   : > { %v1000_v19 = vxor.u32 2147483648, %v999_v25  ;;  %v1149_v12 = vshrl.u32 %v4907_v57, %v1137_v62  ;;  %v1152_v8 = vshrl.u32 %v4908_v1, %v1137_v62  ;;  %v5598_v37 = vshll.u32 %v1130_v34, 8 }
 0x137   : > { %v5579_v33 = vsub.s32 %v873_v48, %v876_v15  ;;  %v1141_v0 = vor.u32 %v1140_v54, %v1139_v2  ;;  %v1144_v18 = vor.u32 %v1143_v38, %v1142_v21  ;;  %v1147_v3 = vor.u32 %v1146_v47, %v1145_v13 }
 0x138   : > { %v1001_v14 = vsel %vm918_vm3, %v1000_v19, %v999_v25  ;;  %v1150_v61 = vor.u32 %v1149_v12, %v1148_v20  ;;  %v1153_v24 = vor.u32 %v1152_v8, %v1151_v23  ;;  %v1019_v26 = vand.u32 2147483647, %v5524_v7 }
 0x139   : > { %v1004_v45 = vsel %vm5516_vm12, %v5215_v36, %v1001_v14  ;;  %v879_v58 = vsub.s32 0, %v5579_v33  ;;  %v4109_v50 = vadd.s32 4294967169, %v1023_v4  ;;  %vm5603_vm3 = vcmp.le.f32.partialorder %v813_v11, 0.7853982 }
 0x13a   : > { %4732 = vcosq.f32 %v1004_v45  ;;  %v899_v39 = vsub.s32 4, %v5569_v30  ;;  %vm1154_vm0 = vcmp.lt.s32.totalorder %v1135_v17, 1  ;;  %vm1157_vm15 = vcmp.lt.s32.totalorder %v1135_v17, 4 }
 0x13b   : > { %4734 = vsinq.f32 %v1004_v45  ;;  %v4102_v63 = vmin.u32 %v879_v58, %v5579_v33  ;;  %vm1014_vm4 = vcmp.eq.s32.totalorder %v5571_v42, 2  ;;  %vm2425_vm5 = vcmp.eq.s32.totalorder %v5573_v52, 2 }
 0x13c   : > { %v1138_v29 = vshrl.u32 %v4903_v49, %v1137_v62  ;;  %vm1155_vm6 = vcmp.lt.s32.totalorder %v1135_v17, 2  ;;  %v1159_v41 = vsel %vm1157_vm15, %v1147_v3, 2102212464  ;;  %v1162_v16 = vsel %vm1154_vm0, %v1141_v0, %v1144_v18 }
 0x13d   : > { %v881_v6 = vclz %v4102_v63  ;;  %vm1011_vm7 = vcmp.eq.s32.totalorder %v5571_v42, 0  ;;  %vm2422_vm8 = vcmp.eq.s32.totalorder %v5573_v52, 0  ;;  %vm1156_vm9 = vcmp.lt.s32.totalorder %v1135_v17, 3 }
 0x13e   : > { %v1163_v27 = vsel %vm1157_vm15, %v1150_v61, 920167782  ;;  %v1166_v48 = vsel %vm1154_vm0, %v1144_v18, %v1147_v3  ;;  %vm1010_vm10 = vcmp.lt.s32.totalorder %v5571_v42, 2  ;;  %vm2421_vm11 = vcmp.lt.s32.totalorder %v5573_v52, 2 }
 0x13f   : > { %v4103_v11 = vadd.s32 4294967294, %v881_v6  ;;  %v1158_v40 = vsel %vm1154_vm0, %v1138_v29, %v1141_v0  ;;  %v1164_v10 = vsel %vm1156_vm9, %v1147_v3, %v1163_v27  ;;  %v1167_v31 = vsel %vm1157_vm15, %v1153_v24, 1326507024 }
 0x140   : > { %v1029_v32 = vadd.s32 1, %v4109_v50  ;;  %vm1008_vm12 = vweird.f32 %v5215_v36  ;;  %v1160_v46 = vsel %vm1156_vm9, %v1144_v18, %v1159_v41  ;;  %v1165_v59 = vsel %vm1155_vm6, %v1162_v16, %v1164_v10 }
 0x141   : > { %vm4104_vm13 = vcmp.lt.s32.totalorder %v4103_v11, 0  ;;  %v1168_v28 = vsel %vm1156_vm9, %v1150_v61, %v1167_v31  ;;  %v5625_v62 = vmul.u32.u64.low %v5598_v37, %v1165_v59  ;;  %v5626_v25 = vmul.u32.u64.high %v5598_v37, %v1165_v59, %v5625_v62 }
 0x142   : > { %v884_v35 = vsel %vm4104_vm13, 0, %v4103_v11  ;;  %v1169_v9 = vsel %vm1155_vm6, %v1166_v48, %v1168_v28  ;;  %v900_v4 = vsel %vm815_vm1, %v899_v39, %v5569_v30  ;;  %vm1030_vm14 = vcmp.gt.s32.totalorder %v1029_v32, 0 }
 0x143   : > { %v885_v15 = vsub.s32 32, %v884_v35  ;;  %v889_v34 = vsub.s32 4294967266, %v884_v35  ;;  %v1161_v54 = vsel %vm1155_vm6, %v1158_v40, %v1160_v46  ;;  %v1031_v2 = vsel %vm1030_vm14, %v1029_v32, 0 }
 0x144   : > { %v4733_v19 = vpop.eup %4732  ;;  %v5634_v38 = vmul.u32.u64.low %v5598_v37, %v1169_v9  ;;  %v5635_v47 = vmul.u32.u64.high %v5598_v37, %v1169_v9, %v5634_v38  ;;  %v886_v21 = vshll.u32 %v5579_v33, %v884_v35  ;;  %v902_v58 = vsel %vm5603_vm3, 0, %v900_v4 }
 0x145   : > { %v4735_v12 = vpop.eup %4734  ;;  %v1015_v14 = vxor.u32 2147483648, %v4733_v19  ;;  %v887_v13 = vshrl.u32 %v869_v56, %v885_v15  ;;  %v890_v8 = vadd.s32 127, %v889_v34  ;;  %v1180_v30 = vadd.s32 1, %v5626_v25 }
 0x146   : > { %v1012_v45 = vxor.u32 2147483648, %v4735_v12  ;;  %v1033_v20 = vand.u32 31, %v1031_v2  ;;  %v1177_v56 = vmul.u32 %v5598_v37, %v1161_v54  ;;  %vm1179_vm2 = vc.u32 %v5635_v47, %v5625_v62 }
 0x147   : > { %v1016_v17 = vsel %vm1014_vm4, %v1015_v14, %v4735_v12  ;;  %v2427_v23 = vsel %vm2425_vm5, %v1015_v14, %v4735_v12  ;;  %v888_v0 = vor.u32 %v887_v13, %v886_v21  ;;  %v891_v18 = vshll.u32 %v890_v8, 23 }
 0x148   : > { %v1013_v33 = vsel %vm1011_vm7, %v4733_v19, %v1012_v45  ;;  %v2424_v3 = vsel %vm2422_vm8, %v4733_v19, %v1012_v45  ;;  %v1181_v29 = vsel %vm1179_vm2, %v1180_v30, %v5626_v25  ;;  %v1034_v37 = vsub.s32 32, %v1033_v20 }
 0x149   : > { %v1017_v63 = vsel %vm1010_vm10, %v1013_v33, %v1016_v17  ;;  %v2428_v61 = vsel %vm2421_vm11, %v2424_v3, %v2427_v23  ;;  %v892_v24 = vor.u32 4788187, %v891_v18  ;;  %v895_v50 = vcvt.s32.f32 %v888_v0  ;;  %v365_v23 = vpop.permute.xlu1 %364 }
 0x14a   : > { %v1018_v6 = vsel %vm1008_vm12, nan, %v1017_v63  ;;  %v2429_v39 = vsel %vm1008_vm12, nan, %v2428_v61  ;;  %v1182_v27 = vadd.s32 %v1181_v29, %v1177_v56  ;;  %v1026_v42 = vand.u32 8388607, %v1019_v26 }
 0x14b   : > { %v4309_v41 = vpack.c.bf16 %v1018_v6, %v1018_v6  ;;  %v4322_v16 = vpack.c.bf16 %v2429_v39, %v2429_v39  ;;  %v893_v11 = vand.u32 2147483647, %v892_v24  ;;  %v2315_v48 = vadd.s32 3, %v902_v58 }
 0x14c   : > { %v1183_v40 = vadd.s32 536870912, %v1182_v27  ;;  %v1037_v10 = vshrl.u32 %v4904_v51, %v1034_v37  ;;  %v5664_v31 = vshrl.u32 %v1031_v2, 5  ;;  %v1040_v36 = vshrl.u32 %v4905_v53, %v1034_v37 }
 0x14d   : > { %1798 = vst [vmem:[#allocation2 + $0x28] sm:$0xf] %v4309_v41  ;;  %3216 = vst [vmem:[#allocation2 + $0x2c] sm:$0xf] %v4322_v16  ;;  %v896_v52 = vmul.f32 %v895_v50, %v893_v11  ;;  %v1043_v32 = vshrl.u32 %v4906_v55, %v1034_v37  ;;  %v1046_v46 = vshrl.u32 %v4907_v57, %v1034_v37  ;;  %vm1124_vm0 = vcmp.lt.s32.totalorder %v5483_v43, 0 }
 0x14e   : > { %v1184_v28 = vshrl.u32 %v1183_v40, 30  ;;  %v1036_v35 = vshll.u32 %v4903_v49, %v1033_v20  ;;  %v1042_v9 = vshll.u32 %v4905_v53, %v1033_v20  ;;  %v1039_v25 = vshll.u32 %v4904_v51, %v1033_v20 }
 0x14f   : > { %v897_v59 = vxor.u32 2147483648, %v896_v52  ;;  %v1045_v15 = vshll.u32 %v4906_v55, %v1033_v20  ;;  %v1048_v34 = vshll.u32 %v4907_v57, %v1033_v20  ;;  %v1049_v4 = vshrl.u32 %v4908_v1, %v1034_v37 }
 0x150   : > { %v1185_v54 = vshll.u32 %v1184_v28, 30  ;;  %v1038_v38 = vor.u32 %v1037_v10, %v1036_v35  ;;  %v1044_v2 = vor.u32 %v1043_v32, %v1042_v9  ;;  %v1041_v14 = vor.u32 %v1040_v36, %v1039_v25 }
 0x151   : > { %v898_v19 = vsel %vm815_vm1, %v897_v59, %v896_v52  ;;  %v1047_v21 = vor.u32 %v1046_v46, %v1045_v15  ;;  %v1050_v13 = vor.u32 %v1049_v4, %v1048_v34  ;;  %v5681_v8 = vand.u32 3, %v902_v58 }
 0x152   : > { %v901_v12 = vsel %vm5603_vm3, %v5358_v60, %v898_v19  ;;  %v5683_v45 = vsub.s32 %v1182_v27, %v1185_v54  ;;  %v1027_v30 = vor.u32 8388608, %v1026_v42  ;;  %v5685_v20 = vand.u32 3, %v2315_v48 }
 0x153   : > { %4736 = vcosq.f32 %v901_v12  ;;  %v1035_v17 = vshrl.u32 %v4903_v49, %v1034_v37  ;;  %vm1054_vm1 = vcmp.lt.s32.totalorder %v5664_v31, 4  ;;  %vm5691_vm3 = vcmp.le.f32.partialorder %v1122_v22, 0.7853982 }
 0x154   : > { %4738 = vsinq.f32 %v901_v12  ;;  %v1188_v58 = vsub.s32 0, %v5683_v45  ;;  %v1208_v0 = vsub.s32 4, %v1184_v28  ;;  %vm1051_vm15 = vcmp.lt.s32.totalorder %v5664_v31, 1 }
 0x155   : > { %v1056_v18 = vsel %vm1054_vm1, %v1044_v2, 2102212464  ;;  %v1059_v33 = vsel %vm1051_vm15, %v1038_v38, %v1041_v14  ;;  %v1060_v3 = vsel %vm1054_vm1, %v1047_v21, 920167782  ;;  %v1063_v56 = vsel %vm1051_vm15, %v1041_v14, %v1044_v2 }
 0x156   : > { %v1064_v63 = vsel %vm1054_vm1, %v1050_v13, 1326507024  ;;  %v4114_v61 = vmin.u32 %v1188_v58, %v5683_v45  ;;  %vm1053_vm4 = vcmp.lt.s32.totalorder %v5664_v31, 3  ;;  %v1067_v24 = vshll.u32 %v1027_v30, 8 }
 0x157   : > { %v5700_v22 = vmul.f32 %v5480_v44, %v365_v23  ;;  %vm1052_vm5 = vcmp.lt.s32.totalorder %v5664_v31, 2  ;;  %v1055_v50 = vsel %vm1051_vm15, %v1035_v17, %v1038_v38  ;;  %v1061_v6 = vsel %vm1053_vm4, %v1044_v2, %v1060_v3 }
 0x158   : > { %v1065_v39 = vsel %vm1053_vm4, %v1047_v21, %v1064_v63  ;;  %vm907_vm6 = vcmp.lt.s32.totalorder %v5681_v8, 2  ;;  %v1190_v29 = vclz %v4114_v61  ;;  %v1057_v37 = vsel %vm1053_vm4, %v1041_v14, %v1056_v18 }
 0x159   : > { %v1062_v41 = vsel %vm1052_vm5, %v1059_v33, %v1061_v6  ;;  %v1066_v16 = vsel %vm1052_vm5, %v1063_v56, %v1065_v39  ;;  %vm905_vm7 = vweird.f32 %v5358_v60  ;;  %vm908_vm8 = vcmp.eq.s32.totalorder %v5681_v8, 0 }
 0x15a   : > { %vm911_vm9 = vcmp.eq.s32.totalorder %v5681_v8, 2  ;;  %vm2317_vm10 = vcmp.lt.s32.totalorder %v5685_v20, 2  ;;  %v1209_v11 = vsel %vm1124_vm0, %v1208_v0, %v1184_v28  ;;  %v4115_v27 = vadd.s32 4294967294, %v1190_v29 }
 0x15b   : > { %v5714_v42 = vmul.u32.u64.low %v1067_v24, %v1066_v16  ;;  %v5715_v52 = vmul.u32.u64.high %v1067_v24, %v1066_v16, %v5714_v42  ;;  %v1331_v48 = vand.u32 2139095040, %v5700_v22  ;;  %vm2318_vm11 = vcmp.eq.s32.totalorder %v5685_v20, 0 }
 0x15c   : > { %v1058_v40 = vsel %vm1052_vm5, %v1055_v50, %v1057_v37  ;;  %v5721_v10 = vmul.u32.u64.low %v1067_v24, %v1062_v41  ;;  %v5722_v36 = vmul.u32.u64.high %v1067_v24, %v1062_v41, %v5721_v10  ;;  %vm2321_vm12 = vcmp.eq.s32.totalorder %v5685_v20, 2  ;;  %v360_v20 = vpop.permute.xlu0 %359 }
 0x15d   : > { %v4737_v32 = vpop.eup %4736  ;;  %v1178_v46 = vadd.s32 %v5625_v62, %v5635_v47  ;;  %vm4116_vm13 = vcmp.lt.s32.totalorder %v4115_v27, 0  ;;  %v1328_v59 = vand.u32 2147483647, %v5700_v22  ;;  %v1211_v31 = vsel %vm5691_vm3, 0, %v1209_v11 }
 0x15e   : > { %v4739_v28 = vpop.eup %4738  ;;  %v912_v35 = vxor.u32 2147483648, %v4737_v32  ;;  %v1193_v9 = vsel %vm4116_vm13, 0, %v4115_v27  ;;  %v1332_v25 = vshrl.u32 %v1331_v48, 23  ;;  %v1074_v19 = vmul.u32 %v1067_v24, %v1058_v40 }
 0x15f   : > { %v909_v15 = vxor.u32 2147483648, %v4739_v28  ;;  %v1194_v34 = vsub.s32 32, %v1193_v9  ;;  %v1198_v4 = vsub.s32 4294967266, %v1193_v9  ;;  %v1195_v47 = vshll.u32 %v5683_v45, %v1193_v9 }
 0x160   : > { %v913_v54 = vsel %vm911_vm9, %v912_v35, %v4739_v28  ;;  %v2323_v62 = vsel %vm2321_vm12, %v912_v35, %v4739_v28  ;;  %vm1076_vm14 = vc.u32 %v5715_v52, %v5721_v10  ;;  %v1077_v30 = vadd.s32 1, %v5722_v36 }
 0x161   : > { %v910_v38 = vsel %vm908_vm8, %v4737_v32, %v909_v15  ;;  %v2320_v2 = vsel %vm2318_vm11, %v4737_v32, %v909_v15  ;;  %v1196_v12 = vshrl.u32 %v1178_v46, %v1194_v34  ;;  %v1199_v14 = vadd.s32 127, %v1198_v4 }
 0x162   : > { %v914_v21 = vsel %vm907_vm6, %v910_v38, %v913_v54  ;;  %v2324_v13 = vsel %vm2317_vm10, %v2320_v2, %v2323_v62  ;;  %v4121_v45 = vadd.s32 4294967169, %v1332_v25  ;;  %v1078_v3 = vsel %vm1076_vm14, %v1077_v30, %v5722_v36 }
 0x163   : > { %v915_v17 = vsel %vm905_vm7, nan, %v914_v21  ;;  %v2325_v23 = vsel %vm905_vm7, nan, %v2324_v13  ;;  %v1197_v58 = vor.u32 %v1196_v12, %v1195_v47  ;;  %v1200_v0 = vshll.u32 %v1199_v14, 23 }
 0x164   : > { %v4308_v18 = vpack.c.bf16 %v915_v17, %v915_v17  ;;  %v4321_v33 = vpack.c.bf16 %v2325_v23, %v2325_v23  ;;  %v1338_v8 = vadd.s32 1, %v4121_v45  ;;  %v1079_v63 = vadd.s32 %v1078_v3, %v1074_v19 }
 0x165   : > { %v1201_v56 = vor.u32 4788187, %v1200_v0  ;;  %v2627_v61 = vadd.s32 3, %v1211_v31  ;;  %v1335_v24 = vand.u32 8388607, %v1328_v59  ;;  %v1204_v60 = vcvt.s32.f32 %v1197_v58 }
 0x166   : > { %1797 = vst [vmem:[#allocation2 + $0x20] sm:$0xf] %v4308_v18  ;;  %3215 = vst [vmem:[#allocation2 + $0x24] sm:$0xf] %v4321_v33  ;;  %vm1339_vm2 = vcmp.gt.s32.totalorder %v1338_v8, 0  ;;  %v1080_v6 = vadd.s32 536870912, %v1079_v63  ;;  %v5755_v37 = vmul.f32 %v5480_v44, %v360_v20  ;;  %v1075_v5 = vadd.s32 %v5721_v10, %v5715_v52 }
 0x167   : > { %v1202_v50 = vand.u32 2147483647, %v1201_v56  ;;  %v1340_v39 = vsel %vm1339_vm2, %v1338_v8, 0  ;;  %v5757_v11 = vand.u32 3, %v1211_v31  ;;  %vm1021_vm1 = vcmp.lt.s32.totalorder %v5524_v7, 0 }
 0x168   : > { %v1342_v29 = vand.u32 31, %v1340_v39  ;;  %v1081_v16 = vshrl.u32 %v1080_v6, 30  ;;  %v5760_v48 = vand.u32 3, %v2627_v61  ;;  %v1336_v36 = vor.u32 8388608, %v1335_v24 }
 0x169   : > { %v1205_v41 = vmul.f32 %v1204_v60, %v1202_v50  ;;  %v5762_v32 = vshrl.u32 %v1340_v39, 5  ;;  %v1228_v35 = vand.u32 2139095040, %v5755_v37  ;;  %vm1217_vm6 = vcmp.eq.s32.totalorder %v5757_v11, 0 }
 0x16a   : > { %v1343_v27 = vsub.s32 32, %v1342_v29  ;;  %v1082_v40 = vshll.u32 %v1081_v16, 30  ;;  %v1345_v4 = vshll.u32 %v4903_v49, %v1342_v29  ;;  %v1348_v19 = vshll.u32 %v4904_v51, %v1342_v29 }
 0x16b   : > { %v1206_v42 = vxor.u32 2147483648, %v1205_v41  ;;  %v1351_v54 = vshll.u32 %v4905_v53, %v1342_v29  ;;  %v1105_v47 = vsub.s32 4, %v1081_v16  ;;  %v1354_v38 = vshll.u32 %v4906_v55, %v1342_v29 }
 0x16c   : > { %v1346_v46 = vshrl.u32 %v4904_v51, %v1343_v27  ;;  %v1349_v28 = vshrl.u32 %v4905_v53, %v1343_v27  ;;  %v5769_v31 = vsub.s32 %v1079_v63, %v1082_v40  ;;  %v1352_v25 = vshrl.u32 %v4906_v55, %v1343_v27 }
 0x16d   : > { %v1207_v9 = vsel %vm1124_vm0, %v1206_v42, %v1205_v41  ;;  %v1355_v15 = vshrl.u32 %v4907_v57, %v1343_v27  ;;  %vm5783_vm0 = vcmp.le.f32.partialorder %v1019_v26, 0.7853982  ;;  %v5789_v14 = vshll.u32 %v1336_v36, 8 }
 0x16e   : > { %v1210_v34 = vsel %vm5691_vm3, %v5483_v43, %v1207_v9  ;;  %v1085_v62 = vsub.s32 0, %v5769_v31  ;;  %v1347_v12 = vor.u32 %v1346_v46, %v1345_v4  ;;  %v1350_v13 = vor.u32 %v1349_v28, %v1348_v19 }
 0x16f   : > { %4740 = vcosq.f32 %v1210_v34  ;;  %v1353_v30 = vor.u32 %v1352_v25, %v1351_v54  ;;  %v1356_v45 = vor.u32 %v1355_v15, %v1354_v38  ;;  %v1344_v17 = vshrl.u32 %v4903_v49, %v1343_v27 }
 0x170   : > { %4742 = vsinq.f32 %v1210_v34  ;;  %v4110_v21 = vmin.u32 %v1085_v62, %v5769_v31  ;;  %v1357_v23 = vshll.u32 %v4907_v57, %v1342_v29  ;;  %v1358_v26 = vshrl.u32 %v4908_v1, %v1343_v27  ;;  %v4665_v62 = vld [vmem:[%s6467_s2 + $0x40] sm:$0xff]  }
 0x171   : > { %v1229_v58 = vshrl.u32 %v1228_v35, 23  ;;  %vm1220_vm3 = vcmp.eq.s32.totalorder %v5757_v11, 2  ;;  %vm2633_vm15 = vcmp.eq.s32.totalorder %v5760_v48, 2  ;;  %v1106_v10 = vsel %vm1021_vm1, %v1105_v47, %v1081_v16  ;;  %4427 = vmatprep.subr.bf16.mxu0 %v4665_v62 }
 0x172   : > { %v1087_v52 = vclz %v4110_v21  ;;  %vm1360_vm4 = vcmp.lt.s32.totalorder %v5762_v32, 1  ;;  %vm1361_vm5 = vcmp.lt.s32.totalorder %v5762_v32, 2  ;;  %vm2630_vm7 = vcmp.eq.s32.totalorder %v5760_v48, 0  ;;  %v4666_v21 = vld [vmem:[%s6467_s2] sm:$0xff]  }
 0x173   : > { %v1359_v0 = vor.u32 %v1358_v26, %v1357_v23  ;;  %vm1362_vm8 = vcmp.lt.s32.totalorder %v5762_v32, 3  ;;  %vm1363_vm9 = vcmp.lt.s32.totalorder %v5762_v32, 4  ;;  %v1364_v18 = vsel %vm1360_vm4, %v1344_v17, %v1347_v12  ;;  %4428 = vmatpush3.bf16.msra.mxu0 %v4666_v21 }
 0x174   : > { %vm1216_vm10 = vcmp.lt.s32.totalorder %v5757_v11, 2  ;;  %vm2629_vm11 = vcmp.lt.s32.totalorder %v5760_v48, 2  ;;  %v4111_v33 = vadd.s32 4294967294, %v1087_v52  ;;  %v1365_v3 = vsel %vm1363_vm9, %v1353_v30, 2102212464  ;;  %v4667_v11 = vld [vmem:[%s6467_s2 + $0x48] sm:$0xff]  }
 0x175   : > { %v1368_v8 = vsel %vm1360_vm4, %v1347_v12, %v1350_v13  ;;  %v1369_v56 = vsel %vm1363_vm9, %v1356_v45, 920167782  ;;  %vm1214_vm12 = vweird.f32 %v5483_v43  ;;  %v1366_v63 = vsel %vm1362_vm8, %v1350_v13, %v1365_v3  ;;  %4429 = vmatprep.subr.bf16.mxu0 %v4667_v11 }
 0x176   : > { %v1370_v20 = vsel %vm1362_vm8, %v1353_v30, %v1369_v56  ;;  %v1372_v61 = vsel %vm1360_vm4, %v1350_v13, %v1353_v30  ;;  %v1373_v24 = vsel %vm1363_vm9, %v1359_v0, 1326507024  ;;  %vm4112_vm13 = vcmp.lt.s32.totalorder %v4111_v33, 0 }
 0x177   : > { %v1371_v50 = vsel %vm1361_vm5, %v1368_v8, %v1370_v20  ;;  %v1374_v60 = vsel %vm1362_vm8, %v1356_v45, %v1373_v24  ;;  %v1225_v6 = vand.u32 2147483647, %v5755_v37  ;;  %v1090_v39 = vsel %vm4112_vm13, 0, %v4111_v33  ;;  %v4668_v33 = vld [vmem:[%s6467_s2 + $0x8] sm:$0xff]   ;;  %v4669_v24 = vld [vmem:[%s6467_s2 + $0x50] sm:$0xff]  }
 0x178   : > { %v1375_v29 = vsel %vm1361_vm5, %v1372_v61, %v1374_v60  ;;  %v5826_v41 = vmul.u32.u64.low %v5789_v14, %v1371_v50  ;;  %v5827_v16 = vmul.u32.u64.high %v5789_v14, %v1371_v50, %v5826_v41  ;;  %v1091_v42 = vsub.s32 32, %v1090_v39  ;;  %4430 = vmatpush3.bf16.msra.mxu0 %v4668_v33 }
 0x179   : > { %v4741_v27 = vpop.eup %4740  ;;  %v1095_v40 = vsub.s32 4294967266, %v1090_v39  ;;  %v1108_v36 = vsel %vm5783_vm0, 0, %v1106_v10  ;;  %v1367_v46 = vsel %vm1361_vm5, %v1364_v18, %v1366_v63  ;;  %v4117_v15 = vadd.s32 4294967169, %v1229_v58  ;;  %v375_v63 = vpop.permute.xlu1 %374  ;;  %4431 = vmatprep.subr.bf16.mxu0 %v4669_v24  ;;  %v4676_v24 = vld [vmem:[%s6467_s2 + $0x28] sm:$0xff]  }
 0x17a   : > { %v4743_v28 = vpop.eup %4742  ;;  %v1221_v35 = vxor.u32 2147483648, %v4741_v27  ;;  %v5835_v9 = vmul.u32.u64.low %v5789_v14, %v1375_v29  ;;  %v5836_v25 = vmul.u32.u64.high %v5789_v14, %v1375_v29, %v5835_v9  ;;  %v1092_v4 = vshll.u32 %v5769_v31, %v1090_v39  ;;  %v4670_v29 = vld [vmem:[%s6467_s2 + $0x10] sm:$0xff]  }
 0x17b   : > { %v1218_v34 = vxor.u32 2147483648, %v4743_v28  ;;  %v1093_v19 = vshrl.u32 %v1075_v5, %v1091_v42  ;;  %v1096_v54 = vadd.s32 127, %v1095_v40  ;;  %v1386_v38 = vadd.s32 1, %v5827_v16 }
 0x17c   : > { %v1222_v32 = vsel %vm1220_vm3, %v1221_v35, %v4743_v28  ;;  %v2635_v47 = vsel %vm2633_vm15, %v1221_v35, %v4743_v28  ;;  %v1235_v12 = vadd.s32 1, %v4117_v15  ;;  %v2523_v23 = vadd.s32 3, %v1108_v36  ;;  %4432 = vmatpush3.bf16.msra.mxu0 %v4670_v29 }
 0x17d   : > { %v1219_v31 = vsel %vm1217_vm6, %v4741_v27, %v1218_v34  ;;  %v2632_v5 = vsel %vm2630_vm7, %v4741_v27, %v1218_v34  ;;  %v1094_v13 = vor.u32 %v1093_v19, %v1092_v4  ;;  %v1097_v30 = vshll.u32 %v1096_v54, 23  ;;  %v4671_v4 = vld [vmem:[%s6467_s2 + $0x58] sm:$0xff]  }
 0x17e   : > { %v1223_v45 = vsel %vm1216_vm10, %v1219_v31, %v1222_v32  ;;  %v2636_v17 = vsel %vm2629_vm11, %v2632_v5, %v2635_v47  ;;  %vm1385_vm14 = vc.u32 %v5836_v25, %v5826_v41  ;;  %v1383_v10 = vmul.u32 %v5789_v14, %v1367_v46  ;;  %v4672_v47 = vld [vmem:[%s6467_s2 + $0x18] sm:$0xff]   ;;  %4433 = vmatprep.subr.bf16.mxu0 %v4671_v4 }
 0x17f   : > { %v1224_v26 = vsel %vm1214_vm12, nan, %v1223_v45  ;;  %v2637_v58 = vsel %vm1214_vm12, nan, %v2636_v17  ;;  %v1098_v52 = vor.u32 4788187, %v1097_v30  ;;  %v1387_v18 = vsel %vm1385_vm14, %v1386_v38, %v5827_v16 }
 0x180   : > { %v4311_v48 = vpack.c.bf16 %v1224_v26, %v1224_v26  ;;  %v4324_v0 = vpack.c.bf16 %v2637_v58, %v2637_v58  ;;  %vm1236_vm2 = vcmp.gt.s32.totalorder %v1235_v12, 0  ;;  %v1101_v8 = vcvt.s32.f32 %v1094_v13  ;;  %4434 = vmatpush3.bf16.msra.mxu0 %v4672_v47  ;;  %v4673_v26 = vld [vmem:[%s6467_s2 + $0x60] sm:$0xff]  }
 0x181   : > { %v1099_v3 = vand.u32 2147483647, %v1098_v52  ;;  %v1388_v43 = vadd.s32 %v1387_v18, %v1383_v10  ;;  %v1237_v56 = vsel %vm1236_vm2, %v1235_v12, 0  ;;  %v5877_v50 = vand.u32 8388607, %v1225_v6  ;;  %v4674_v10 = vld [vmem:[%s6467_s2 + $0x20] sm:$0xff]   ;;  %4435 = vmatprep.subr.bf16.mxu0 %v4673_v26 }
 0x182   : > { %1800 = vst [vmem:[#allocation2 + $0x38] sm:$0xf] %v4311_v48  ;;  %3218 = vst [vmem:[#allocation2 + $0x3c] sm:$0xf] %v4324_v0  ;;  %v1239_v14 = vand.u32 31, %v1237_v56  ;;  %v5880_v39 = vmul.f32 %v5480_v44, %v375_v63  ;;  %v5885_v27 = vand.u32 3, %v1108_v36  ;;  %vm1111_vm11 = vweird.f32 %v5524_v7 }
 0x183   : > { %v1102_v20 = vmul.f32 %v1101_v8, %v1099_v3  ;;  %v1389_v61 = vadd.s32 536870912, %v1388_v43  ;;  %v5887_v42 = vand.u32 3, %v2523_v23  ;;  %v5903_v54 = vshrl.u32 %v1237_v56, 5  ;;  %v4675_v63 = vld [vmem:[%s6467_s2 + $0x68] sm:$0xff]   ;;  %v4679_v26 = vld [vmem:[%s6467_s2 + $0x78] sm:$0xff]  }
 0x184   : > { %v1240_v60 = vsub.s32 32, %v1239_v14  ;;  %v1242_v46 = vshll.u32 %v4903_v49, %v1239_v14  ;;  %v1245_v36 = vshll.u32 %v4904_v51, %v1239_v14  ;;  %v1248_v62 = vshll.u32 %v4905_v53, %v1239_v14  ;;  %4436 = vmatpush3.bf16.msra.mxu0 %v4674_v10 }
 0x185   : > { %v1103_v16 = vxor.u32 2147483648, %v1102_v20  ;;  %v1390_v40 = vshrl.u32 %v1389_v61, 30  ;;  %v1251_v32 = vshll.u32 %v4906_v55, %v1239_v14  ;;  %v1233_v17 = vor.u32 8388608, %v5877_v50  ;;  %4437 = vmatprep.subr.bf16.mxu0 %v4675_v63 }
 0x186   : > { %v1243_v28 = vshrl.u32 %v4904_v51, %v1240_v60  ;;  %v1246_v35 = vshrl.u32 %v4905_v53, %v1240_v60  ;;  %v1249_v44 = vshrl.u32 %v4906_v55, %v1240_v60  ;;  %v1252_v34 = vshrl.u32 %v4907_v57, %v1240_v60 }
 0x187   : > { %v1104_v9 = vsel %vm1021_vm1, %v1103_v16, %v1102_v20  ;;  %v1391_v15 = vshll.u32 %v1390_v40, 30  ;;  %vm5914_vm1 = vcmp.le.f32.partialorder %v1328_v59, 0.7853982  ;;  %v1255_v13 = vshrl.u32 %v4908_v1, %v1240_v60 }
 0x188   : > { %v1107_v19 = vsel %vm5783_vm0, %v5524_v7, %v1104_v9  ;;  %v1244_v12 = vor.u32 %v1243_v28, %v1242_v46  ;;  %v1247_v21 = vor.u32 %v1246_v35, %v1245_v36  ;;  %v1250_v31 = vor.u32 %v1249_v44, %v1248_v62  ;;  %4438 = vmatpush3.bf16.msra.mxu0 %v4676_v24  ;;  %v4684_v24 = vld [vmem:[#allocation2 + $0x14] ss:$8 sps:$4 sm:$0xff]  }
 0x189   : > { %4744 = vcosq.f32 %v1107_v19  ;;  %v5910_v38 = vsub.s32 %v1388_v43, %v1391_v15  ;;  %v1253_v5 = vor.u32 %v1252_v34, %v1251_v32  ;;  %v1414_v45 = vsub.s32 4, %v1390_v40  ;;  %v4677_v15 = vld [vmem:[%s6467_s2 + $0x70] sm:$0xff]  }
 0x18a   : > { %4746 = vsinq.f32 %v1107_v19  ;;  %v1254_v23 = vshll.u32 %v4907_v57, %v1239_v14  ;;  %vm1330_vm0 = vcmp.lt.s32.totalorder %v5700_v22, 0  ;;  %v1241_v59 = vshrl.u32 %v4903_v49, %v1240_v60  ;;  %v4678_v32 = vld [vmem:[%s6467_s2 + $0x30] sm:$0xff]   ;;  %4439 = vmatprep.subr.bf16.mxu0 %v4677_v15 }
 0x18b   : > { %v1394_v30 = vsub.s32 0, %v5910_v38  ;;  %v1534_v58 = vand.u32 2147483647, %v5880_v39  ;;  %v1537_v52 = vand.u32 2139095040, %v5880_v39  ;;  %vm1117_vm3 = vcmp.eq.s32.totalorder %v5885_v27, 2 }
 0x18c   : > { %vm2529_vm15 = vcmp.eq.s32.totalorder %v5887_v42, 2  ;;  %v1256_v48 = vor.u32 %v1255_v13, %v1254_v23  ;;  %vm1257_vm4 = vcmp.lt.s32.totalorder %v5903_v54, 1  ;;  %vm1260_vm5 = vcmp.lt.s32.totalorder %v5903_v54, 4  ;;  %4440 = vmatpush3.bf16.msra.mxu0 %v4678_v32 }
 0x18d   : > { %v4122_v11 = vmin.u32 %v1394_v30, %v5910_v38  ;;  %vm1114_vm6 = vcmp.eq.s32.totalorder %v5885_v27, 0  ;;  %vm2526_vm7 = vcmp.eq.s32.totalorder %v5887_v42, 0  ;;  %vm1259_vm8 = vcmp.lt.s32.totalorder %v5903_v54, 3  ;;  %4441 = vmatprep.subr.bf16.mxu0 %v4679_v26 }
 0x18e   : > { %v1262_v0 = vsel %vm1260_vm5, %v1250_v31, 2102212464  ;;  %v1265_v18 = vsel %vm1257_vm4, %v1244_v12, %v1247_v21  ;;  %v1266_v33 = vsel %vm1260_vm5, %v1253_v5, 920167782  ;;  %vm1113_vm9 = vcmp.lt.s32.totalorder %v5885_v27, 2 }
 0x18f   : > { %vm2525_vm10 = vcmp.lt.s32.totalorder %v5887_v42, 2  ;;  %v1396_v3 = vclz %v4122_v11  ;;  %v1415_v8 = vsel %vm1330_vm0, %v1414_v45, %v1390_v40  ;;  %v1267_v43 = vsel %vm1259_vm8, %v1250_v31, %v1266_v33  ;;  %v4680_v11 = vld [vmem:[%s6467_s2 + $0x38] sm:$0xff]  }
 0x190   : > { %v5952_v56 = vshll.u32 %v1233_v17, 8  ;;  %vm1258_vm12 = vcmp.lt.s32.totalorder %v5903_v54, 2  ;;  %v1261_v14 = vsel %vm1257_vm4, %v1241_v59, %v1244_v12  ;;  %v1263_v20 = vsel %vm1259_vm8, %v1247_v21, %v1262_v0  ;;  %4442 = vmatpush3.bf16.msra.mxu0 %v4680_v11 }
 0x191   : > { %v1269_v61 = vsel %vm1257_vm4, %v1247_v21, %v1250_v31  ;;  %v1384_v50 = vadd.s32 %v5826_v41, %v5836_v25  ;;  %v4123_v60 = vadd.s32 4294967294, %v1396_v3  ;;  %v1268_v29 = vsel %vm1258_vm12, %v1265_v18, %v1267_v43  ;;  %v4681_v43 = vld [vmem:[#allocation2] ss:$8 sps:$4 sm:$0xff]  }
 0x192   : > { %v1270_v16 = vsel %vm1260_vm5, %v1256_v48, 1326507024  ;;  %v5977_v46 = vmul.u32.u64.low %v5952_v56, %v1268_v29  ;;  %v5978_v28 = vmul.u32.u64.high %v5952_v56, %v1268_v29, %v5977_v46  ;;  %v1538_v35 = vshrl.u32 %v1537_v52, 23 }
 0x193   : > { %v1271_v40 = vsel %vm1259_vm8, %v1253_v5, %v1270_v16  ;;  %v4745_v44 = vpop.eup %4744  ;;  %vm4124_vm13 = vcmp.lt.s32.totalorder %v4123_v60, 0  ;;  %v5983_v41 = vsel %vm5914_vm1, 0, %v1415_v8  ;;  %v1264_v25 = vsel %vm1258_vm12, %v1261_v14, %v1263_v20  ;;  %v370_v20 = vpop.permute.xlu0 %369 }
 0x194   : > { %v1272_v9 = vsel %vm1258_vm12, %v1269_v61, %v1271_v40  ;;  %v4747_v36 = vpop.eup %4746  ;;  %v1118_v34 = vxor.u32 2147483648, %v4745_v44  ;;  %v1399_v4 = vsel %vm4124_vm13, 0, %v4123_v60  ;;  %v1283_v13 = vadd.s32 1, %v5978_v28 }
 0x195   : > { %v5993_v19 = vmul.u32.u64.low %v5952_v56, %v1272_v9  ;;  %v5994_v62 = vmul.u32.u64.high %v5952_v56, %v1272_v9, %v5993_v19  ;;  %v1115_v47 = vxor.u32 2147483648, %v4747_v36  ;;  %v1400_v12 = vsub.s32 32, %v1399_v4 }
 0x196   : > { %v1401_v54 = vshll.u32 %v5910_v38, %v1399_v4  ;;  %v1404_v21 = vsub.s32 4294967266, %v1399_v4  ;;  %v1119_v31 = vsel %vm1117_vm3, %v1118_v34, %v4747_v36  ;;  %v2531_v5 = vsel %vm2529_vm15, %v1118_v34, %v4747_v36 }
 0x197   : > { %v4129_v30 = vadd.s32 4294967169, %v1538_v35  ;;  %v1116_v45 = vsel %vm1114_vm6, %v4745_v44, %v1115_v47  ;;  %v2528_v17 = vsel %vm2526_vm7, %v4745_v44, %v1115_v47  ;;  %v1402_v23 = vshrl.u32 %v1384_v50, %v1400_v12 }
 0x198   : > { %v1405_v38 = vadd.s32 127, %v1404_v21  ;;  %v1120_v59 = vsel %vm1113_vm9, %v1116_v45, %v1119_v31  ;;  %v2532_v52 = vsel %vm2525_vm10, %v2528_v17, %v2531_v5  ;;  %v1280_v10 = vmul.u32 %v5952_v56, %v1264_v25  ;;  %v4683_v56 = vld [vmem:[#allocation2 + $0x4] ss:$8 sps:$4 sm:$0xff]  }
 0x199   : > { %vm1282_vm14 = vc.u32 %v5994_v62, %v5977_v46  ;;  %v1121_v48 = vsel %vm1111_vm11, nan, %v1120_v59  ;;  %v2533_v0 = vsel %vm1111_vm11, nan, %v2532_v52  ;;  %v1403_v27 = vor.u32 %v1402_v23, %v1401_v54  ;;  %3471 = vmatprep.mubr.bf16.mxu0 %v4683_v56 }
 0x19a   : > { %v1406_v18 = vshll.u32 %v1405_v38, 23  ;;  %v4310_v42 = vpack.c.bf16 %v1121_v48, %v1121_v48  ;;  %v4323_v33 = vpack.c.bf16 %v2533_v0, %v2533_v0  ;;  %v1284_v3 = vsel %vm1282_vm14, %v1283_v13, %v5978_v28  ;;  %3472 = vmatmul.mubr.bf16.vlgmr.msra.gmra.mrb[0].mxu0 %v4681_v43  ;;  %v6033_v28 = vld [vmem:[%s6466_s1] ss:$0 sm:$0xff]  ;;  %v4686_v13 = vld [vmem:[#allocation2 + $0x10] ss:$8 sps:$4 sm:$0xff]  }
 0x19b   : > { %v1544_v8 = vadd.s32 1, %v4129_v30  ;;  %v1285_v14 = vadd.s32 %v1284_v3, %v1280_v10  ;;  %v2835_v61 = vadd.s32 3, %v5983_v41  ;;  %v1541_v7 = vand.u32 8388607, %v1534_v58  ;;  %3479 = vmatprep.mubr.bf16.mxu0 %v4684_v24  ;;  %v4687_v38 = vld [vmem:[#allocation2 + $0x24] ss:$8 sps:$4 sm:$0xff]  }
 0x19c   : > { %v1407_v63 = vor.u32 4788187, %v1406_v18  ;;  %1799 = vst [vmem:[#allocation2 + $0x30] sm:$0xf] %v4310_v42  ;;  %3217 = vst [vmem:[#allocation2 + $0x34] sm:$0xf] %v4323_v33  ;;  %v1410_v60 = vcvt.s32.f32 %v1403_v27  ;;  %v6036_v35 = vmul.f32 %v6033_v28, %v370_v20  ;;  %v1281_v10 = vadd.s32 %v5977_v46, %v5994_v62 }
 0x19d   : > { %vm1545_vm2 = vcmp.gt.s32.totalorder %v1544_v8, 0  ;;  %v1286_v29 = vadd.s32 536870912, %v1285_v14  ;;  %v6039_v9 = vand.u32 3, %v5983_v41  ;;  %vm1227_vm3 = vcmp.lt.s32.totalorder %v5755_v37, 0 }
 0x19e   : > { %v1408_v50 = vand.u32 2147483647, %v1407_v63  ;;  %v1546_v16 = vsel %vm1545_vm2, %v1544_v8, 0  ;;  %v6042_v34 = vand.u32 3, %v2835_v61  ;;  %v1542_v19 = vor.u32 8388608, %v1541_v7 }
 0x19f   : > { %v1548_v40 = vand.u32 31, %v1546_v16  ;;  %v1287_v25 = vshrl.u32 %v1286_v29, 30  ;;  %v6044_v32 = vshrl.u32 %v1546_v16, 5  ;;  %v1434_v54 = vand.u32 2139095040, %v6036_v35  ;;  %v4689_v63 = vld [vmem:[#allocation2 + $0x20] ss:$8 sps:$4 sm:$0xff]  }
 0x1a0   : > { %v1411_v44 = vmul.f32 %v1410_v60, %v1408_v50  ;;  %v6071_v48 = vshll.u32 %v1542_v19, 8  ;;  %vm2841_vm15 = vcmp.eq.s32.totalorder %v6042_v34, 2  ;;  %vm1423_vm6 = vcmp.eq.s32.totalorder %v6039_v9, 0 }
 0x1a1   : > { %v1549_v15 = vsub.s32 32, %v1548_v40  ;;  %v1288_v4 = vshll.u32 %v1287_v25, 30  ;;  %v1551_v45 = vshll.u32 %v4903_v49, %v1548_v40  ;;  %v1554_v17 = vshll.u32 %v4904_v51, %v1548_v40 }
 0x1a2   : > { %v1412_v36 = vxor.u32 2147483648, %v1411_v44  ;;  %v1557_v23 = vshll.u32 %v4905_v53, %v1548_v40  ;;  %v1311_v59 = vsub.s32 4, %v1287_v25  ;;  %v1560_v52 = vshll.u32 %v4906_v55, %v1548_v40  ;;  %3480 = vmatmul.mubr.bf16.gmra.mrb[4].mxu0 %v4686_v13 }
 0x1a3   : > { %v1552_v47 = vshrl.u32 %v4904_v51, %v1549_v15  ;;  %v1555_v12 = vshrl.u32 %v4905_v53, %v1549_v15  ;;  %v6051_v21 = vsub.s32 %v1285_v14, %v1288_v4  ;;  %v1558_v31 = vshrl.u32 %v4906_v55, %v1549_v15  ;;  %3487 = vmatprep.mubr.bf16.mxu0 %v4687_v38  ;;  %v4690_v16 = vld [vmem:[#allocation2 + $0x34] ss:$8 sps:$4 sm:$0xff]  }
 0x1a4   : > { %v1413_v41 = vsel %vm1330_vm0, %v1412_v36, %v1411_v44  ;;  %v1561_v5 = vshrl.u32 %v4907_v57, %v1549_v15  ;;  %vm6065_vm0 = vcmp.le.f32.partialorder %v1225_v6, 0.7853982  ;;  %v1550_v33 = vshrl.u32 %v4903_v49, %v1549_v15 }
 0x1a5   : > { %v1416_v30 = vsel %vm5914_vm1, %v5700_v22, %v1413_v41  ;;  %v1291_v26 = vsub.s32 0, %v6051_v21  ;;  %v1553_v11 = vor.u32 %v1552_v47, %v1551_v45  ;;  %v1556_v27 = vor.u32 %v1555_v12, %v1554_v17 }
 0x1a6   : > { %4748 = vcosq.f32 %v1416_v30  ;;  %v1559_v18 = vor.u32 %v1558_v31, %v1557_v23  ;;  %v1562_v42 = vor.u32 %v1561_v5, %v1560_v52  ;;  %v1563_v3 = vshll.u32 %v4907_v57, %v1548_v40 }
 0x1a7   : > { %4750 = vsinq.f32 %v1416_v30  ;;  %v4118_v0 = vmin.u32 %v1291_v26, %v6051_v21  ;;  %v1564_v6 = vshrl.u32 %v4908_v1, %v1549_v15  ;;  %v1435_v8 = vshrl.u32 %v1434_v54, 23 }
 0x1a8   : > { %vm1426_vm1 = vcmp.eq.s32.totalorder %v6039_v9, 2  ;;  %v1312_v62 = vsel %vm1227_vm3, %v1311_v59, %v1287_v25  ;;  %vm1566_vm4 = vcmp.lt.s32.totalorder %v6044_v32, 1  ;;  %vm1567_vm5 = vcmp.lt.s32.totalorder %v6044_v32, 2 }
 0x1a9   : > { %v1293_v46 = vclz %v4118_v0  ;;  %vm2838_vm7 = vcmp.eq.s32.totalorder %v6042_v34, 0  ;;  %v1565_v43 = vor.u32 %v1564_v6, %v1563_v3  ;;  %vm1568_vm8 = vcmp.lt.s32.totalorder %v6044_v32, 3 }
 0x1aa   : > { %vm1569_vm9 = vcmp.lt.s32.totalorder %v6044_v32, 4  ;;  %v1570_v56 = vsel %vm1566_vm4, %v1550_v33, %v1553_v11  ;;  %vm1422_vm10 = vcmp.lt.s32.totalorder %v6039_v9, 2  ;;  %vm2837_vm11 = vcmp.lt.s32.totalorder %v6042_v34, 2  ;;  %3488 = vmatmul.mubr.bf16.gmra.mrb[8].mxu0 %v4689_v63 }
 0x1ab   : > { %v4119_v14 = vadd.s32 4294967294, %v1293_v46  ;;  %v1571_v20 = vsel %vm1569_vm9, %v1559_v18, 2102212464  ;;  %v1574_v61 = vsel %vm1566_vm4, %v1553_v11, %v1556_v27  ;;  %v1575_v7 = vsel %vm1569_vm9, %v1562_v42, 920167782  ;;  %3495 = vmatprep.mubr.bf16.mxu0 %v4690_v16 }
 0x1ac   : > { %vm1420_vm12 = vweird.f32 %v5700_v22  ;;  %v1572_v24 = vsel %vm1568_vm8, %v1556_v27, %v1571_v20  ;;  %v1576_v50 = vsel %vm1568_vm8, %v1559_v18, %v1575_v7  ;;  %v1578_v60 = vsel %vm1566_vm4, %v1556_v27, %v1559_v18 }
 0x1ad   : > { %v1579_v29 = vsel %vm1569_vm9, %v1565_v43, 1326507024  ;;  %vm4120_vm13 = vcmp.lt.s32.totalorder %v4119_v14, 0  ;;  %v1577_v40 = vsel %vm1567_vm5, %v1574_v61, %v1576_v50  ;;  %v1431_v25 = vand.u32 2147483647, %v6036_v35 }
 0x1ae   : > { %v1580_v44 = vsel %vm1568_vm8, %v1562_v42, %v1579_v29  ;;  %v1296_v15 = vsel %vm4120_vm13, 0, %v4119_v14  ;;  %v6108_v4 = vmul.u32.u64.low %v6071_v48, %v1577_v40  ;;  %v6109_v19 = vmul.u32.u64.high %v6071_v48, %v1577_v40, %v6108_v4 }
 0x1af   : > { %v1581_v36 = vsel %vm1567_vm5, %v1578_v60, %v1580_v44  ;;  %v1297_v12 = vsub.s32 32, %v1296_v15  ;;  %v1301_v54 = vsub.s32 4294967266, %v1296_v15  ;;  %v1314_v41 = vsel %vm6065_vm0, 0, %v1312_v62 }
 0x1b0   : > { %v4749_v47 = vpop.eup %4748  ;;  %v1573_v31 = vsel %vm1567_vm5, %v1570_v56, %v1572_v24  ;;  %v6117_v30 = vmul.u32.u64.low %v6071_v48, %v1581_v36  ;;  %v6118_v45 = vmul.u32.u64.high %v6071_v48, %v1581_v36, %v6117_v30  ;;  %v4125_v17 = vadd.s32 4294967169, %v1435_v8 }
 0x1b1   : > { %v4751_v5 = vpop.eup %4750  ;;  %v1427_v13 = vxor.u32 2147483648, %v4749_v47  ;;  %v1298_v38 = vshll.u32 %v6051_v21, %v1296_v15  ;;  %v1299_v26 = vshrl.u32 %v1281_v10, %v1297_v12  ;;  %v1302_v59 = vadd.s32 127, %v1301_v54  ;;  %v4692_v21 = vld [vmem:[#allocation2 + $0x30] ss:$8 sps:$4 sm:$0xff]  }
 0x1b2   : > { %v1424_v23 = vxor.u32 2147483648, %v4751_v5  ;;  %v1592_v32 = vadd.s32 1, %v6109_v19  ;;  %v1441_v0 = vadd.s32 1, %v4125_v17  ;;  %v2731_v6 = vadd.s32 3, %v1314_v41  ;;  %3496 = vmatmul.mubr.bf16.gmra.mrb[12].mxu0 %v4692_v21  ;;  %v380_v17 = vpop.permute.xlu0 %379 }
 0x1b3   : > { %v1428_v52 = vsel %vm1426_vm1, %v1427_v13, %v4751_v5  ;;  %v2843_v11 = vsel %vm2841_vm15, %v1427_v13, %v4751_v5  ;;  %v1300_v42 = vor.u32 %v1299_v26, %v1298_v38  ;;  %v1303_v33 = vshll.u32 %v1302_v59, 23 }
 0x1b4   : > { %v1425_v27 = vsel %vm1423_vm6, %v4749_v47, %v1424_v23  ;;  %v2840_v18 = vsel %vm2838_vm7, %v4749_v47, %v1424_v23  ;;  %vm1591_vm14 = vc.u32 %v6118_v45, %v6108_v4  ;;  %v1589_v43 = vmul.u32 %v6071_v48, %v1573_v31 }
 0x1b5   : > { %v1429_v10 = vsel %vm1422_vm10, %v1425_v27, %v1428_v52  ;;  %v2844_v3 = vsel %vm2837_vm11, %v2840_v18, %v2843_v11  ;;  %v1304_v62 = vor.u32 4788187, %v1303_v33  ;;  %v1593_v63 = vsel %vm1591_vm14, %v1592_v32, %v6109_v19 }
 0x1b6   : > { %v1430_v8 = vsel %vm1420_vm12, nan, %v1429_v10  ;;  %v2845_v46 = vsel %vm1420_vm12, nan, %v2844_v3  ;;  %vm1442_vm2 = vcmp.gt.s32.totalorder %v1441_v0, 0  ;;  %v1307_v14 = vcvt.s32.f32 %v1300_v42 }
 0x1b7   : > { %v4313_v56 = vpack.c.bf16 %v1430_v8, %v1430_v8  ;;  %v4326_v9 = vpack.c.bf16 %v2845_v46, %v2845_v46  ;;  %v1305_v34 = vand.u32 2147483647, %v1304_v62  ;;  %v1594_v20 = vadd.s32 %v1593_v63, %v1589_v43 }
 0x1b8   : > { %v1443_v61 = vsel %vm1442_vm2, %v1441_v0, 0  ;;  %v1438_v22 = vand.u32 8388607, %v1431_v25  ;;  %v6144_v29 = vand.u32 3, %v1314_v41  ;;  %v6146_v16 = vand.u32 3, %v2731_v6 }
 0x1b9   : > { %1802 = vst [vmem:[#allocation2 + $0x48] sm:$0xf] %v4313_v56  ;;  %3220 = vst [vmem:[#allocation2 + $0x4c] sm:$0xf] %v4326_v9  ;;  %v1445_v7 = vand.u32 31, %v1443_v61  ;;  %v1308_v24 = vmul.f32 %v1307_v14, %v1305_v34  ;;  %v1595_v50 = vadd.s32 536870912, %v1594_v20  ;;  %v6167_v27 = vmul.f32 %v6033_v28, %v380_v17 }
 0x1ba   : > { %v1444_v5 = vshrl.u32 %v1443_v61, 5  ;;  %v1439_v2 = vor.u32 8388608, %v1438_v22  ;;  %vm2737_vm1 = vcmp.eq.s32.totalorder %v6146_v16, 2  ;;  %vm1320_vm5 = vcmp.eq.s32.totalorder %v6144_v29, 0 }
 0x1bb   : > { %v1446_v60 = vsub.s32 32, %v1445_v7  ;;  %v1309_v48 = vxor.u32 2147483648, %v1308_v24  ;;  %v1596_v40 = vshrl.u32 %v1595_v50, 30  ;;  %v1448_v44 = vshll.u32 %v4903_v49, %v1445_v7 }
 0x1bc   : > { %v1451_v54 = vshll.u32 %v4904_v51, %v1445_v7  ;;  %v1454_v13 = vshll.u32 %v4905_v53, %v1445_v7  ;;  %v1457_v30 = vshll.u32 %v4906_v55, %v1445_v7  ;;  %v1460_v0 = vshll.u32 %v4907_v57, %v1445_v7 }
 0x1bd   : > { %v1449_v15 = vshrl.u32 %v4904_v51, %v1446_v60  ;;  %v1452_v36 = vshrl.u32 %v4905_v53, %v1446_v60  ;;  %v1455_v19 = vshrl.u32 %v4906_v55, %v1446_v60  ;;  %v1310_v47 = vsel %vm1227_vm3, %v1309_v48, %v1308_v24 }
 0x1be   : > { %v1597_v12 = vshll.u32 %v1596_v40, 30  ;;  %v1458_v41 = vshrl.u32 %v4907_v57, %v1446_v60  ;;  %v1313_v31 = vsel %vm6065_vm0, %v5755_v37, %v1310_v47  ;;  %v1461_v11 = vshrl.u32 %v4908_v1, %v1446_v60 }
 0x1bf   : > { %4752 = vcosq.f32 %v1313_v31  ;;  %v1450_v38 = vor.u32 %v1449_v15, %v1448_v44  ;;  %v1453_v26 = vor.u32 %v1452_v36, %v1451_v54  ;;  %v1456_v59 = vor.u32 %v1455_v19, %v1454_v13 }
 0x1c0   : > { %v6161_v23 = vsub.s32 %v1594_v20, %v1597_v12  ;;  %4754 = vsinq.f32 %v1313_v31  ;;  %v1459_v52 = vor.u32 %v1458_v41, %v1457_v30  ;;  %vm1536_vm3 = vcmp.lt.s32.totalorder %v5880_v39, 0 }
 0x1c1   : > { %v1620_v18 = vsub.s32 4, %v1596_v40  ;;  %v1447_v42 = vshrl.u32 %v4903_v49, %v1446_v60  ;;  %vm1323_vm0 = vcmp.eq.s32.totalorder %v6144_v29, 2  ;;  %v1462_v21 = vor.u32 %v1461_v11, %v1460_v0 }
 0x1c2   : > { %v1600_v32 = vsub.s32 0, %v6161_v23  ;;  %vm1463_vm15 = vcmp.lt.s32.totalorder %v1444_v5, 1  ;;  %vm1466_vm4 = vcmp.lt.s32.totalorder %v1444_v5, 4  ;;  %vm2734_vm6 = vcmp.eq.s32.totalorder %v6146_v16, 0 }
 0x1c3   : > { %vm1465_vm7 = vcmp.lt.s32.totalorder %v1444_v5, 3  ;;  %v1468_v28 = vsel %vm1466_vm4, %v1456_v59, 2102212464  ;;  %v1471_v10 = vsel %vm1463_vm15, %v1450_v38, %v1453_v26  ;;  %v1472_v3 = vsel %vm1466_vm4, %v1459_v52, 920167782 }
 0x1c4   : > { %v4130_v33 = vmin.u32 %v1600_v32, %v6161_v23  ;;  %vm1319_vm8 = vcmp.lt.s32.totalorder %v6144_v29, 2  ;;  %vm2733_vm9 = vcmp.lt.s32.totalorder %v6146_v16, 2  ;;  %v1473_v8 = vsel %vm1465_vm7, %v1456_v59, %v1472_v3 }
 0x1c5   : > { %v1479_v46 = vshll.u32 %v1439_v2, 8  ;;  %v1640_v62 = vand.u32 2139095040, %v6167_v27  ;;  %vm1317_vm10 = vweird.f32 %v5755_v37  ;;  %vm1464_vm11 = vcmp.lt.s32.totalorder %v1444_v5, 2 }
 0x1c6   : > { %v1602_v6 = vclz %v4130_v33  ;;  %v1467_v43 = vsel %vm1463_vm15, %v1447_v42, %v1450_v38  ;;  %v1469_v56 = vsel %vm1465_vm7, %v1453_v26, %v1468_v28  ;;  %v1475_v9 = vsel %vm1463_vm15, %v1453_v26, %v1456_v59 }
 0x1c7   : > { %v1590_v63 = vadd.s32 %v6108_v4, %v6118_v45  ;;  %v1474_v14 = vsel %vm1464_vm11, %v1471_v10, %v1473_v8  ;;  %v1476_v20 = vsel %vm1466_vm4, %v1462_v21, 1326507024  ;;  %v1621_v61 = vsel %vm1536_vm3, %v1620_v18, %v1596_v40 }
 0x1c8   : > { %v4131_v34 = vadd.s32 4294967294, %v1602_v6  ;;  %v1477_v7 = vsel %vm1465_vm7, %v1459_v52, %v1476_v20  ;;  %v6193_v24 = vmul.u32.u64.low %v1479_v46, %v1474_v14  ;;  %v6194_v50 = vmul.u32.u64.high %v1479_v46, %v1474_v14, %v6193_v24 }
 0x1c9   : > { %v4753_v22 = vpop.eup %4752  ;;  %v1470_v60 = vsel %vm1464_vm11, %v1467_v43, %v1469_v56  ;;  %v1478_v48 = vsel %vm1464_vm11, %v1475_v9, %v1477_v7  ;;  %v1641_v44 = vshrl.u32 %v1640_v62, 23  ;;  %vm6223_vm14 = vcmp.le.f32.partialorder %v1534_v58, 0.7853982 }
 0x1ca   : > { %vm4132_vm12 = vcmp.lt.s32.totalorder %v4131_v34, 0  ;;  %v4755_v15 = vpop.eup %4754  ;;  %v1324_v4 = vxor.u32 2147483648, %v4753_v22  ;;  %v6197_v36 = vmul.u32.u64.low %v1479_v46, %v1478_v48  ;;  %v6198_v19 = vmul.u32.u64.high %v1479_v46, %v1478_v48, %v6197_v36 }
 0x1cb   : > { %v1605_v45 = vsel %vm4132_vm12, 0, %v4131_v34  ;;  %v1321_v47 = vxor.u32 2147483648, %v4755_v15  ;;  %v1489_v5 = vadd.s32 1, %v6194_v50  ;;  %v4133_v13 = vadd.s32 4294967169, %v1641_v44 }
 0x1cc   : > { %v1606_v12 = vsub.s32 32, %v1605_v45  ;;  %v1607_v40 = vshll.u32 %v6161_v23, %v1605_v45  ;;  %v1610_v54 = vsub.s32 4294967266, %v1605_v45  ;;  %v1325_v41 = vsel %vm1323_vm0, %v1324_v4, %v4755_v15 }
 0x1cd   : > { %v2739_v31 = vsel %vm2737_vm1, %v1324_v4, %v4755_v15  ;;  %v1322_v30 = vsel %vm1320_vm5, %v4753_v22, %v1321_v47  ;;  %v2736_v17 = vsel %vm2734_vm6, %v4753_v22, %v1321_v47  ;;  %v1486_v52 = vmul.u32 %v1479_v46, %v1470_v60 }
 0x1ce   : > { %v1608_v38 = vshrl.u32 %v1590_v63, %v1606_v12  ;;  %v1611_v26 = vadd.s32 127, %v1610_v54  ;;  %v1326_v23 = vsel %vm1319_vm8, %v1322_v30, %v1325_v41  ;;  %v2740_v59 = vsel %vm2733_vm9, %v2736_v17, %v2739_v31 }
 0x1cf   : > { %vm1488_vm13 = vc.u32 %v6198_v19, %v6193_v24  ;;  %v1327_v11 = vsel %vm1317_vm10, nan, %v1326_v23  ;;  %v2741_v32 = vsel %vm1317_vm10, nan, %v2740_v59  ;;  %v1647_v28 = vadd.s32 1, %v4133_v13 }
 0x1d0   : > { %v1609_v2 = vor.u32 %v1608_v38, %v1607_v40  ;;  %v1612_v0 = vshll.u32 %v1611_v26, 23  ;;  %v4312_v18 = vpack.c.bf16 %v1327_v11, %v1327_v11  ;;  %v4325_v42 = vpack.c.bf16 %v2741_v32, %v2741_v32 }
 0x1d1   : > { %v1490_v29 = vsel %vm1488_vm13, %v1489_v5, %v6194_v50  ;;  %v1623_v37 = vsel %vm6223_vm14, 0, %v1621_v61  ;;  %vm1648_vm2 = vcmp.gt.s32.totalorder %v1647_v28, 0  ;;  %v1637_v56 = vand.u32 2147483647, %v6167_v27 }
 0x1d2   : > { %v1613_v33 = vor.u32 4788187, %v1612_v0  ;;  %v1491_v21 = vadd.s32 %v1490_v29, %v1486_v52  ;;  %1801 = vst [vmem:[#allocation2 + $0x40] sm:$0xf] %v4312_v18  ;;  %3219 = vst [vmem:[#allocation2 + $0x44] sm:$0xf] %v4325_v42  ;;  %v1616_v3 = vcvt.s32.f32 %v1609_v2  ;;  %v1487_v54 = vadd.s32 %v6193_v24, %v6198_v19 }
 0x1d3   : > { %v1649_v8 = vsel %vm1648_vm2, %v1647_v28, 0  ;;  %v3043_v62 = vadd.s32 3, %v1623_v37  ;;  %v6235_v20 = vand.u32 3, %v1623_v37  ;;  %v1644_v60 = vand.u32 8388607, %v1637_v56 }
 0x1d4   : > { %v1614_v10 = vand.u32 2147483647, %v1613_v33  ;;  %v1492_v6 = vadd.s32 536870912, %v1491_v21  ;;  %v1651_v58 = vand.u32 31, %v1649_v8  ;;  %v1650_v45 = vshrl.u32 %v1649_v8, 5 }
 0x1d5   : > { %v6237_v61 = vand.u32 3, %v3043_v62  ;;  %vm1629_vm1 = vcmp.eq.s32.totalorder %v6235_v20, 0  ;;  %vm1628_vm6 = vcmp.lt.s32.totalorder %v6235_v20, 2  ;;  %vm1626_vm11 = vweird.f32 %v5880_v39 }
 0x1d6   : > { %v1617_v46 = vmul.f32 %v1616_v3, %v1614_v10  ;;  %v6229_v43 = vshrl.u32 %v1492_v6, 30  ;;  %v1652_v34 = vsub.s32 32, %v1651_v58  ;;  %v1654_v36 = vshll.u32 %v4903_v49, %v1651_v58 }
 0x1d7   : > { %v1657_v47 = vshll.u32 %v4904_v51, %v1651_v58  ;;  %v1660_v12 = vshll.u32 %v4905_v53, %v1651_v58  ;;  %v1663_v31 = vshll.u32 %v4906_v55, %v1651_v58  ;;  %vm3049_vm0 = vcmp.eq.s32.totalorder %v6237_v61, 2 }
 0x1d8   : > { %v1618_v9 = vxor.u32 2147483648, %v1617_v46  ;;  %v1494_v63 = vshll.u32 %v6229_v43, 30  ;;  %v1655_v48 = vshrl.u32 %v4904_v51, %v1652_v34  ;;  %v1658_v44 = vshrl.u32 %v4905_v53, %v1652_v34 }
 0x1d9   : > { %v4693_v50 = vld [vmem:[#allocation2 + $0x44] ss:$8 sps:$4 sm:$0xff]   ;;  %v4695_v15 = vld [vmem:[#allocation2 + $0x40] ss:$8 sps:$4 sm:$0xff]   ;;  %v1661_v40 = vshrl.u32 %v4906_v55, %v1652_v34  ;;  %v1664_v17 = vshrl.u32 %v4907_v57, %v1652_v34  ;;  %v1645_v53 = vor.u32 8388608, %v1644_v60  ;;  %v1666_v38 = vshll.u32 %v4907_v57, %v1651_v58 }
 0x1da   : > { %v1619_v14 = vsel %vm1536_vm3, %v1618_v9, %v1617_v46  ;;  %v6239_v7 = vsub.s32 %v1491_v21, %v1494_v63  ;;  %3503 = vmatprep.mubr.bf16.mxu0 %v4693_v50  ;;  %v1656_v5 = vor.u32 %v1655_v48, %v1654_v36  ;;  %v1659_v13 = vor.u32 %v1658_v44, %v1657_v47 }
 0x1db   : > { %v1622_v22 = vsel %vm6223_vm14, %v5880_v39, %v1619_v14  ;;  %3504 = vmatmul.mubr.bf16.gmra.mrb[16].mxu0 %v4695_v15  ;;  %v1662_v30 = vor.u32 %v1661_v40, %v1660_v12  ;;  %vm1632_vm3 = vcmp.eq.s32.totalorder %v6235_v20, 2  ;;  %v1667_v26 = vshrl.u32 %v4908_v1, %v1652_v34 }
 0x1dc   : > { %4756 = vcosq.f32 %v1622_v22  ;;  %v1497_v4 = vsub.s32 0, %v6239_v7  ;;  %vm3046_vm15 = vcmp.eq.s32.totalorder %v6237_v61, 0  ;;  %v1653_v55 = vshrl.u32 %v4903_v49, %v1652_v34 }
 0x1dd   : > { %4758 = vsinq.f32 %v1622_v22  ;;  %v1665_v24 = vor.u32 %v1664_v17, %v1663_v31  ;;  %vm1669_vm4 = vcmp.lt.s32.totalorder %v1650_v45, 1  ;;  %vm1670_vm5 = vcmp.lt.s32.totalorder %v1650_v45, 2 }
 0x1de   : > { %v4126_v41 = vmin.u32 %v1497_v4, %v6239_v7  ;;  %vm3045_vm7 = vcmp.lt.s32.totalorder %v6237_v61, 2  ;;  %v1668_v23 = vor.u32 %v1667_v26, %v1666_v38  ;;  %vm1671_vm8 = vcmp.lt.s32.totalorder %v1650_v45, 3 }
 0x1df   : > { %vm1672_vm9 = vcmp.lt.s32.totalorder %v1650_v45, 4  ;;  %v1673_v57 = vsel %vm1669_vm4, %v1653_v55, %v1656_v5  ;;  %v1677_v1 = vsel %vm1669_vm4, %v1656_v5, %v1659_v13  ;;  %v1681_v32 = vsel %vm1669_vm4, %v1659_v13, %v1662_v30 }
 0x1e0   : > { %v1499_v51 = vclz %v4126_v41  ;;  %v1674_v59 = vsel %vm1672_vm9, %v1662_v30, 2102212464  ;;  %v1678_v52 = vsel %vm1672_vm9, %v1665_v24, 920167782  ;;  %v1682_v18 = vsel %vm1672_vm9, %v1668_v23, 1326507024 }
 0x1e1   : > { %v1675_v11 = vsel %vm1671_vm8, %v1659_v13, %v1674_v59  ;;  %v1679_v49 = vsel %vm1671_vm8, %v1662_v30, %v1678_v52  ;;  %v1685_v42 = vshll.u32 %v1645_v53, 8  ;;  %v1683_v28 = vsel %vm1671_vm8, %v1665_v24, %v1682_v18 }
 0x1e2   : > { %v4127_v19 = vadd.s32 4294967294, %v1499_v51  ;;  %v1680_v0 = vsel %vm1670_vm5, %v1677_v1, %v1679_v49  ;;  %v1676_v21 = vsel %vm1670_vm5, %v1673_v57, %v1675_v11  ;;  %v1684_v3 = vsel %vm1670_vm5, %v1681_v32, %v1683_v28 }
 0x1e3   : > { %v6273_v6 = vmul.u32.u64.low %v1685_v42, %v1680_v0  ;;  %v6274_v8 = vmul.u32.u64.high %v1685_v42, %v1680_v0, %v6273_v6  ;;  %v6282_v14 = vmul.u32.u64.low %v1685_v42, %v1684_v3  ;;  %v6283_v50 = vmul.u32.u64.high %v1685_v42, %v1684_v3, %v6282_v14 }
 0x1e4   : > { %vm4128_vm10 = vcmp.lt.s32.totalorder %v4127_v19, 0  ;;  %v1517_v5 = vsub.s32 4, %v6229_v43  ;;  %vm1433_vm13 = vcmp.lt.s32.totalorder %v6036_v35, 0  ;;  %vm1432_vm14 = vcmp.le.f32.partialorder %v1431_v25, 0.7853982 }
 0x1e5   : > { %v1502_v2 = vsel %vm4128_vm10, 0, %v4127_v19  ;;  %v1695_v4 = vadd.s32 1, %v6274_v8  ;;  %vm1694_vm12 = vc.u32 %v6283_v50, %v6273_v6  ;;  %vm1638_vm8 = vcmp.le.f32.partialorder %v1637_v56, 0.7853982 }
 0x1e6   : > { %v4757_v29 = vpop.eup %4756  ;;  %v1503_v16 = vsub.s32 32, %v1502_v2  ;;  %v1507_v33 = vsub.s32 4294967266, %v1502_v2  ;;  %v1504_v62 = vshll.u32 %v6239_v7, %v1502_v2  ;;  %v1518_v53 = vsel %vm1433_vm13, %v1517_v5, %v6229_v43 }
 0x1e7   : > { %v4759_v37 = vpop.eup %4758  ;;  %v1633_v10 = vxor.u32 2147483648, %v4757_v29  ;;  %v1696_v39 = vsel %vm1694_vm12, %v1695_v4, %v6274_v8  ;;  %v1520_v55 = vsel %vm1432_vm14, 0, %v1518_v53 }
 0x1e8   : > { %v1630_v46 = vxor.u32 2147483648, %v4759_v37  ;;  %v1505_v58 = vshrl.u32 %v1487_v54, %v1503_v16  ;;  %v1508_v9 = vadd.s32 127, %v1507_v33  ;;  %v1692_v54 = vmul.u32 %v1685_v42, %v1676_v21 }
 0x1e9   : > { %v1634_v63 = vsel %vm1632_vm3, %v1633_v10, %v4759_v37  ;;  %v3051_v34 = vsel %vm3049_vm0, %v1633_v10, %v4759_v37  ;;  %v2939_v23 = vadd.s32 3, %v1520_v55  ;;  %v1524_v59 = vand.u32 3, %v1520_v55  ;;  %v4702_v55 = vld [vmem:[%s6469_s4 + $0x8] sm:$0xff]  }
 0x1ea   : > { %v1631_v22 = vsel %vm1629_vm1, %v4757_v29, %v1630_v46  ;;  %v3048_v60 = vsel %vm3046_vm15, %v4757_v29, %v1630_v46  ;;  %v1506_v48 = vor.u32 %v1505_v58, %v1504_v62  ;;  %v1509_v44 = vshll.u32 %v1508_v9, 23 }
 0x1eb   : > { %v1635_v7 = vsel %vm1628_vm6, %v1631_v22, %v1634_v63  ;;  %v3052_v15 = vsel %vm3045_vm7, %v3048_v60, %v3051_v34  ;;  %v1697_v20 = vadd.s32 %v1696_v39, %v1692_v54  ;;  %v2940_v52 = vand.u32 3, %v2939_v23  ;;  %v4704_v23 = vld [vmem:[%s6469_s4 + $0x18] sm:$0xff]  }
 0x1ec   : > { %v1636_v45 = vsel %vm1626_vm11, nan, %v1635_v7  ;;  %v3053_v36 = vsel %vm1626_vm11, nan, %v3052_v15  ;;  %v1510_v47 = vor.u32 4788187, %v1509_v44  ;;  %v1513_v31 = vcvt.s32.f32 %v1506_v48 }
 0x1ed   : > { %v4315_v12 = vpack.c.bf16 %v1636_v45, %v1636_v45  ;;  %v4328_v40 = vpack.c.bf16 %v3053_v36, %v3053_v36  ;;  %v1698_v13 = vadd.s32 536870912, %v1697_v20  ;;  %vm1525_vm2 = vcmp.lt.s32.totalorder %v1524_v59, 2 }
 0x1ee   : > { %v1511_v41 = vand.u32 2147483647, %v1510_v47  ;;  %vm1526_vm3 = vcmp.eq.s32.totalorder %v1524_v59, 0  ;;  %vm1529_vm0 = vcmp.eq.s32.totalorder %v1524_v59, 2  ;;  %vm2942_vm15 = vcmp.eq.s32.totalorder %v2940_v52, 0  ;;  %v4705_v59 = vld [vmem:[%s6469_s4 + $0x20] sm:$0xff]  }
 0x1ef   : > { %1804 = vst [vmem:[#allocation2 + $0x58] sm:$0xf] %v4315_v12  ;;  %3222 = vst [vmem:[#allocation2 + $0x5c] sm:$0xf] %v4328_v40  ;;  %v1699_v17 = vshrl.u32 %v1698_v13, 30  ;;  %vm2945_vm4 = vcmp.eq.s32.totalorder %v2940_v52, 2  ;;  %v1693_v42 = vadd.s32 %v6273_v6, %v6283_v50  ;;  %vm1523_vm6 = vweird.f32 %v6036_v35 }
 0x1f0   : > { %v1514_v61 = vmul.f32 %v1513_v31, %v1511_v41  ;;  %vm2941_vm5 = vcmp.lt.s32.totalorder %v2940_v52, 2  ;;  %vm1639_vm7 = vcmp.lt.s32.totalorder %v6167_v27, 0  ;;  %v4909_v39 = vmov 0.0  }
 0x1f1   : > { %v1700_v26 = vshll.u32 %v1699_v17, 30  ;;  %v1723_v60 = vsub.s32 4, %v1699_v17  ;;  %4500 = vmatprep.subr.bf16.mxu1 %v4909_v39 }
 0x1f2   : > { %v1515_v30 = vxor.u32 2147483648, %v1514_v61 }
 0x1f3   : > { %v1701_v24 = vsub.s32 %v1697_v20, %v1700_v26  ;;  %v1724_v15 = vsel %vm1639_vm7, %v1723_v60, %v1699_v17 }
 0x1f4   : > { %v1516_v51 = vsel %vm1433_vm13, %v1515_v30, %v1514_v61  ;;  %v1726_v45 = vsel %vm1638_vm8, 0, %v1724_v15  ;;  %v4701_v61 = vld [vmem:[%s6469_s4] sm:$0xff]  }
 0x1f5   : > { %v1519_v38 = vsel %vm1432_vm14, %v6036_v35, %v1516_v51  ;;  %v1703_v19 = vsub.s32 0, %v1701_v24  ;;  %v3147_v36 = vadd.s32 3, %v1726_v45  ;;  %v1730_v47 = vand.u32 3, %v1726_v45  ;;  %4501 = vmatpush3.bf16.msra.mxu1 %v4701_v61 }
 0x1f6   : > { %4760 = vcosq.f32 %v1519_v38  ;;  %4502 = vmatprep.subr.bf16.mxu1 %v4909_v39 }
 0x1f7   : > { %4762 = vsinq.f32 %v1519_v38  ;;  %v4134_v57 = vmin.u32 %v1703_v19, %v1701_v24  ;;  %v3148_v12 = vand.u32 3, %v3147_v36  ;;  %vm1735_vm9 = vcmp.eq.s32.totalorder %v1730_v47, 2 }
 0x1f8   : > { %vm1732_vm11 = vcmp.eq.s32.totalorder %v1730_v47, 0  ;;  %vm1731_vm13 = vcmp.lt.s32.totalorder %v1730_v47, 2 }
 0x1f9   : > { %v1705_v1 = vclz %v4134_v57  ;;  %vm3153_vm10 = vcmp.eq.s32.totalorder %v3148_v12, 2  ;;  %vm3150_vm12 = vcmp.eq.s32.totalorder %v3148_v12, 0  ;;  %vm3149_vm14 = vcmp.lt.s32.totalorder %v3148_v12, 2  ;;  %4503 = vmatpush3.bf16.msra.mxu1 %v4702_v55 }
 0x1fa   : > { %4504 = vmatprep.subr.bf16.mxu1 %v4909_v39 }
 0x1fb   : > { %v4135_v11 = vadd.s32 4294967294, %v1705_v1  ;;  %v4706_v1 = vld [vmem:[%s6469_s4 + $0x28] sm:$0xff]  }
 0x1fd   : > { %vm4136_vm1 = vcmp.lt.s32.totalorder %v4135_v11, 0 }
 0x1fe   : > { %v1708_v2 = vsel %vm4136_vm1, 0, %v4135_v11  ;;  %v6341_v11 = vld [vmem:[%s6468_s3] ss:$0 sm:$0xff] }
 0x1ff   : > { %v1709_v29 = vsub.s32 32, %v1708_v2  ;;  %v1713_v21 = vsub.s32 4294967266, %v1708_v2  ;;  %v1710_v46 = vshll.u32 %v1701_v24, %v1708_v2 }
 0x200   : > { %v4761_v49 = vpop.eup %4760 }
 0x201   : > { %v4763_v25 = vpop.eup %4762  ;;  %v1530_v43 = vxor.u32 2147483648, %v4761_v49  ;;  %v1711_v10 = vshrl.u32 %v1693_v42, %v1709_v29  ;;  %v1714_v62 = vadd.s32 127, %v1713_v21 }
 0x202   : > { %v1527_v32 = vxor.u32 2147483648, %v4763_v25 }
 0x203   : > { %v1531_v0 = vsel %vm1529_vm0, %v1530_v43, %v4763_v25  ;;  %v2947_v18 = vsel %vm2945_vm4, %v1530_v43, %v4763_v25  ;;  %v1712_v63 = vor.u32 %v1711_v10, %v1710_v46  ;;  %v1715_v34 = vshll.u32 %v1714_v62, 23 }
 0x204   : > { %v1528_v16 = vsel %vm1526_vm3, %v4761_v49, %v1527_v32  ;;  %v2944_v33 = vsel %vm2942_vm15, %v4761_v49, %v1527_v32  ;;  %vm4910_vm3 = vmmov 0  }
 0x205   : > { %v1532_v28 = vsel %vm1525_vm2, %v1528_v16, %v1531_v0  ;;  %v2948_v37 = vsel %vm2941_vm5, %v2944_v33, %v2947_v18  ;;  %v1716_v6 = vor.u32 4788187, %v1715_v34  ;;  %v1719_v50 = vcvt.s32.f32 %v1712_v63  ;;  %4516 = vmatprep.mubr.msk.bf16.mxu1 %vm4910_vm3, %v4909_v39 }
 0x206   : > { %v1533_v3 = vsel %vm1523_vm6, nan, %v1532_v28  ;;  %v2949_v8 = vsel %vm1523_vm6, nan, %v2948_v37  ;;  %vm1729_vm2 = vweird.f32 %v6167_v27 }
 0x207   : > { %v4314_v58 = vpack.c.bf16 %v1533_v3, %v1533_v3  ;;  %v4327_v9 = vpack.c.bf16 %v2949_v8, %v2949_v8  ;;  %v1717_v14 = vand.u32 2147483647, %v1716_v6 }
 0x209   : > { %1803 = vst [vmem:[#allocation2 + $0x50] sm:$0xf] %v4314_v58  ;;  %3221 = vst [vmem:[#allocation2 + $0x54] sm:$0xf] %v4327_v9  ;;  %v1720_v22 = vmul.f32 %v1719_v50, %v1717_v14 }
 0x20b   : > { %v1721_v35 = vxor.u32 2147483648, %v1720_v22 }
 0x20d   : > { %v1722_v7 = vsel %vm1639_vm7, %v1721_v35, %v1720_v22 }
 0x20e   : > { %v1725_v4 = vsel %vm1638_vm8, %v6167_v27, %v1722_v7  ;;  %v4703_v27 = vld [vmem:[%s6469_s4 + $0x10] sm:$0xff]  }
 0x20f   : > { %4764 = vcosq.f32 %v1725_v4  ;;  %4505 = vmatpush3.bf16.msra.mxu1 %v4703_v27 }
 0x210   : > { %v4696_v48 = vld [vmem:[#allocation2 + $0x54] ss:$8 sps:$4 sm:$0xff]   ;;  %v4698_v44 = vld [vmem:[#allocation2 + $0x50] ss:$8 sps:$4 sm:$0xff]   ;;  %4766 = vsinq.f32 %v1725_v4  ;;  %4506 = vmatprep.subr.bf16.mxu1 %v4909_v39 }
 0x211   : > { %3511 = vmatprep.mubr.bf16.mxu0 %v4696_v48 }
 0x212   : > { %3512 = vmatmul.mubr.bf16.gmra.mrb[20].mxu0 %v4698_v44  ;;  %v4707_v44 = vld [vmem:[%s6469_s4 + $0x30] sm:$0xff]  }
 0x213   : > { %4507 = vmatpush3.bf16.msra.mxu1 %v4704_v23 }
 0x214   : > { %4508 = vmatprep.subr.bf16.mxu1 %v4909_v39 }
 0x217   : > { %4509 = vmatpush3.bf16.msra.mxu1 %v4705_v59 }
 0x218   : > { %4510 = vmatprep.subr.bf16.mxu1 %v4909_v39 }
 0x219   : > { %v4765_v40 = vpop.eup %4764 }
 0x21a   : > { %v4767_v54 = vpop.eup %4766  ;;  %v1736_v41 = vxor.u32 2147483648, %v4765_v40 }
 0x21b   : > { %v1733_v31 = vxor.u32 2147483648, %v4767_v54  ;;  %4511 = vmatpush3.bf16.msra.mxu1 %v4706_v1 }
 0x21c   : > { %v1737_v56 = vsel %vm1735_vm9, %v1736_v41, %v4767_v54  ;;  %v3155_v20 = vsel %vm3153_vm10, %v1736_v41, %v4767_v54  ;;  %4512 = vmatprep.subr.bf16.mxu1 %v4909_v39 }
 0x21d   : > { %v1734_v5 = vsel %vm1732_vm11, %v4765_v40, %v1733_v31  ;;  %v3152_v13 = vsel %vm3150_vm12, %v4765_v40, %v1733_v31  ;;  %v4708_v31 = vld [vmem:[%s6469_s4 + $0x38] sm:$0xff]  }
 0x21e   : > { %v1738_v30 = vsel %vm1731_vm13, %v1734_v5, %v1737_v56  ;;  %v3156_v17 = vsel %vm3149_vm14, %v3152_v13, %v3155_v20 }
 0x21f   : > { %v1739_v51 = vsel %vm1729_vm2, nan, %v1738_v30  ;;  %v3157_v53 = vsel %vm1729_vm2, nan, %v3156_v17  ;;  %4513 = vmatpush3.bf16.msra.mxu1 %v4707_v44 }
 0x220   : > { %v4316_v38 = vpack.c.bf16 %v1739_v51, %v1739_v51  ;;  %v4329_v26 = vpack.c.bf16 %v3157_v53, %v3157_v53  ;;  %4514 = vmatprep.subr.bf16.mxu1 %v4909_v39 }
 0x222   : > { %1805 = vst [vmem:[#allocation2 + $0x60] sm:$0xf] %v4316_v38  ;;  %3223 = vst [vmem:[#allocation2 + $0x64] sm:$0xf] %v4329_v26 }
 0x223   : > { %4515 = vmatpush3.bf16.msra.mxu1 %v4708_v31 }
 0x229   : > { %v3236_v24 = vld [vmem:[#allocation2 + $0x60] sm:$0xff] }
 0x22a   : > { %v4229_v19 = vcombine.high %v3236_v24, %v3236_v24  ;;  %v4228_v57 = vcombine.low %v3236_v24, %v3236_v24 }
 0x22c   : > { %3519 = vmatprep.mubr.bf16.mxu0 %v4229_v19 }
 0x22d   : > { %3520 = vmatmul.mubr.bf16.gmra.mrb[24].mxu0 %v4228_v57 }
 0x26d   : > { %v4443_v52 = vpop.f32.mrb[0].mxu0 }
 0x26e   : > { %v4444_v49 = vpop.f32.mrb[1].mxu0 }
 0x26f   : > { %v4445_v25 = vadd.f32 %v4444_v49, %v4443_v52  ;;  %v4446_v43 = vpop.f32.mrb[2].mxu0 }
 0x270   : > { %v4447_v32 = vpop.f32.mrb[3].mxu0 }
 0x271   : > { %v6344_v2 = vadd.f32 %v4445_v25, %v6341_v11  ;;  %v4448_v0 = vadd.f32 %v4447_v32, %v4446_v43 }
 0x273   : > { %v4246_v18 = vmul.f32 -1.442695, %v6344_v2  ;;  %v3477_v42 = vadd.f32 %v4448_v0, %v6341_v11 }
 0x275   : > { %4768 = vpow2.f32 %v4246_v18  ;;  %v4247_v29 = vmul.f32 -1.442695, %v3477_v42  ;;  %v4449_v16 = vpop.f32.mrb[4].mxu0 }
 0x276   : > { %v4450_v33 = vpop.f32.mrb[5].mxu0 }
 0x277   : > { %4770 = vpow2.f32 %v4247_v29  ;;  %v4451_v21 = vadd.f32 %v4450_v33, %v4449_v16  ;;  %v4452_v28 = vpop.f32.mrb[6].mxu0 }
 0x278   : > { %v4453_v37 = vpop.f32.mrb[7].mxu0 }
 0x279   : > { %v6349_v10 = vadd.f32 %v4451_v21, %v6341_v11  ;;  %v4454_v3 = vadd.f32 %v4453_v37, %v4452_v28 }
 0x27b   : > { %v4248_v8 = vmul.f32 -1.442695, %v6349_v10  ;;  %v6353_v46 = vadd.f32 %v4454_v3, %v6341_v11 }
 0x27d   : > { %4772 = vpow2.f32 %v4248_v8  ;;  %v4249_v62 = vmul.f32 -1.442695, %v6353_v46  ;;  %v4455_v58 = vpop.f32.mrb[8].mxu0 }
 0x27e   : > { %v4456_v9 = vpop.f32.mrb[9].mxu0 }
 0x27f   : > { %v4769_v63 = vpop.eup %4768  ;;  %4774 = vpow2.f32 %v4249_v62  ;;  %v4457_v34 = vadd.f32 %v4456_v9, %v4455_v58  ;;  %v4458_v6 = vpop.f32.mrb[10].mxu0 }
 0x280   : > { %v3566_v14 = vadd.f32 1.0, %v4769_v63  ;;  %v4459_v50 = vpop.f32.mrb[11].mxu0 }
 0x281   : > { %v4771_v22 = vpop.eup %4770  ;;  %v6357_v60 = vadd.f32 %v4457_v34, %v6341_v11  ;;  %v4460_v35 = vadd.f32 %v4459_v50, %v4458_v6 }
 0x282   : > { %4776 = vrcp.f32 %v3566_v14  ;;  %v3567_v48 = vadd.f32 1.0, %v4771_v22 }
 0x283   : > { %v4250_v7 = vmul.f32 -1.442695, %v6357_v60  ;;  %v3493_v15 = vadd.f32 %v4460_v35, %v6341_v11 }
 0x284   : > { %4778 = vrcp.f32 %v3567_v48 }
 0x285   : > { %4780 = vpow2.f32 %v4250_v7  ;;  %v4251_v4 = vmul.f32 -1.442695, %v3493_v15  ;;  %v4461_v45 = vpop.f32.mrb[12].mxu0 }
 0x286   : > { %v4462_v36 = vpop.f32.mrb[13].mxu0 }
 0x287   : > { %v4773_v47 = vpop.eup %4772  ;;  %4782 = vpow2.f32 %v4251_v4  ;;  %v4463_v12 = vadd.f32 %v4462_v36, %v4461_v45  ;;  %v4464_v40 = vpop.f32.mrb[14].mxu0 }
 0x288   : > { %v3568_v54 = vadd.f32 1.0, %v4773_v47  ;;  %v4465_v41 = vpop.f32.mrb[15].mxu0 }
 0x289   : > { %v4775_v56 = vpop.eup %4774  ;;  %v3498_v20 = vadd.f32 %v4463_v12, %v6341_v11  ;;  %v4466_v61 = vadd.f32 %v4465_v41, %v4464_v40 }
 0x28a   : > { %4784 = vrcp.f32 %v3568_v54  ;;  %v3569_v5 = vadd.f32 1.0, %v4775_v56 }
 0x28b   : > { %v4252_v13 = vmul.f32 -1.442695, %v3498_v20  ;;  %v3501_v30 = vadd.f32 %v4466_v61, %v6341_v11 }
 0x28c   : > { %v4777_v17 = vpop.eup %4776  ;;  %4786 = vrcp.f32 %v3569_v5 }
 0x28d   : > { %4788 = vpow2.f32 %v4252_v13  ;;  %v4253_v51 = vmul.f32 -1.442695, %v3501_v30  ;;  %v3605_v26 = vmul.f32 %v4777_v17, %v6344_v2 }
 0x28e   : > { %v4779_v53 = vpop.eup %4778 }
 0x28f   : > { %v4781_v38 = vpop.eup %4780  ;;  %v3606_v55 = vmul.f32 %v4779_v53, %v3477_v42  ;;  %4790 = vpow2.f32 %v4253_v51 }
 0x290   : > { %v3570_v27 = vadd.f32 1.0, %v4781_v38 }
 0x291   : > { %v4783_v24 = vpop.eup %4782  ;;  %v4360_v19 = vpack.c.bf16 %v3606_v55, %v3605_v26 }
 0x292   : > { %4792 = vrcp.f32 %v3570_v27  ;;  %v3571_v23 = vadd.f32 1.0, %v4783_v24 }
 0x293   : > { %4361 = vst [vmem:[#allocation3] sm:$0xff] %v4360_v19  }
 0x294   : > { %v4785_v57 = vpop.eup %4784  ;;  %4794 = vrcp.f32 %v3571_v23 }
 0x295   : > { %v3607_v52 = vmul.f32 %v4785_v57, %v6349_v10 }
 0x296   : > { %v4787_v59 = vpop.eup %4786 }
 0x297   : > { %v4789_v1 = vpop.eup %4788  ;;  %v3608_v49 = vmul.f32 %v4787_v59, %v6353_v46 }
 0x298   : > { %v3572_v25 = vadd.f32 1.0, %v4789_v1 }
 0x299   : > { %v4791_v43 = vpop.eup %4790  ;;  %v4365_v32 = vpack.c.bf16 %v3608_v49, %v3607_v52 }
 0x29a   : > { %4796 = vrcp.f32 %v3572_v25  ;;  %v3573_v2 = vadd.f32 1.0, %v4791_v43  ;;  %v4709_v0 = vld [vmem:[#allocation3] sm:$0xff]  }
 0x29b   : > { %4417 = vst [vmem:[#allocation3 + $0x8] sm:$0xff] %v4365_v32   ;;  %4517 = vmatmul.mubr.bf16.vlgmr.msra.gmra.mrb[0].mxu1 %v4709_v0 }
 0x29c   : > { %v4793_v18 = vpop.eup %4792  ;;  %4798 = vrcp.f32 %v3573_v2  ;;  %4520 = vmatprep.mubr.msk.bf16.mxu1 %vm4910_vm3, %v4909_v39 }
 0x29d   : > { %v3609_v29 = vmul.f32 %v4793_v18, %v6357_v60 }
 0x29e   : > { %v4795_v42 = vpop.eup %4794 }
 0x29f   : > { %v3610_v16 = vmul.f32 %v4795_v42, %v3493_v15 }
 0x2a1   : > { %v4370_v33 = vpack.c.bf16 %v3610_v16, %v3609_v29 }
 0x2a2   : > { %v4710_v21 = vld [vmem:[#allocation3 + $0x8] sm:$0xff]  }
 0x2a3   : > { %4418 = vst [vmem:[#allocation3 + $0x10] sm:$0xff] %v4370_v33   ;;  %4521 = vmatmul.mubr.bf16.gmra.mrb[4].mxu1 %v4710_v21 }
 0x2a4   : > { %v4797_v28 = vpop.eup %4796  ;;  %4524 = vmatprep.mubr.msk.bf16.mxu1 %vm4910_vm3, %v4909_v39 }
 0x2a5   : > { %v3611_v10 = vmul.f32 %v4797_v28, %v3498_v20 }
 0x2a6   : > { %v4799_v37 = vpop.eup %4798 }
 0x2a7   : > { %v3612_v3 = vmul.f32 %v4799_v37, %v3501_v30 }
 0x2a9   : > { %v4375_v8 = vpack.c.bf16 %v3612_v3, %v3611_v10 }
 0x2aa   : > { %v4711_v46 = vld [vmem:[#allocation3 + $0x10] sm:$0xff]  }
 0x2ab   : > { %4419 = vst [vmem:[#allocation3 + $0x18] sm:$0xff] %v4375_v8   ;;  %4525 = vmatmul.mubr.bf16.gmra.mrb[8].mxu1 %v4711_v46 }
 0x2ac   : > { %4528 = vmatprep.mubr.msk.bf16.mxu1 %vm4910_vm3, %v4909_v39 }
 0x2ae   : > { %v4467_v62 = vpop.f32.mrb[16].mxu0 }
 0x2af   : > { %v4468_v58 = vpop.f32.mrb[17].mxu0 }
 0x2b0   : > { %v4469_v9 = vadd.f32 %v4468_v58, %v4467_v62  ;;  %v4470_v63 = vpop.f32.mrb[18].mxu0 }
 0x2b1   : > { %v4471_v34 = vpop.f32.mrb[19].mxu0 }
 0x2b2   : > { %v3506_v6 = vadd.f32 %v4469_v9, %v6341_v11  ;;  %v4472_v14 = vadd.f32 %v4471_v34, %v4470_v63  ;;  %v4712_v60 = vld [vmem:[#allocation3 + $0x18] sm:$0xff]  }
 0x2b3   : > { %4529 = vmatmul.mubr.bf16.gmra.mrb[12].mxu1 %v4712_v60 }
 0x2b4   : > { %v4254_v50 = vmul.f32 -1.442695, %v3506_v6  ;;  %v3509_v22 = vadd.f32 %v4472_v14, %v6341_v11  ;;  %4532 = vmatprep.mubr.msk.bf16.mxu1 %vm4910_vm3, %v4909_v39 }
 0x2b6   : > { %4800 = vpow2.f32 %v4254_v50  ;;  %v4255_v35 = vmul.f32 -1.442695, %v3509_v22 }
 0x2b8   : > { %4802 = vpow2.f32 %v4255_v35 }
 0x2c0   : > { %v4801_v48 = vpop.eup %4800 }
 0x2c1   : > { %v3574_v44 = vadd.f32 1.0, %v4801_v48 }
 0x2c2   : > { %v4803_v7 = vpop.eup %4802 }
 0x2c3   : > { %4804 = vrcp.f32 %v3574_v44  ;;  %v3575_v15 = vadd.f32 1.0, %v4803_v7 }
 0x2c5   : > { %4806 = vrcp.f32 %v3575_v15 }
 0x2cd   : > { %v4805_v4 = vpop.eup %4804 }
 0x2ce   : > { %v3613_v36 = vmul.f32 %v4805_v4, %v3506_v6 }
 0x2cf   : > { %v4807_v45 = vpop.eup %4806 }
 0x2d0   : > { %v3614_v47 = vmul.f32 %v4807_v45, %v3509_v22 }
 0x2d2   : > { %v4380_v12 = vpack.c.bf16 %v3614_v47, %v3613_v36 }
 0x2d4   : > { %4420 = vst [vmem:[#allocation3 + $0x20] sm:$0xff] %v4380_v12  }
 0x2db   : > { %v4713_v40 = vld [vmem:[#allocation3 + $0x20] sm:$0xff]  }
 0x2dc   : > { %4533 = vmatmul.mubr.bf16.gmra.mrb[16].mxu1 %v4713_v40 }
 0x2dd   : > { %4536 = vmatprep.mubr.msk.bf16.mxu1 %vm4910_vm3, %v4909_v39 }
 0x2e5   : > { %v4473_v54 = vpop.f32.mrb[20].mxu0 }
 0x2e6   : > { %v4474_v41 = vpop.f32.mrb[21].mxu0 }
 0x2e7   : > { %v4475_v31 = vadd.f32 %v4474_v41, %v4473_v54  ;;  %v4476_v56 = vpop.f32.mrb[22].mxu0 }
 0x2e8   : > { %v4477_v20 = vpop.f32.mrb[23].mxu0 }
 0x2e9   : > { %v3514_v61 = vadd.f32 %v4475_v31, %v6341_v11  ;;  %v4478_v5 = vadd.f32 %v4477_v20, %v4476_v56 }
 0x2eb   : > { %v4256_v13 = vmul.f32 -1.442695, %v3514_v61  ;;  %v3517_v30 = vadd.f32 %v4478_v5, %v6341_v11 }
 0x2ed   : > { %4808 = vpow2.f32 %v4256_v13  ;;  %v4257_v17 = vmul.f32 -1.442695, %v3517_v30 }
 0x2ef   : > { %4810 = vpow2.f32 %v4257_v17 }
 0x2f7   : > { %v4809_v51 = vpop.eup %4808 }
 0x2f8   : > { %v3576_v53 = vadd.f32 1.0, %v4809_v51 }
 0x2f9   : > { %v4811_v38 = vpop.eup %4810 }
 0x2fa   : > { %4812 = vrcp.f32 %v3576_v53  ;;  %v3577_v26 = vadd.f32 1.0, %v4811_v38 }
 0x2fc   : > { %4814 = vrcp.f32 %v3577_v26 }
 0x300   : > { %v4479_v27 = vpop.f32.mrb[24].mxu0 }
 0x301   : > { %v4480_v24 = vpop.f32.mrb[25].mxu0 }
 0x302   : > { %v4481_v23 = vadd.f32 %v4480_v24, %v4479_v27  ;;  %v4482_v57 = vpop.f32.mrb[26].mxu0 }
 0x303   : > { %v4483_v52 = vpop.f32.mrb[27].mxu0 }
 0x304   : > { %v4813_v55 = vpop.eup %4812  ;;  %v3522_v49 = vadd.f32 %v4481_v23, %v6341_v11  ;;  %v4272_v11 = vld [vmem:[%s6470_s5] ss:$0 sm:$0xff] }
 0x305   : > { %v3615_v59 = vmul.f32 %v4813_v55, %v3514_v61 }
 0x306   : > { %v4815_v19 = vpop.eup %4814  ;;  %v4258_v43 = vmul.f32 -1.442695, %v3522_v49 }
 0x307   : > { %v3616_v1 = vmul.f32 %v4815_v19, %v3517_v30 }
 0x308   : > { %4816 = vpow2.f32 %v4258_v43 }
 0x309   : > { %v4385_v25 = vpack.c.bf16 %v3616_v1, %v3615_v59 }
 0x30b   : > { %4421 = vst [vmem:[#allocation3 + $0x28] sm:$0xff] %v4385_v25  }
 0x312   : > { %v4714_v32 = vld [vmem:[#allocation3 + $0x28] sm:$0xff]   ;;  %v4817_v2 = vpop.eup %4816 }
 0x313   : > { %4537 = vmatmul.mubr.bf16.gmra.mrb[20].mxu1 %v4714_v32  ;;  %v3578_v0 = vadd.f32 1.0, %v4817_v2 }
 0x314   : > { %4540 = vmatprep.mubr.msk.bf16.mxu1 %vm4910_vm3, %v4909_v39 }
 0x315   : > { %4818 = vrcp.f32 %v3578_v0 }
 0x31f   : > { %v4819_v18 = vpop.eup %4818 }
 0x320   : > { %v3617_v42 = vmul.f32 %v4819_v18, %v3522_v49 }
 0x322   : > { %v4342_v29 = vpack.c.bf16 %v3617_v42, %v3617_v42 }
 0x324   : > { %3683 = vst [vmem:[#allocation3 + $0x30] sm:$0xf] %v4342_v29 }
 0x32b   : > { %v4715_v16 = vld [vmem:[#allocation3 + $0x30] ss:$0 sps:$4 sm:$0xff]  }
 0x32c   : > { %4541 = vmatmul.mubr.bf16.gmra.mrb[24].mxu1 %v4715_v16 }
 0x36e   : > { %v3842_v33 = vpop.f32.mrb[0].mxu1 }
 0x36f   : > { %v4518_v21 = vpop.f32.mrb[1].mxu1  ;;  %v3843_v39 = vadd.f32 %v4272_v11, %v3842_v33 }
 0x370   : > { %v3845_v28 = vpop.f32.mrb[2].mxu1 }
 0x371   : > { %v3846_v37 = vadd.f32 %v4272_v11, %v3845_v28  ;;  %v4519_v10 = vpop.f32.mrb[3].mxu1 }
 0x373   : > { %v4390_v3 = vpack.c.bf16 %v3846_v37, %v3843_v39 }
 0x375   : > { %4391 = vst [vmem:[%s6399_s20] sm:$0xff] %v4390_v3  }
 0x376   : > { %v3850_v8 = vpop.f32.mrb[4].mxu1 }
 0x377   : > { %v4522_v46 = vpop.f32.mrb[5].mxu1  ;;  %v3851_v58 = vadd.f32 %v4272_v11, %v3850_v8 }
 0x378   : > { %v3853_v62 = vpop.f32.mrb[6].mxu1 }
 0x379   : > { %v3854_v9 = vadd.f32 %v4272_v11, %v3853_v62  ;;  %v4523_v63 = vpop.f32.mrb[7].mxu1 }
 0x37b   : > { %v4395_v34 = vpack.c.bf16 %v3854_v9, %v3851_v58 }
 0x37d   : > { %4422 = vst [vmem:[%s6399_s20 + $0x8] sm:$0xff] %v4395_v34  }
 0x37e   : > { %v3858_v6 = vpop.f32.mrb[8].mxu1 }
 0x37f   : > { %v4526_v14 = vpop.f32.mrb[9].mxu1  ;;  %v3859_v22 = vadd.f32 %v4272_v11, %v3858_v6 }
 0x380   : > { %v3861_v50 = vpop.f32.mrb[10].mxu1 }
 0x381   : > { %v3862_v60 = vadd.f32 %v4272_v11, %v3861_v50  ;;  %v4527_v35 = vpop.f32.mrb[11].mxu1 }
 0x383   : > { %v4400_v48 = vpack.c.bf16 %v3862_v60, %v3859_v22 }
 0x385   : > { %4423 = vst [vmem:[%s6399_s20 + $0x10] sm:$0xff] %v4400_v48  }
 0x386   : > { %v3866_v44 = vpop.f32.mrb[12].mxu1 }
 0x387   : > { %v4530_v7 = vpop.f32.mrb[13].mxu1  ;;  %v3867_v4 = vadd.f32 %v4272_v11, %v3866_v44 }
 0x388   : > { %v3869_v15 = vpop.f32.mrb[14].mxu1 }
 0x389   : > { %v3870_v45 = vadd.f32 %v4272_v11, %v3869_v15  ;;  %v4531_v36 = vpop.f32.mrb[15].mxu1 }
 0x38b   : > { %v4405_v47 = vpack.c.bf16 %v3870_v45, %v3867_v4 }
 0x38d   : > { %4424 = vst [vmem:[%s6399_s20 + $0x18] sm:$0xff] %v4405_v47  }
 0x3af   : > { %v3874_v12 = vpop.f32.mrb[16].mxu1 }
 0x3b0   : > { %v4534_v40 = vpop.f32.mrb[17].mxu1  ;;  %v3875_v41 = vadd.f32 %v4272_v11, %v3874_v12 }
 0x3b1   : > { %v3877_v54 = vpop.f32.mrb[18].mxu1 }
 0x3b2   : > { %v3878_v31 = vadd.f32 %v4272_v11, %v3877_v54  ;;  %v4535_v56 = vpop.f32.mrb[19].mxu1 }
 0x3b4   : > { %v4410_v20 = vpack.c.bf16 %v3878_v31, %v3875_v41 }
 0x3b6   : > { %4425 = vst [vmem:[%s6399_s20 + $0x20] sm:$0xff] %v4410_v20  }
 0x3e6   : > { %v3882_v61 = vpop.f32.mrb[20].mxu1 }
 0x3e7   : > { %v4538_v5 = vpop.f32.mrb[21].mxu1  ;;  %v3883_v30 = vadd.f32 %v4272_v11, %v3882_v61 }
 0x3e8   : > { %v3885_v13 = vpop.f32.mrb[22].mxu1 }
 0x3e9   : > { %v3886_v17 = vadd.f32 %v4272_v11, %v3885_v13  ;;  %v4539_v51 = vpop.f32.mrb[23].mxu1 }
 0x3eb   : > { %v4415_v53 = vpack.c.bf16 %v3886_v17, %v3883_v30 }
 0x3ed   : > { %4426 = vst [vmem:[%s6399_s20 + $0x28] sm:$0xff] %v4415_v53  }
 0x3ff   : > { %v3890_v38 = vpop.f32.mrb[24].mxu1 }
 0x400   : > { %v3891_v26 = vadd.f32 %v4272_v11, %v3890_v38  ;;  %v4542_v55 = vpop.f32.mrb[25].mxu1 }
 0x401   : > { %v3893_v27 = vpop.f32.mrb[26].mxu1 }
 0x402   : > { %v4355_v24 = vpack.c.bf16 %v3891_v26, %v3891_v26  ;;  %v4543_v19 = vpop.f32.mrb[27].mxu1 }
 0x404   : > { %3961 = vst [vmem:[%s6399_s20 + $0x30] sm:$0xf] %v4355_v24 }
 0x405   : > { %4835 = shalt.err (!%p4832_p5)
}
 0x406   : > { %s4836_s16 = scalar_lea.hbm %s6414_s11, 832  ;;  %s4840_s19 = scalar_lea.hbm %s6471_s6, 1664 }
 0x407   : > { %p4837_p6 = scmp.ne.s32.totalorder %s6414_s11, %s4836_s16  ;;  %p4841_p10 = scmp.lt.u32.totalorder %s6414_s11, %s6471_s6 }
 0x408   : > { %p4842_p11 = scmp.lt.u32.totalorder %s4840_s19, %s4836_s16  ;;  %p4844_p13 = scmp.lt.u32.totalorder %s4836_s16, %s6414_s11 }
 0x409   : > { %p4838_p7 = pnand %p4837_p6, %p4989_p4 }
 0x40a   : > { %p4843_p12 = por %p4842_p11, %p4841_p10 }
 0x40b   : > { %p4839_p9 = pneg %p4838_p7 }
 0x40c   : > { %p4845_p0 = por %p4844_p13, %p4843_p12 }
 0x40e   : > { %p4846_p1 = pnand %p4845_p0, %p4839_p9 }
 0x410   : > { %4849 = shalt.err (!%p4846_p1)
}
 0x411   : > { %s4912_s30 = smov 64   ;;  %s4913_s8 = smov 4  }
 0x412   : > { %4597 = dma.vmem_to_hbm [thread:$0]  (%p4989_p4), %s6409_s28, 832, %s6414_s11, %s6419_s24, %s4912_s30, %s4912_s30, %s4913_s8  }
 0x413 PF: > { %p4603_p2 = scmp.ge.s32.totalorder %s4900_s26, 2  ;;  %s3992_s12 = sand.u32 1, %s4880_s21  }
 0x414   : > { %s3993_s13 = scalar_lea.sflag [#allocation5], %s3992_s12 }
 0x415   : > { %p4600_p3 = pnand %p4603_p2, %p4996_p8 }
 0x417   : > { %4875 = dma.done.wait (!%p4600_p3), %s3993_s13, 832  }
 0x418   : > { %4877 = vsyncadd (!%p4600_p3), %s3993_s13, 4294966464  ;;  %s19_s26 = sadd.s32 1, %s4900_s26   ;;  %s6496_s21 = smov %s4884_s22 }
 0x419   : > { %p16_p5 = scmp.ge.s32.totalorder %s19_s26, 4   ;;  %s6497_s22 = smov %s4888_s23 }
 0x41a   : > { %s6498_s23 = smov %s5002_s10  ;;  %s6499_s24 = smov %s4896_s25 }
 0x41b   : > { %s6500_s25 = smov %s6502_s29  ;;  %18 = sbr.rel (!%p16_p5) target bundleno = 4 (0x4), region = 89 }
 0x422   :  { %3998 = vsyncpa [#allocation5], 1 }
 0x423   :  { %4000 = vsyncpa [#allocation5 + $0x1], 1 }

// kernel: tpu_custom_call.1
= control target key start
LH: loop header
LB: loop body
LE: loop exit
PB: predicated region body
PF: predicated region fallthrough
CT: control target
= control target key end

     0   :  { %11 = vsyncpa [#allocation5], 0  ;;  %s6465_s0 = inlined_call_operand.vmem [shape: f32[208,1], index: 0, kind: input, shape index: {}]   ;;  %s6466_s1 = inlined_call_operand.vmem [shape: f32[1,128], index: 1, kind: input, shape index: {}]   ;;  %s6467_s2 = inlined_call_operand.vmem [shape: bf16[256,128], index: 2, kind: input, shape index: {}]   ;;  %s6468_s3 = inlined_call_operand.vmem [shape: f32[1,128], index: 3, kind: input, shape index: {}]   ;;  %s6469_s4 = inlined_call_operand.vmem [shape: bf16[128,128], index: 4, kind: input, shape index: {}]   ;;  %s6470_s5 = inlined_call_operand.vmem [shape: f32[1,128], index: 5, kind: input, shape index: {}]   ;;  %s6471_s6 = inlined_call_operand.hbm [shape: bf16[208,128], index: 6, kind: output, shape index: {}]  }
   0x1   :  { %13 = vsyncpa [#allocation5 + $0x1], 0  ;;  %s4949_s21 = smov 0   ;;  %s4951_s22 = smov 0  }
   0x2   :  { %s4953_s23 = smov 0   ;;  %s4955_s24 = smov 0  }
   0x3   :  { %s4957_s25 = smov 0   ;;  %s4959_s26 = smov 0  }
   0x4 LB: > { %s4076_s27 = sadd.s32 4294967295, %s4900_s26   ;;  %s4077_s28 = sadd.s32 4294967294, %s4900_s26   ;;  %s4900_s26 = sphi %s4959_s26, %s19_s26   ;;  %s4896_s25 = sphi %s4957_s25, %s6500_s25   ;;  %s4892_s24 = sphi %s4955_s24, %s6499_s24   ;;  %s4888_s23 = sphi %s4953_s23, %s6498_s23   ;;  %s4884_s22 = sphi %s4951_s22, %s6497_s22   ;;  %s4880_s21 = sphi %s4949_s21, %s6496_s21  }
   0x5   : > { %s31_s29 = sadd.s32 1, %s4896_s25  ;;  %s181_s30 = sadd.s32 1, %s4888_s23 }
   0x6   : > { %p33_p0 = scmp.ge.s32.totalorder %s31_s29, 2  ;;  %p191_p1 = scmp.ne.s32.totalorder %s4888_s23, %s4884_s22 }
   0x7   : > { %p192_p2 = scmp.eq.s32.totalorder %s4076_s27, 1  ;;  %p197_p3 = scmp.ne.s32.totalorder %s4884_s22, %s4880_s21 }
   0x8   : > { %s6502_s29 = smov (%p33_p0, %s31_s29), 0  ;;  %p198_p5 = scmp.eq.s32.totalorder %s4077_s28, 1 }
   0x9   : > { %p4989_p4 = por %p192_p2, %p191_p1  ;;  %s176_s8 = ssub.s32 %s4896_s25, %s6502_s29 }
   0xa   : > { %p4082_p6 = scmp.ge.s32.totalorder %s4900_s26, 1  ;;  %p179_p7 = scmp.eq.s32.totalorder %s176_s8, 0 }
   0xb   : > { %p4996_p8 = por %p198_p5, %p197_p3  ;;  %p247_p9 = scmp.lt.s32.totalorder %s4900_s26, 3 }
   0xc   : > { %s5002_s10 = scalar_select %p179_p7, %s4888_s23, %s181_s30  }
   0xd   : > { %p248_p10 = pnand %p4082_p6, %p247_p9 }
   0xe   : > { %s284_s11 = smul.u32 (!%p248_p10), 13, %s4892_s24  ;;  %v4902_v0 = vmov (!%p248_p10), 0   ;;  %v5011_v14 = vld [vmem:[%s6466_s1] ss:$0 sm:$0xff] (!%p248_p10)  ;;  %v4903_v49 = vmov (!%p248_p10), 683565275  }
   0xf   : > { %251 = sbr.rel (%p248_p10) target bundleno = 1043 (0x413), region = 44  ;;  %4664 = vset.pattern.permute.xlu1 (!%p248_p10), %v4902_v0  ;;  %4663 = vset.pattern.permute.xlu0 (!%p248_p10), %v4902_v0  ;;  %v4904_v51 = vmov (!%p248_p10), 2475754826   ;;  %v4905_v53 = vmov (!%p248_p10), 2131351028   ;;  %s281_s16 = sand.u32 (!%p248_p10), 1, %s4884_s22  }
  0x10   : > { %p285_p11 = scmp.lt.s32.totalorder (!%p248_p10), %s284_s11, 25  ;;  %v4906_v55 = vmov (!%p248_p10), 2102212464   ;;  %v4907_v57 = vmov (!%p248_p10), 920167782   ;;  %s4544_s19 = smul.u32 (!%p248_p10), 52, %s281_s16 }
  0x11   : > { %s4356_s27 = smul.u32 (!%p248_p10), 832, %s4892_s24  ;;  %s6419_s24 = scalar_lea.sflag (!%p248_p10), [#allocation5], %s281_s16 }
  0x12   : > { %s6399_s20 = scalar_lea.vmem (!%p248_p10), [#allocation4], %s4544_s19  ;;  %s4911_s13 = smov (!%p248_p10), [#allocation4]  }
  0x13   : > { %s3977_s28 = sshll.u32 (!%p248_p10), %s6399_s20, 4  ;;  %s4826_s14 = sshll.u32 (!%p248_p10), %s4911_s13, 4  ;;  %s6409_s28 = int_to_ptr.vmem [resolvable:$true] %s3977_s28  ;;  %s4827_s14 = int_to_ptr.vmem [resolvable:$false] %s4826_s14 }
  0x14   : > { %p4829_p1 = scmp.lt.s32.totalorder (!%p248_p10), %s6409_s28, %s4827_s14 }
  0x16   : > { %s6504_s11 = smov (!%p285_p11, %s284_s11), 25 }
  0x17   : > { %s4083_s12 = sshll.u32 %s6504_s11, 3  ;;  %s6414_s11 = scalar_lea.hbm %s6471_s6, %s4356_s27 }
  0x18   : > { %s288_s15 = scalar_lea.vmem %s6465_s0, %s4083_s12  ;;  %s4822_s12 = scalar_lea.vmem %s6409_s28, 832 }
  0x19   : > { %v305_v1 = vld [vmem:[%s288_s15 + $0x10] sm:$0xff]  ;;  %v303_v2 = vld [vmem:[%s288_s15] sm:$0xff]  ;;  %v306_v3 = vld [vmem:[%s288_s15 + $0x18] sm:$0xff]  ;;  %p4823_p12 = scmp.ne.s32.totalorder %s6409_s28, %s4822_s12 }
  0x1a   : > { %329 = vperm.xlu1 %4664, %v305_v1   ;;  %319 = vperm.xlu0 %4663, %v303_v2   ;;  %v304_v4 = vld [vmem:[%s288_s15 + $0x8] sm:$0xff]  ;;  %v307_v6 = vld [vmem:[%s288_s15 + $0x20] sm:$0xff]  ;;  %v310_v7 = vld [vmem:[%s288_s15 + $0x38] sm:$0xff]  ;;  %v4908_v1 = vmov 1326507024  }
  0x1b   : > { %v308_v5 = vld [vmem:[%s288_s15 + $0x28] sm:$0xff]  ;;  %v309_v8 = vld [vmem:[%s288_s15 + $0x30] sm:$0xff]  ;;  %v311_v10 = vld [vmem:[%s288_s15 + $0x40] sm:$0xff]  ;;  %p4824_p13 = pnand %p4823_p12, %p4989_p4 }
  0x1c   : > { %v312_v9 = vld [vmem:[%s288_s15 + $0x48] sm:$0xff]  ;;  %v314_v11 = vld [vmem:[%s288_s15 + $0x58] sm:$0xff]  ;;  %v313_v12 = vld [vmem:[%s288_s15 + $0x50] sm:$0xff] }
  0x1d   : > { %v315_v13 = vld [vmem:[%s288_s15 + $0x60] sm:$0xff]  ;;  %p4825_p0 = pneg %p4824_p13  ;;  %s4828_s15 = scalar_lea.vmem %s4827_s14, 1664 }
  0x1e   : > { %334 = vperm.xlu1 %4664, %v306_v3   ;;  %324 = vperm.xlu0 %4663, %v304_v4   ;;  %p4830_p2 = scmp.lt.s32.totalorder %s4828_s15, %s4822_s12 }
  0x20   : > { %p4831_p3 = por %p4830_p2, %p4829_p1 }
  0x22   : > { %344 = vperm.xlu1 %4664, %v308_v5   ;;  %339 = vperm.xlu0 %4663, %v307_v6   ;;  %p4832_p5 = pnand %p4831_p3, %p4825_p0 }
  0x26   : > { %354 = vperm.xlu1 %4664, %v310_v7   ;;  %349 = vperm.xlu0 %4663, %v309_v8  }
  0x2a   : > { %364 = vperm.xlu1 %4664, %v312_v9   ;;  %359 = vperm.xlu0 %4663, %v311_v10  }
  0x2e   : > { %374 = vperm.xlu1 %4664, %v314_v11   ;;  %369 = vperm.xlu0 %4663, %v313_v12  }
  0x32   : > { %379 = vperm.xlu0 %4663, %v315_v13  }
  0x99   : > { %v330_v15 = vpop.permute.xlu1 %329  ;;  %v320_v16 = vpop.permute.xlu0 %319 }
  0x9a   : > { %v5014_v17 = vmul.f32 %v5011_v14, %v330_v15  ;;  %v5017_v18 = vmul.f32 %v5011_v14, %v320_v16 }
  0x9c   : > { %v607_v19 = vand.u32 2147483647, %v5014_v17  ;;  %v610_v20 = vand.u32 2139095040, %v5014_v17  ;;  %v401_v21 = vand.u32 2147483647, %v5017_v18  ;;  %v404_v22 = vand.u32 2139095040, %v5017_v18 }
  0x9d   : > { %v335_v23 = vpop.permute.xlu1 %334  ;;  %v325_v33 = vpop.permute.xlu0 %324  ;;  %vm609_vm14 = vcmp.lt.s32.totalorder %v5014_v17, 0  ;;  %vm403_vm15 = vcmp.lt.s32.totalorder %v5017_v18, 0 }
  0x9e   : > { %v611_v24 = vshrl.u32 %v610_v20, 23  ;;  %v5024_v25 = vmul.f32 %v5011_v14, %v335_v23  ;;  %v614_v26 = vand.u32 8388607, %v607_v19  ;;  %v405_v27 = vshrl.u32 %v404_v22, 23 }
  0x9f   : > { %v408_v28 = vand.u32 8388607, %v401_v21  ;;  %v5032_v39 = vmul.f32 %v5011_v14, %v325_v33  ;;  %vm5121_vm13 = vcmp.le.f32.partialorder %v607_v19, 0.7853982 }
  0xa0   : > { %v4093_v29 = vadd.s32 4294967169, %v611_v24  ;;  %v4085_v30 = vadd.s32 4294967169, %v405_v27  ;;  %v713_v31 = vand.u32 2139095040, %v5024_v25  ;;  %v615_v34 = vor.u32 8388608, %v614_v26 }
  0xa1   : > { %v409_v35 = vor.u32 8388608, %v408_v28  ;;  %v710_v43 = vand.u32 2147483647, %v5024_v25 }
  0xa2   : > { %v617_v32 = vadd.s32 1, %v4093_v29  ;;  %v411_v36 = vadd.s32 1, %v4085_v30  ;;  %v714_v37 = vshrl.u32 %v713_v31, 23  ;;  %v5035_v44 = vshll.u32 %v615_v34, 8 }
  0xa3   : > { %v5039_v46 = vshll.u32 %v409_v35, 8 }
  0xa4   : > { %vm618_vm0 = vcmp.gt.s32.totalorder %v617_v32, 0  ;;  %vm412_vm1 = vcmp.gt.s32.totalorder %v411_v36, 0  ;;  %v4097_v47 = vadd.s32 4294967169, %v714_v37 }
  0xa5   : > { %v619_v38 = vsel %vm618_vm0, %v617_v32, 0  ;;  %v413_v42 = vsel %vm412_vm1, %v411_v36, 0  ;;  %vm5152_vm1 = vcmp.le.f32.partialorder %v401_v21, 0.7853982 }
  0xa6   : > { %v620_v40 = vshrl.u32 %v619_v38, 5  ;;  %v621_v41 = vand.u32 31, %v619_v38  ;;  %v5037_v45 = vand.u32 31, %v413_v42  ;;  %v5046_v59 = vshrl.u32 %v413_v42, 5 }
  0xa7   : > { %v720_v9 = vadd.s32 1, %v4097_v47 }
  0xa8   : > { %v622_v48 = vsub.s32 32, %v621_v41  ;;  %v624_v50 = vshll.u32 %v4903_v49, %v621_v41  ;;  %v627_v52 = vshll.u32 %v4904_v51, %v621_v41  ;;  %v630_v54 = vshll.u32 %v4905_v53, %v621_v41 }
  0xa9   : > { %v633_v56 = vshll.u32 %v4906_v55, %v621_v41  ;;  %v636_v58 = vshll.u32 %v4907_v57, %v621_v41  ;;  %vm639_vm2 = vcmp.lt.s32.totalorder %v620_v40, 1  ;;  %vm641_vm3 = vcmp.lt.s32.totalorder %v620_v40, 3 }
  0xaa   : > { %v623_v60 = vshrl.u32 %v4903_v49, %v622_v48  ;;  %v625_v61 = vshrl.u32 %v4904_v51, %v622_v48  ;;  %v628_v62 = vshrl.u32 %v4905_v53, %v622_v48  ;;  %v631_v63 = vshrl.u32 %v4906_v55, %v622_v48 }
  0xab   : > { %v634_v0 = vshrl.u32 %v4907_v57, %v622_v48  ;;  %v637_v2 = vshrl.u32 %v4908_v1, %v622_v48  ;;  %vm642_vm4 = vcmp.lt.s32.totalorder %v620_v40, 4  ;;  %v416_v6 = vsub.s32 32, %v5037_v45 }
  0xac   : > { %v626_v3 = vor.u32 %v625_v61, %v624_v50  ;;  %v629_v4 = vor.u32 %v628_v62, %v627_v52  ;;  %v632_v5 = vor.u32 %v631_v63, %v630_v54  ;;  %vm640_vm5 = vcmp.lt.s32.totalorder %v620_v40, 2 }
  0xad   : > { %v635_v7 = vor.u32 %v634_v0, %v633_v56  ;;  %v638_v8 = vor.u32 %v637_v2, %v636_v58  ;;  %v418_v22 = vshll.u32 %v4903_v49, %v5037_v45  ;;  %v419_v26 = vshrl.u32 %v4904_v51, %v416_v6 }
  0xae   : > { %v643_v10 = vsel %vm639_vm2, %v623_v60, %v626_v3  ;;  %v644_v11 = vsel %vm642_vm4, %v632_v5, 2102212464  ;;  %v647_v12 = vsel %vm639_vm2, %v626_v3, %v629_v4  ;;  %v651_v13 = vsel %vm639_vm2, %v629_v4, %v632_v5 }
  0xaf   : > { %v645_v15 = vsel %vm641_vm3, %v629_v4, %v644_v11  ;;  %v648_v16 = vsel %vm642_vm4, %v635_v7, 920167782  ;;  %v652_v20 = vsel %vm642_vm4, %v638_v8, 1326507024  ;;  %v421_v27 = vshll.u32 %v4904_v51, %v5037_v45 }
  0xb0   : > { %v649_v23 = vsel %vm641_vm3, %v632_v5, %v648_v16  ;;  %v653_v24 = vsel %vm641_vm3, %v635_v7, %v652_v20  ;;  %v646_v28 = vsel %vm640_vm5, %v643_v10, %v645_v15  ;;  %v422_v31 = vshrl.u32 %v4905_v53, %v416_v6 }
  0xb1   : > { %v650_v29 = vsel %vm640_vm5, %v647_v12, %v649_v23  ;;  %v654_v30 = vsel %vm640_vm5, %v651_v13, %v653_v24  ;;  %v420_v36 = vor.u32 %v419_v26, %v418_v22  ;;  %v424_v38 = vshll.u32 %v4905_v53, %v5037_v45 }
  0xb2   : > { %v5071_v32 = vmul.u32.u64.low %v5035_v44, %v654_v30  ;;  %v5072_v33 = vmul.u32.u64.high %v5035_v44, %v654_v30, %v5071_v32  ;;  %v5075_v34 = vmul.u32.u64.low %v5035_v44, %v650_v29  ;;  %v5076_v35 = vmul.u32.u64.high %v5035_v44, %v650_v29, %v5075_v34 }
  0xb3   : > { %v423_v37 = vor.u32 %v422_v31, %v421_v27  ;;  %v425_v41 = vshrl.u32 %v4906_v55, %v416_v6  ;;  %v417_v40 = vshrl.u32 %v4903_v49, %v416_v6  ;;  %v427_v42 = vshll.u32 %v4906_v55, %v5037_v45 }
  0xb4   : > { %v428_v47 = vshrl.u32 %v4907_v57, %v416_v6  ;;  %v431_v48 = vshrl.u32 %v4908_v1, %v416_v6  ;;  %v662_v50 = vmul.u32 %v5035_v44, %v646_v28  ;;  %v430_v54 = vshll.u32 %v4907_v57, %v5037_v45 }
  0xb5   : > { %v426_v52 = vor.u32 %v425_v41, %v424_v38  ;;  %vm433_vm6 = vcmp.lt.s32.totalorder %v5046_v59, 1  ;;  %vm664_vm7 = vc.u32 %v5072_v33, %v5075_v34  ;;  %v665_v56 = vadd.s32 1, %v5076_v35 }
  0xb6   : > { %v429_v58 = vor.u32 %v428_v47, %v427_v42  ;;  %vm434_vm8 = vcmp.lt.s32.totalorder %v5046_v59, 2  ;;  %v432_v60 = vor.u32 %v431_v48, %v430_v54  ;;  %vm435_vm9 = vcmp.lt.s32.totalorder %v5046_v59, 3 }
  0xb7   : > { %vm436_vm10 = vcmp.lt.s32.totalorder %v5046_v59, 4  ;;  %v441_v44 = vsel %vm433_vm6, %v420_v36, %v423_v37  ;;  %v666_v61 = vsel %vm664_vm7, %v665_v56, %v5076_v35  ;;  %v445_v63 = vsel %vm433_vm6, %v423_v37, %v426_v52 }
  0xb8   : > { %v438_v62 = vsel %vm436_vm10, %v426_v52, 2102212464  ;;  %v442_v45 = vsel %vm436_vm10, %v429_v58, 920167782  ;;  %v667_v0 = vadd.s32 %v666_v61, %v662_v50  ;;  %v437_v2 = vsel %vm433_vm6, %v417_v40, %v420_v36 }
  0xb9   : > { %v443_v3 = vsel %vm435_vm9, %v426_v52, %v442_v45  ;;  %v446_v4 = vsel %vm436_vm10, %v432_v60, 1326507024  ;;  %v439_v5 = vsel %vm435_vm9, %v423_v37, %v438_v62  ;;  %vm721_vm11 = vcmp.gt.s32.totalorder %v720_v9, 0 }
  0xba   : > { %v444_v6 = vsel %vm434_vm8, %v441_v44, %v443_v3  ;;  %v447_v7 = vsel %vm435_vm9, %v429_v58, %v446_v4  ;;  %v668_v8 = vadd.s32 536870912, %v667_v0  ;;  %v440_v20 = vsel %vm434_vm8, %v437_v2, %v439_v5 }
  0xbb   : > { %v448_v10 = vsel %vm434_vm8, %v445_v63, %v447_v7  ;;  %v5103_v11 = vmul.u32.u64.low %v5039_v46, %v444_v6  ;;  %v5104_v12 = vmul.u32.u64.high %v5039_v46, %v444_v6, %v5103_v11  ;;  %v722_v22 = vsel %vm721_vm11, %v720_v9, 0 }
  0xbc   : > { %v5107_v13 = vmul.u32.u64.low %v5039_v46, %v448_v10  ;;  %v5108_v15 = vmul.u32.u64.high %v5039_v46, %v448_v10, %v5107_v13  ;;  %v669_v16 = vshrl.u32 %v668_v8, 30  ;;  %v717_v23 = vand.u32 8388607, %v710_v43 }
  0xbd   : > { %v459_v26 = vadd.s32 1, %v5104_v12  ;;  %v507_v27 = vand.u32 2139095040, %v5032_v39  ;;  %v456_v28 = vmul.u32 %v5039_v46, %v440_v20  ;;  %v724_v29 = vand.u32 31, %v722_v22 }
  0xbe   : > { %v670_v24 = vshll.u32 %v669_v16, 30  ;;  %vm458_vm12 = vc.u32 %v5108_v15, %v5103_v11  ;;  %v718_v59 = vor.u32 8388608, %v717_v23  ;;  %v693_v36 = vsub.s32 4, %v669_v16 }
  0xbf   : > { %v460_v31 = vsel %vm458_vm12, %v459_v26, %v5104_v12  ;;  %v508_v9 = vshrl.u32 %v507_v27, 23  ;;  %v725_v38 = vsub.s32 32, %v724_v29  ;;  %v504_v40 = vand.u32 2147483647, %v5032_v39 }
  0xc0   : > { %v671_v30 = vsub.s32 %v667_v0, %v670_v24  ;;  %v461_v32 = vadd.s32 %v460_v31, %v456_v28  ;;  %v663_v42 = vadd.s32 %v5075_v34, %v5072_v33  ;;  %v5129_v48 = vshrl.u32 %v722_v22, 5 }
  0xc1   : > { %v5131_v50 = vshll.u32 %v718_v59, 8  ;;  %v727_v54 = vshll.u32 %v4903_v49, %v724_v29  ;;  %v730_v19 = vshll.u32 %v4904_v51, %v724_v29  ;;  %v5135_v56 = vadd.s32 4294967169, %v508_v9 }
  0xc2   : > { %v673_v35 = vsub.s32 0, %v671_v30  ;;  %v462_v37 = vadd.s32 536870912, %v461_v32  ;;  %v694_v58 = vsel %vm609_vm14, %v693_v36, %v669_v16  ;;  %v728_v33 = vshrl.u32 %v4904_v51, %v725_v38 }
  0xc3   : > { %v731_v34 = vshrl.u32 %v4905_v53, %v725_v38  ;;  %v733_v61 = vshll.u32 %v4905_v53, %v724_v29  ;;  %v736_v62 = vshll.u32 %v4906_v55, %v724_v29  ;;  %v737_v45 = vshrl.u32 %v4907_v57, %v725_v38 }
  0xc4   : > { %v4094_v46 = vmin.u32 %v673_v35, %v671_v30  ;;  %v463_v47 = vshrl.u32 %v462_v37, 30  ;;  %v734_v0 = vshrl.u32 %v4906_v55, %v725_v38  ;;  %v739_v2 = vshll.u32 %v4907_v57, %v724_v29 }
  0xc5   : > { %v740_v3 = vshrl.u32 %v4908_v1, %v725_v38  ;;  %v457_v5 = vadd.s32 %v5103_v11, %v5108_v15  ;;  %v726_v6 = vshrl.u32 %v4903_v49, %v725_v38  ;;  %v5160_v7 = vand.u32 8388607, %v504_v40 }
  0xc6   : > { %v675_v52 = vclz %v4094_v46  ;;  %v464_v60 = vshll.u32 %v463_v47, 30  ;;  %v696_v10 = vsel %vm5121_vm13, 0, %v694_v58  ;;  %v729_v13 = vor.u32 %v728_v33, %v727_v54 }
  0xc7   : > { %v487_v20 = vsub.s32 4, %v463_v47  ;;  %v738_v22 = vor.u32 %v737_v45, %v736_v62  ;;  %v732_v11 = vor.u32 %v731_v34, %v730_v19  ;;  %v735_v15 = vor.u32 %v734_v0, %v733_v61 }
  0xc8   : > { %v4095_v44 = vadd.s32 4294967294, %v675_v52  ;;  %v5145_v63 = vsub.s32 %v461_v32, %v464_v60  ;;  %v741_v24 = vor.u32 %v740_v3, %v739_v2  ;;  %vm742_vm2 = vcmp.lt.s32.totalorder %v5129_v48, 1 }
  0xc9   : > { %vm743_vm3 = vcmp.lt.s32.totalorder %v5129_v48, 2  ;;  %vm744_vm4 = vcmp.lt.s32.totalorder %v5129_v48, 3  ;;  %vm745_vm5 = vcmp.lt.s32.totalorder %v5129_v48, 4  ;;  %v488_v59 = vsel %vm403_vm15, %v487_v20, %v463_v47 }
  0xca   : > { %vm4096_vm0 = vcmp.lt.s32.totalorder %v4095_v44, 0  ;;  %v467_v12 = vsub.s32 0, %v5145_v63  ;;  %v751_v35 = vsel %vm745_vm5, %v738_v22, 920167782  ;;  %v746_v36 = vsel %vm742_vm2, %v726_v6, %v729_v13 }
  0xcb   : > { %v678_v8 = vsel %vm4096_vm0, 0, %v4095_v44  ;;  %v754_v37 = vsel %vm742_vm2, %v732_v11, %v735_v15  ;;  %v747_v46 = vsel %vm745_vm5, %v735_v15, 2102212464  ;;  %v755_v52 = vsel %vm745_vm5, %v741_v24, 1326507024 }
  0xcc   : > { %v679_v16 = vsub.s32 32, %v678_v8  ;;  %v683_v21 = vsub.s32 4294967266, %v678_v8  ;;  %v4086_v23 = vmin.u32 %v467_v12, %v5145_v63  ;;  %v680_v26 = vshll.u32 %v671_v30, %v678_v8 }
  0xcd   : > { %v750_v30 = vsel %vm742_vm2, %v729_v13, %v732_v11  ;;  %v490_v19 = vsel %vm5152_vm1, 0, %v488_v59  ;;  %v756_v58 = vsel %vm744_vm4, %v738_v22, %v755_v52  ;;  %v748_v62 = vsel %vm744_vm4, %v732_v11, %v747_v46 }
  0xce   : > { %v681_v27 = vshrl.u32 %v663_v42, %v679_v16  ;;  %v684_v28 = vadd.s32 127, %v683_v21  ;;  %v469_v29 = vclz %v4086_v23  ;;  %v752_v42 = vsel %vm744_vm4, %v735_v15, %v751_v35 }
  0xcf   : > { %v753_v33 = vsel %vm743_vm3, %v750_v30, %v752_v42  ;;  %v757_v34 = vsel %vm743_vm3, %v754_v37, %v756_v58  ;;  %v514_v45 = vadd.s32 1, %v5135_v56  ;;  %v2107_v20 = vadd.s32 3, %v696_v10 }
  0xd0   : > { %v682_v31 = vor.u32 %v681_v27, %v680_v26  ;;  %v685_v32 = vshll.u32 %v684_v28, 23  ;;  %v4087_v9 = vadd.s32 4294967294, %v469_v29  ;;  %v749_v56 = vsel %vm743_vm3, %v746_v36, %v748_v62  ;;  %v345_v28 = vpop.permute.xlu1 %344 }
  0xd1   : > { %v5187_v3 = vmul.u32.u64.low %v5131_v50, %v757_v34  ;;  %v5188_v6 = vmul.u32.u64.high %v5131_v50, %v757_v34, %v5187_v3  ;;  %v5191_v13 = vmul.u32.u64.low %v5131_v50, %v753_v33  ;;  %v5192_v16 = vmul.u32.u64.high %v5131_v50, %v753_v33, %v5191_v13 }
  0xd2   : > { %v686_v38 = vor.u32 4788187, %v685_v32  ;;  %v689_v54 = vcvt.s32.f32 %v682_v31  ;;  %vm4088_vm6 = vcmp.lt.s32.totalorder %v4087_v9, 0  ;;  %vm515_vm7 = vcmp.gt.s32.totalorder %v514_v45, 0 }
  0xd3   : > { %v472_v60 = vsel %vm4088_vm6, 0, %v4087_v9  ;;  %v5199_v15 = vand.u32 3, %v696_v10  ;;  %vm767_vm8 = vc.u32 %v5188_v6, %v5191_v13  ;;  %v768_v27 = vadd.s32 1, %v5192_v16 }
  0xd4   : > { %v687_v47 = vand.u32 2147483647, %v686_v38  ;;  %v473_v44 = vsub.s32 32, %v472_v60  ;;  %v477_v61 = vsub.s32 4294967266, %v472_v60  ;;  %v474_v2 = vshll.u32 %v5145_v63, %v472_v60 }
  0xd5   : > { %v516_v63 = vsel %vm515_vm7, %v514_v45, 0  ;;  %v512_v48 = vor.u32 8388608, %v5160_v7  ;;  %v5208_v29 = vand.u32 3, %v2107_v20  ;;  %v765_v10 = vmul.u32 %v5131_v50, %v749_v56 }
  0xd6   : > { %v690_v0 = vmul.f32 %v689_v54, %v687_v47  ;;  %v475_v8 = vshrl.u32 %v457_v5, %v473_v44  ;;  %v478_v12 = vadd.s32 127, %v477_v61  ;;  %v1899_v5 = vadd.s32 3, %v490_v19 }
  0xd7   : > { %v518_v31 = vand.u32 31, %v516_v63  ;;  %v769_v35 = vsel %vm767_vm8, %v768_v27, %v5192_v16  ;;  %v5215_v36 = vmul.f32 %v5011_v14, %v345_v28  ;;  %v5217_v7 = vand.u32 3, %v490_v19 }
  0xd8   : > { %v691_v21 = vxor.u32 2147483648, %v690_v0  ;;  %v476_v22 = vor.u32 %v475_v8, %v474_v2  ;;  %v479_v23 = vshll.u32 %v478_v12, 23  ;;  %v770_v9 = vadd.s32 %v769_v35, %v765_v10 }
  0xd9   : > { %v5212_v41 = vsub.s32 32, %v518_v31  ;;  %v5219_v37 = vand.u32 3, %v1899_v5  ;;  %v5221_v38 = vshll.u32 %v512_v48, 8  ;;  %vm705_vm9 = vcmp.eq.s32.totalorder %v5199_v15, 2 }
  0xda   : > { %v692_v11 = vsel %vm609_vm14, %v691_v21, %v690_v0  ;;  %v480_v26 = vor.u32 4788187, %v479_v23  ;;  %v483_v59 = vcvt.s32.f32 %v476_v22  ;;  %vm2113_vm10 = vcmp.eq.s32.totalorder %v5208_v29, 2 }
  0xdb   : > { %v695_v24 = vsel %vm5121_vm13, %v5014_v17, %v692_v11  ;;  %v771_v50 = vadd.s32 536870912, %v770_v9  ;;  %v5225_v46 = vshrl.u32 %v516_v63, 5  ;;  %v522_v42 = vshrl.u32 %v4904_v51, %v5212_v41 }
  0xdc   : > { %4716 = vcosq.f32 %v695_v24  ;;  %v481_v32 = vand.u32 2147483647, %v480_v26  ;;  %v530_v52 = vshll.u32 %v4906_v55, %v518_v31  ;;  %vm702_vm11 = vcmp.eq.s32.totalorder %v5199_v15, 0 }
  0xdd   : > { %4718 = vsinq.f32 %v695_v24  ;;  %vm2110_vm12 = vcmp.eq.s32.totalorder %v5208_v29, 0  ;;  %v525_v19 = vshrl.u32 %v4905_v53, %v5212_v41  ;;  %v528_v58 = vshrl.u32 %v4906_v55, %v5212_v41 }
  0xde   : > { %v484_v30 = vmul.f32 %v483_v59, %v481_v32  ;;  %v531_v47 = vshrl.u32 %v4907_v57, %v5212_v41  ;;  %vm701_vm13 = vcmp.lt.s32.totalorder %v5199_v15, 2  ;;  %vm2109_vm14 = vcmp.lt.s32.totalorder %v5208_v29, 2 }
  0xdf   : > { %vm712_vm0 = vcmp.lt.s32.totalorder %v5024_v25, 0  ;;  %v772_v60 = vshrl.u32 %v771_v50, 30  ;;  %v521_v33 = vshll.u32 %v4903_v49, %v518_v31  ;;  %v916_v34 = vand.u32 2147483647, %v5215_v36 }
  0xe0   : > { %v485_v54 = vxor.u32 2147483648, %v484_v30  ;;  %v919_v44 = vand.u32 2139095040, %v5215_v36  ;;  %vm699_vm2 = vweird.f32 %v5014_v17  ;;  %v524_v62 = vshll.u32 %v4904_v51, %v518_v31 }
  0xe1   : > { %v527_v45 = vshll.u32 %v4905_v53, %v518_v31  ;;  %v532_v0 = vor.u32 %v531_v47, %v530_v52  ;;  %v773_v3 = vshll.u32 %v772_v60, 30  ;;  %v523_v8 = vor.u32 %v522_v42, %v521_v33 }
  0xe2   : > { %v486_v61 = vsel %vm403_vm15, %v485_v54, %v484_v30  ;;  %v534_v12 = vshrl.u32 %v4908_v1, %v5212_v41  ;;  %v526_v16 = vor.u32 %v525_v19, %v524_v62  ;;  %vm539_vm3 = vcmp.lt.s32.totalorder %v5225_v46, 4 }
  0xe3   : > { %v489_v2 = vsel %vm5152_vm1, %v5017_v18, %v486_v61  ;;  %v529_v21 = vor.u32 %v528_v58, %v527_v45  ;;  %vm5257_vm15 = vcmp.le.f32.partialorder %v710_v43, 0.7853982  ;;  %v5261_v4 = vsub.s32 %v770_v9, %v773_v3 }
  0xe4   : > { %4720 = vcosq.f32 %v489_v2  ;;  %v533_v23 = vshll.u32 %v4907_v57, %v518_v31  ;;  %v545_v56 = vsel %vm539_vm3, %v532_v0, 920167782  ;;  %v796_v5 = vsub.s32 4, %v772_v60 }
  0xe5   : > { %4722 = vsinq.f32 %v489_v2  ;;  %vm536_vm1 = vcmp.lt.s32.totalorder %v5225_v46, 1  ;;  %vm537_vm4 = vcmp.lt.s32.totalorder %v5225_v46, 2  ;;  %v776_v43 = vsub.s32 0, %v5261_v4 }
  0xe6   : > { %v4717_v20 = vpop.eup %4716  ;;  %v535_v26 = vor.u32 %v534_v12, %v533_v23  ;;  %vm538_vm5 = vcmp.lt.s32.totalorder %v5225_v46, 3  ;;  %vm499_vm6 = vcmp.eq.s32.totalorder %v5217_v7, 2  ;;  %vm1905_vm7 = vcmp.eq.s32.totalorder %v5219_v37, 2 }
  0xe7   : > { %v4719_v63 = vpop.eup %4718  ;;  %v706_v11 = vxor.u32 2147483648, %v4717_v20  ;;  %v544_v28 = vsel %vm536_vm1, %v523_v8, %v526_v16  ;;  %v546_v10 = vsel %vm538_vm5, %v529_v21, %v545_v56  ;;  %vm496_vm8 = vcmp.eq.s32.totalorder %v5217_v7, 0 }
  0xe8   : > { %v703_v24 = vxor.u32 2147483648, %v4719_v63  ;;  %v4098_v59 = vmin.u32 %v776_v43, %v5261_v4  ;;  %v520_v35 = vshrl.u32 %v4903_v49, %v5212_v41  ;;  %v797_v50 = vsel %vm712_vm0, %v796_v5, %v772_v60 }
  0xe9   : > { %v707_v27 = vsel %vm705_vm9, %v706_v11, %v4719_v63  ;;  %v2115_v48 = vsel %vm2113_vm10, %v706_v11, %v4719_v63  ;;  %vm1902_vm9 = vcmp.eq.s32.totalorder %v5219_v37, 0  ;;  %vm495_vm10 = vcmp.lt.s32.totalorder %v5217_v7, 2 }
  0xea   : > { %v704_v31 = vsel %vm702_vm11, %v4717_v20, %v703_v24  ;;  %v2112_v32 = vsel %vm2110_vm12, %v4717_v20, %v703_v24  ;;  %vm1901_vm11 = vcmp.lt.s32.totalorder %v5219_v37, 2  ;;  %v541_v42 = vsel %vm539_vm3, %v529_v21, 2102212464 }
  0xeb   : > { %v708_v9 = vsel %vm701_vm13, %v704_v31, %v707_v27  ;;  %v2116_v30 = vsel %vm2109_vm14, %v2112_v32, %v2115_v48  ;;  %vm493_vm12 = vweird.f32 %v5017_v18  ;;  %v778_v29 = vclz %v4098_v59  ;;  %v340_v18 = vpop.permute.xlu0 %339 }
  0xec   : > { %v709_v52 = vsel %vm699_vm2, nan, %v708_v9  ;;  %v2117_v15 = vsel %vm699_vm2, nan, %v2116_v30  ;;  %v547_v41 = vsel %vm537_vm4, %v544_v28, %v546_v10  ;;  %v548_v58 = vsel %vm536_vm1, %v526_v16, %v529_v21 }
  0xed   : > { %v4306_v54 = vpack.c.bf16 %v709_v52, %v709_v52  ;;  %v4319_v19 = vpack.c.bf16 %v2117_v15, %v2117_v15  ;;  %v549_v47 = vsel %vm539_vm3, %v535_v26, 1326507024  ;;  %v766_v60 = vadd.s32 %v5191_v13, %v5188_v6 }
  0xee   : > { %v4099_v33 = vadd.s32 4294967294, %v778_v29  ;;  %v540_v17 = vsel %vm536_vm1, %v520_v35, %v523_v8  ;;  %v542_v61 = vsel %vm538_vm5, %v526_v16, %v541_v42  ;;  %v4721_v62 = vpop.eup %4720  ;;  %v799_v45 = vsel %vm5257_vm15, 0, %v797_v50 }
  0xef   : > { %1795 = vst [vmem:[#allocation2 + $0x10] sm:$0xf] %v4306_v54  ;;  %3213 = vst [vmem:[#allocation2 + $0x14] sm:$0xf] %v4319_v19  ;;  %v550_v2 = vsel %vm538_vm5, %v532_v0, %v549_v47  ;;  %v5321_v3 = vmul.u32.u64.low %v5221_v38, %v547_v41  ;;  %v5322_v12 = vmul.u32.u64.high %v5221_v38, %v547_v41, %v5321_v3  ;;  %v4723_v6 = vpop.eup %4722  ;;  %v500_v13 = vxor.u32 2147483648, %v4721_v62 }
  0xf0   : > { %vm4100_vm13 = vcmp.lt.s32.totalorder %v4099_v33, 0  ;;  %v551_v8 = vsel %vm537_vm4, %v548_v58, %v550_v2  ;;  %v920_v16 = vshrl.u32 %v919_v44, 23  ;;  %v497_v21 = vxor.u32 2147483648, %v4723_v6 }
  0xf1   : > { %v781_v20 = vsel %vm4100_vm13, 0, %v4099_v33  ;;  %v5329_v23 = vmul.u32.u64.low %v5221_v38, %v551_v8  ;;  %v5330_v56 = vmul.u32.u64.high %v5221_v38, %v551_v8, %v5329_v23  ;;  %v501_v0 = vsel %vm499_vm6, %v500_v13, %v4723_v6 }
  0xf2   : > { %v1907_v63 = vsel %vm1905_vm7, %v500_v13, %v4723_v6  ;;  %v782_v11 = vsub.s32 32, %v781_v20  ;;  %v543_v5 = vsel %vm537_vm4, %v540_v17, %v542_v61  ;;  %v498_v24 = vsel %vm496_vm8, %v4721_v62, %v497_v21 }
  0xf3   : > { %v1904_v44 = vsel %vm1902_vm9, %v4721_v62, %v497_v21  ;;  %v786_v43 = vsub.s32 4294967266, %v781_v20  ;;  %v562_v26 = vadd.s32 1, %v5322_v12  ;;  %v502_v27 = vsel %vm495_vm10, %v498_v24, %v501_v0 }
  0xf4   : > { %v1908_v48 = vsel %vm1901_vm11, %v1904_v44, %v1907_v63  ;;  %v784_v28 = vshrl.u32 %v766_v60, %v782_v11  ;;  %v4105_v10 = vadd.s32 4294967169, %v920_v16  ;;  %v503_v46 = vsel %vm493_vm12, nan, %v502_v27 }
  0xf5   : > { %v1909_v31 = vsel %vm493_vm12, nan, %v1908_v48  ;;  %v783_v32 = vshll.u32 %v5261_v4, %v781_v20  ;;  %v787_v59 = vadd.s32 127, %v786_v43  ;;  %v4304_v35 = vpack.c.bf16 %v503_v46, %v503_v46 }
  0xf6   : > { %v4317_v9 = vpack.c.bf16 %v1909_v31, %v1909_v31  ;;  %v559_v30 = vmul.u32 %v5221_v38, %v543_v5  ;;  %vm561_vm14 = vc.u32 %v5330_v56, %v5321_v3  ;;  %v926_v42 = vadd.s32 1, %v4105_v10 }
  0xf7   : > { %v785_v7 = vor.u32 %v784_v28, %v783_v32  ;;  %v788_v37 = vshll.u32 %v787_v59, 23  ;;  %v563_v50 = vsel %vm561_vm14, %v562_v26, %v5322_v12  ;;  %1793 = vst [vmem:[#allocation2] sm:$0xf] %v4304_v35  ;;  %v2211_v29 = vadd.s32 3, %v799_v45 }
  0xf8   : > { %3211 = vst [vmem:[#allocation2 + $0x4] sm:$0xf] %v4317_v9  ;;  %v564_v52 = vadd.s32 %v563_v50, %v559_v30  ;;  %vm927_vm2 = vcmp.gt.s32.totalorder %v926_v42, 0  ;;  %v923_v38 = vand.u32 8388607, %v916_v34  ;;  %v5358_v60 = vmul.f32 %v5011_v14, %v340_v18 }
  0xf9   : > { %v789_v15 = vor.u32 4788187, %v788_v37  ;;  %v928_v41 = vsel %vm927_vm2, %v926_v42, 0  ;;  %v792_v19 = vcvt.s32.f32 %v785_v7  ;;  %v5360_v61 = vand.u32 3, %v799_v45 }
  0xfa   : > { %v565_v4 = vadd.s32 536870912, %v564_v52  ;;  %v930_v58 = vand.u32 31, %v928_v41  ;;  %v5362_v62 = vand.u32 3, %v2211_v29  ;;  %vm506_vm3 = vcmp.lt.s32.totalorder %v5032_v39, 0 }
  0xfb   : > { %v790_v54 = vand.u32 2147483647, %v789_v15  ;;  %v5366_v6 = vadd.s32 %v5321_v3, %v5330_v56  ;;  %v924_v13 = vor.u32 8388608, %v923_v38  ;;  %v816_v45 = vand.u32 2139095040, %v5358_v60 }
  0xfc   : > { %v566_v47 = vshrl.u32 %v565_v4, 30  ;;  %v931_v17 = vsub.s32 32, %v930_v58  ;;  %v933_v23 = vshll.u32 %v4903_v49, %v930_v58  ;;  %v936_v0 = vshll.u32 %v4904_v51, %v930_v58 }
  0xfd   : > { %v793_v33 = vmul.f32 %v792_v19, %v790_v54  ;;  %vm5384_vm1 = vcmp.le.f32.partialorder %v504_v40, 0.7853982  ;;  %v939_v24 = vshll.u32 %v4905_v53, %v930_v58  ;;  %v929_v44 = vshrl.u32 %v928_v41, 5 }
  0xfe   : > { %v567_v2 = vshll.u32 %v566_v47, 30  ;;  %v934_v8 = vshrl.u32 %v4904_v51, %v931_v17  ;;  %v937_v14 = vshrl.u32 %v4905_v53, %v931_v17  ;;  %v940_v21 = vshrl.u32 %v4906_v55, %v931_v17 }
  0xff   : > { %v794_v12 = vxor.u32 2147483648, %v793_v33  ;;  %v943_v3 = vshrl.u32 %v4907_v57, %v931_v17  ;;  %v590_v5 = vsub.s32 4, %v566_v47  ;;  %v942_v26 = vshll.u32 %v4906_v55, %v930_v58 }
 0x100   : > { %v5369_v16 = vsub.s32 %v564_v52, %v567_v2  ;;  %v935_v43 = vor.u32 %v934_v8, %v933_v23  ;;  %v938_v27 = vor.u32 %v937_v14, %v936_v0  ;;  %v941_v48 = vor.u32 %v940_v21, %v939_v24 }
 0x101   : > { %v795_v20 = vsel %vm712_vm0, %v794_v12, %v793_v33  ;;  %v944_v28 = vor.u32 %v943_v3, %v942_v26  ;;  %v945_v40 = vshll.u32 %v4907_v57, %v930_v58  ;;  %v946_v10 = vshrl.u32 %v4908_v1, %v931_v17 }
 0x102   : > { %v798_v56 = vsel %vm5257_vm15, %v5024_v25, %v795_v20  ;;  %v570_v11 = vsub.s32 0, %v5369_v16  ;;  %v5394_v46 = vshll.u32 %v924_v13, 8  ;;  %v591_v32 = vsel %vm506_vm3, %v590_v5, %v566_v47 }
 0x103   : > { %4724 = vcosq.f32 %v798_v56  ;;  %v932_v59 = vshrl.u32 %v4903_v49, %v931_v17  ;;  %v817_v35 = vshrl.u32 %v816_v45, 23  ;;  %vm808_vm0 = vcmp.eq.s32.totalorder %v5360_v61, 2 }
 0x104   : > { %4726 = vsinq.f32 %v798_v56  ;;  %v4090_v22 = vmin.u32 %v570_v11, %v5369_v16  ;;  %vm2217_vm15 = vcmp.eq.s32.totalorder %v5362_v62, 2  ;;  %v947_v9 = vor.u32 %v946_v10, %v945_v40 }
 0x105   : > { %vm948_vm4 = vcmp.lt.s32.totalorder %v929_v44, 1  ;;  %vm950_vm5 = vcmp.lt.s32.totalorder %v929_v44, 3  ;;  %vm951_vm6 = vcmp.lt.s32.totalorder %v929_v44, 4  ;;  %vm805_vm7 = vcmp.eq.s32.totalorder %v5360_v61, 0 }
 0x106   : > { %v572_v31 = vclz %v4090_v22  ;;  %vm2214_vm8 = vcmp.eq.s32.totalorder %v5362_v62, 0  ;;  %v952_v7 = vsel %vm948_vm4, %v932_v59, %v935_v43  ;;  %v953_v37 = vsel %vm951_vm6, %v941_v48, 2102212464 }
 0x107   : > { %v956_v50 = vsel %vm948_vm4, %v935_v43, %v938_v27  ;;  %vm804_vm9 = vcmp.lt.s32.totalorder %v5360_v61, 2  ;;  %vm2213_vm10 = vcmp.lt.s32.totalorder %v5362_v62, 2  ;;  %v954_v42 = vsel %vm950_vm5, %v938_v27, %v953_v37 }
 0x108   : > { %v4091_v30 = vadd.s32 4294967294, %v572_v31  ;;  %v957_v52 = vsel %vm951_vm6, %v944_v28, 920167782  ;;  %v960_v15 = vsel %vm948_vm4, %v938_v27, %v941_v48  ;;  %v961_v18 = vsel %vm951_vm6, %v947_v9, 1326507024 }
 0x109   : > { %vm802_vm11 = vweird.f32 %v5024_v25  ;;  %vm949_vm13 = vcmp.lt.s32.totalorder %v929_v44, 2  ;;  %v958_v29 = vsel %vm950_vm5, %v941_v48, %v957_v52  ;;  %v962_v4 = vsel %vm950_vm5, %v944_v28, %v961_v18 }
 0x10a   : > { %vm4092_vm12 = vcmp.lt.s32.totalorder %v4091_v30, 0  ;;  %v593_v54 = vsel %vm5384_vm1, 0, %v591_v32  ;;  %v959_v19 = vsel %vm949_vm13, %v956_v50, %v958_v29  ;;  %v963_v38 = vsel %vm949_vm13, %v960_v15, %v962_v4 }
 0x10b   : > { %v575_v41 = vsel %vm4092_vm12, 0, %v4091_v30  ;;  %v955_v33 = vsel %vm949_vm13, %v952_v7, %v954_v42  ;;  %v4101_v17 = vadd.s32 4294967169, %v817_v35  ;;  %v2003_v56 = vadd.s32 3, %v593_v54 }
 0x10c   : > { %v576_v58 = vsub.s32 32, %v575_v41  ;;  %v580_v47 = vsub.s32 4294967266, %v575_v41  ;;  %v5412_v12 = vmul.u32.u64.low %v5394_v46, %v963_v38  ;;  %v5413_v13 = vmul.u32.u64.high %v5394_v46, %v963_v38, %v5412_v12 }
 0x10d   : > { %v4725_v2 = vpop.eup %4724  ;;  %v5416_v8 = vmul.u32.u64.low %v5394_v46, %v959_v19  ;;  %v5417_v14 = vmul.u32.u64.high %v5394_v46, %v959_v19, %v5416_v8  ;;  %v577_v20 = vshll.u32 %v5369_v16, %v575_v41  ;;  %v813_v11 = vand.u32 2147483647, %v5358_v60 }
 0x10e   : > { %v4727_v21 = vpop.eup %4726  ;;  %v809_v45 = vxor.u32 2147483648, %v4725_v2  ;;  %v578_v23 = vshrl.u32 %v5366_v6, %v576_v58  ;;  %v581_v0 = vadd.s32 127, %v580_v47  ;;  %v823_v5 = vadd.s32 1, %v4101_v17 }
 0x10f   : > { %v806_v3 = vxor.u32 2147483648, %v4727_v21  ;;  %v971_v16 = vmul.u32 %v5394_v46, %v955_v33  ;;  %vm973_vm14 = vc.u32 %v5413_v13, %v5416_v8  ;;  %v974_v32 = vadd.s32 1, %v5417_v14 }
 0x110   : > { %v810_v24 = vsel %vm808_vm0, %v809_v45, %v4727_v21  ;;  %v2219_v44 = vsel %vm2217_vm15, %v809_v45, %v4727_v21  ;;  %v579_v43 = vor.u32 %v578_v23, %v577_v20  ;;  %v582_v26 = vshll.u32 %v581_v0, 23 }
 0x111   : > { %v807_v22 = vsel %vm805_vm7, %v4725_v2, %v806_v3  ;;  %v2216_v6 = vsel %vm2214_vm8, %v4725_v2, %v806_v3  ;;  %vm824_vm2 = vcmp.gt.s32.totalorder %v823_v5, 0  ;;  %v975_v61 = vsel %vm973_vm14, %v974_v32, %v5417_v14 }
 0x112   : > { %v811_v27 = vsel %vm804_vm9, %v807_v22, %v810_v24  ;;  %v2220_v48 = vsel %vm2213_vm10, %v2216_v6, %v2219_v44  ;;  %v583_v28 = vor.u32 4788187, %v582_v26  ;;  %v586_v40 = vcvt.s32.f32 %v579_v43  ;;  %v5480_v44 = vld [vmem:[%s6466_s1] ss:$0 sm:$0xff] }
 0x113   : > { %v812_v10 = vsel %vm802_vm11, nan, %v811_v27  ;;  %v2221_v31 = vsel %vm802_vm11, nan, %v2220_v48  ;;  %v825_v9 = vsel %vm824_vm2, %v823_v5, 0  ;;  %v976_v7 = vadd.s32 %v975_v61, %v971_v16 }
 0x114   : > { %v4307_v46 = vpack.c.bf16 %v812_v10, %v812_v10  ;;  %v4320_v59 = vpack.c.bf16 %v2221_v31, %v2221_v31  ;;  %v584_v35 = vand.u32 2147483647, %v583_v28  ;;  %v827_v30 = vand.u32 31, %v825_v9 }
 0x115   : > { %v5444_v37 = vand.u32 3, %v593_v54  ;;  %v5446_v50 = vand.u32 3, %v2003_v56  ;;  %v820_v25 = vand.u32 8388607, %v813_v11  ;;  %v977_v15 = vadd.s32 536870912, %v976_v7  ;;  %v355_v56 = vpop.permute.xlu1 %354 }
 0x116   : > { %1796 = vst [vmem:[#allocation2 + $0x18] sm:$0xf] %v4307_v46  ;;  %3214 = vst [vmem:[#allocation2 + $0x1c] sm:$0xf] %v4320_v59  ;;  %v587_v62 = vmul.f32 %v586_v40, %v584_v35  ;;  %v828_v42 = vsub.s32 32, %v827_v30  ;;  %v5450_v18 = vshrl.u32 %v825_v9, 5  ;;  %v830_v29 = vshll.u32 %v4903_v49, %v827_v30  ;;  %v350_v40 = vpop.permute.xlu0 %349 }
 0x117   : > { %v833_v41 = vshll.u32 %v4904_v51, %v827_v30  ;;  %v5459_v58 = vshrl.u32 %v977_v15, 30  ;;  %v836_v2 = vshll.u32 %v4905_v53, %v827_v30  ;;  %v839_v12 = vshll.u32 %v4906_v55, %v827_v30 }
 0x118   : > { %v588_v52 = vxor.u32 2147483648, %v587_v62  ;;  %v831_v4 = vshrl.u32 %v4904_v51, %v828_v42  ;;  %v834_v19 = vshrl.u32 %v4905_v53, %v828_v42  ;;  %v837_v54 = vshrl.u32 %v4906_v55, %v828_v42 }
 0x119   : > { %v840_v47 = vshrl.u32 %v4907_v57, %v828_v42  ;;  %v843_v33 = vshrl.u32 %v4908_v1, %v828_v42  ;;  %v842_v14 = vshll.u32 %v4907_v57, %v827_v30  ;;  %v979_v21 = vshll.u32 %v5459_v58, 30 }
 0x11a   : > { %v589_v38 = vsel %vm506_vm3, %v588_v52, %v587_v62  ;;  %v832_v45 = vor.u32 %v831_v4, %v830_v29  ;;  %v835_v20 = vor.u32 %v834_v19, %v833_v41  ;;  %v838_v23 = vor.u32 %v837_v54, %v836_v2 }
 0x11b   : > { %v592_v17 = vsel %vm5384_vm1, %v5032_v39, %v589_v38  ;;  %v841_v0 = vor.u32 %v840_v47, %v839_v12  ;;  %v844_v3 = vor.u32 %v843_v33, %v842_v14  ;;  %v5470_v5 = vsub.s32 %v976_v7, %v979_v21 }
 0x11c   : > { %4728 = vcosq.f32 %v592_v17  ;;  %v821_v63 = vor.u32 8388608, %v820_v25  ;;  %vm918_vm3 = vcmp.lt.s32.totalorder %v5215_v36, 0  ;;  %vm602_vm1 = vcmp.eq.s32.totalorder %v5444_v37, 2 }
 0x11d   : > { %4730 = vsinq.f32 %v592_v17  ;;  %v982_v24 = vsub.s32 0, %v5470_v5  ;;  %vm845_vm0 = vcmp.lt.s32.totalorder %v5450_v18, 1  ;;  %vm848_vm15 = vcmp.lt.s32.totalorder %v5450_v18, 4 }
 0x11e   : > { %v5483_v43 = vmul.f32 %v5480_v44, %v355_v56  ;;  %vm599_vm4 = vcmp.eq.s32.totalorder %v5444_v37, 0  ;;  %vm2006_vm5 = vcmp.eq.s32.totalorder %v5446_v50, 0  ;;  %v853_v26 = vsel %vm845_vm0, %v832_v45, %v835_v20 }
 0x11f   : > { %v854_v22 = vsel %vm848_vm15, %v841_v0, 920167782  ;;  %v857_v6 = vsel %vm845_vm0, %v835_v20, %v838_v23  ;;  %v858_v16 = vsel %vm848_vm15, %v844_v3, 1326507024  ;;  %vm598_vm6 = vcmp.lt.s32.totalorder %v5444_v37, 2 }
 0x120   : > { %vm2005_vm7 = vcmp.lt.s32.totalorder %v5446_v50, 2  ;;  %v4106_v27 = vmin.u32 %v982_v24, %v5470_v5  ;;  %v829_v48 = vshrl.u32 %v4903_v49, %v828_v42  ;;  %vm847_vm8 = vcmp.lt.s32.totalorder %v5450_v18, 3 }
 0x121   : > { %v861_v28 = vshll.u32 %v821_v63, 8  ;;  %vm596_vm9 = vweird.f32 %v5032_v39  ;;  %vm846_vm10 = vcmp.lt.s32.totalorder %v5450_v18, 2  ;;  %v850_v10 = vsel %vm848_vm15, %v838_v23, 2102212464 }
 0x122   : > { %v855_v31 = vsel %vm847_vm8, %v838_v23, %v854_v22  ;;  %v859_v32 = vsel %vm847_vm8, %v841_v0, %v858_v16  ;;  %v984_v46 = vclz %v4106_v27  ;;  %v1002_v59 = vsub.s32 4, %v5459_v58 }
 0x123   : > { %v856_v35 = vsel %vm846_vm10, %v853_v26, %v855_v31  ;;  %v860_v9 = vsel %vm846_vm10, %v857_v6, %v859_v32  ;;  %vm2009_vm11 = vcmp.eq.s32.totalorder %v5446_v50, 2  ;;  %vm5516_vm12 = vcmp.le.f32.partialorder %v916_v34, 0.7853982 }
 0x124   : > { %v849_v30 = vsel %vm845_vm0, %v829_v48, %v832_v45  ;;  %v1125_v62 = vand.u32 2139095040, %v5483_v43  ;;  %v5524_v7 = vmul.f32 %v5480_v44, %v350_v40  ;;  %v4107_v42 = vadd.s32 4294967294, %v984_v46 }
 0x125   : > { %v851_v52 = vsel %vm847_vm8, %v835_v20, %v850_v10  ;;  %v5528_v15 = vmul.u32.u64.low %v861_v28, %v860_v9  ;;  %v5529_v29 = vmul.u32.u64.high %v861_v28, %v860_v9, %v5528_v15  ;;  %v972_v47 = vadd.s32 %v5416_v8, %v5413_v13 }
 0x126   : > { %v4729_v25 = vpop.eup %4728  ;;  %v5531_v41 = vmul.u32.u64.low %v861_v28, %v856_v35  ;;  %v5532_v19 = vmul.u32.u64.high %v861_v28, %v856_v35, %v5531_v41  ;;  %v1126_v54 = vshrl.u32 %v1125_v62, 23  ;;  %vm4108_vm13 = vcmp.lt.s32.totalorder %v4107_v42, 0 }
 0x127   : > { %v4731_v34 = vpop.eup %4730  ;;  %v603_v4 = vxor.u32 2147483648, %v4729_v25  ;;  %v1003_v33 = vsel %vm918_vm3, %v1002_v59, %v5459_v58  ;;  %v987_v12 = vsel %vm4108_vm13, 0, %v4107_v42  ;;  %v852_v14 = vsel %vm846_vm10, %v849_v30, %v851_v52 }
 0x128   : > { %v600_v38 = vxor.u32 2147483648, %v4731_v34  ;;  %v988_v8 = vsub.s32 32, %v987_v12  ;;  %v4113_v45 = vadd.s32 4294967169, %v1126_v54  ;;  %v989_v23 = vshll.u32 %v5470_v5, %v987_v12 }
 0x129   : > { %v604_v17 = vsel %vm602_vm1, %v603_v4, %v4731_v34  ;;  %v2011_v2 = vsel %vm2009_vm11, %v603_v4, %v4731_v34  ;;  %v992_v0 = vsub.s32 4294967266, %v987_v12  ;;  %vm870_vm14 = vc.u32 %v5529_v29, %v5531_v41 }
 0x12a   : > { %v601_v21 = vsel %vm599_vm4, %v4729_v25, %v600_v38  ;;  %v2008_v13 = vsel %vm2006_vm5, %v4729_v25, %v600_v38  ;;  %v990_v56 = vshrl.u32 %v972_v47, %v988_v8  ;;  %v871_v26 = vadd.s32 1, %v5532_v19 }
 0x12b   : > { %v605_v58 = vsel %vm598_vm6, %v601_v21, %v604_v17  ;;  %v2012_v20 = vsel %vm2005_vm7, %v2008_v13, %v2011_v2  ;;  %v993_v37 = vadd.s32 127, %v992_v0  ;;  %v1005_v50 = vsel %vm5516_vm12, 0, %v1003_v33 }
 0x12c   : > { %v606_v18 = vsel %vm596_vm9, nan, %v605_v58  ;;  %v2013_v3 = vsel %vm596_vm9, nan, %v2012_v20  ;;  %v868_v5 = vmul.u32 %v861_v28, %v852_v14  ;;  %v1122_v22 = vand.u32 2147483647, %v5483_v43 }
 0x12d   : > { %v4305_v63 = vpack.c.bf16 %v606_v18, %v606_v18  ;;  %v4318_v24 = vpack.c.bf16 %v2013_v3, %v2013_v3  ;;  %v1132_v6 = vadd.s32 1, %v4113_v45  ;;  %v991_v39 = vor.u32 %v990_v56, %v989_v23 }
 0x12e   : > { %v994_v16 = vshll.u32 %v993_v37, 23  ;;  %v872_v27 = vsel %vm870_vm14, %v871_v26, %v5532_v19  ;;  %v2419_v10 = vadd.s32 3, %v1005_v50  ;;  %v1129_v46 = vand.u32 8388607, %v1122_v22 }
 0x12f   : > { %1794 = vst [vmem:[#allocation2 + $0x8] sm:$0xf] %v4305_v63  ;;  %3212 = vst [vmem:[#allocation2 + $0xc] sm:$0xf] %v4318_v24  ;;  %v873_v48 = vadd.s32 %v872_v27, %v868_v5  ;;  %vm1133_vm2 = vcmp.gt.s32.totalorder %v1132_v6, 0  ;;  %v1022_v28 = vand.u32 2139095040, %v5524_v7  ;;  %v998_v9 = vcvt.s32.f32 %v991_v39 }
 0x130   : > { %v995_v40 = vor.u32 4788187, %v994_v16  ;;  %v1134_v31 = vsel %vm1133_vm2, %v1132_v6, 0  ;;  %v5571_v42 = vand.u32 3, %v1005_v50  ;;  %v5573_v52 = vand.u32 3, %v2419_v10 }
 0x131   : > { %v874_v32 = vadd.s32 536870912, %v873_v48  ;;  %v1136_v59 = vand.u32 31, %v1134_v31  ;;  %v1130_v34 = vor.u32 8388608, %v1129_v46  ;;  %v1023_v4 = vshrl.u32 %v1022_v28, 23 }
 0x132   : > { %v996_v35 = vand.u32 2147483647, %v995_v40  ;;  %v1135_v17 = vshrl.u32 %v1134_v31, 5  ;;  %vm815_vm1 = vcmp.lt.s32.totalorder %v5358_v60, 0  ;;  %v869_v56 = vadd.s32 %v5531_v41, %v5529_v29 }
 0x133   : > { %v5569_v30 = vshrl.u32 %v874_v32, 30  ;;  %v1137_v62 = vsub.s32 32, %v1136_v59  ;;  %v1139_v2 = vshll.u32 %v4903_v49, %v1136_v59  ;;  %v1142_v21 = vshll.u32 %v4904_v51, %v1136_v59 }
 0x134   : > { %v999_v25 = vmul.f32 %v998_v9, %v996_v35  ;;  %v1145_v13 = vshll.u32 %v4905_v53, %v1136_v59  ;;  %v1148_v20 = vshll.u32 %v4906_v55, %v1136_v59  ;;  %v1151_v23 = vshll.u32 %v4907_v57, %v1136_v59 }
 0x135   : > { %v876_v15 = vshll.u32 %v5569_v30, 30  ;;  %v1140_v54 = vshrl.u32 %v4904_v51, %v1137_v62  ;;  %v1143_v38 = vshrl.u32 %v4905_v53, %v1137_v62  ;;  %v1146_v47 = vshrl.u32 %v4906_v55, %v1137_v62 }
 0x136   : > { %v1000_v19 = vxor.u32 2147483648, %v999_v25  ;;  %v1149_v12 = vshrl.u32 %v4907_v57, %v1137_v62  ;;  %v1152_v8 = vshrl.u32 %v4908_v1, %v1137_v62  ;;  %v5598_v37 = vshll.u32 %v1130_v34, 8 }
 0x137   : > { %v5579_v33 = vsub.s32 %v873_v48, %v876_v15  ;;  %v1141_v0 = vor.u32 %v1140_v54, %v1139_v2  ;;  %v1144_v18 = vor.u32 %v1143_v38, %v1142_v21  ;;  %v1147_v3 = vor.u32 %v1146_v47, %v1145_v13 }
 0x138   : > { %v1001_v14 = vsel %vm918_vm3, %v1000_v19, %v999_v25  ;;  %v1150_v61 = vor.u32 %v1149_v12, %v1148_v20  ;;  %v1153_v24 = vor.u32 %v1152_v8, %v1151_v23  ;;  %v1019_v26 = vand.u32 2147483647, %v5524_v7 }
 0x139   : > { %v1004_v45 = vsel %vm5516_vm12, %v5215_v36, %v1001_v14  ;;  %v879_v58 = vsub.s32 0, %v5579_v33  ;;  %v4109_v50 = vadd.s32 4294967169, %v1023_v4  ;;  %vm5603_vm3 = vcmp.le.f32.partialorder %v813_v11, 0.7853982 }
 0x13a   : > { %4732 = vcosq.f32 %v1004_v45  ;;  %v899_v39 = vsub.s32 4, %v5569_v30  ;;  %vm1154_vm0 = vcmp.lt.s32.totalorder %v1135_v17, 1  ;;  %vm1157_vm15 = vcmp.lt.s32.totalorder %v1135_v17, 4 }
 0x13b   : > { %4734 = vsinq.f32 %v1004_v45  ;;  %v4102_v63 = vmin.u32 %v879_v58, %v5579_v33  ;;  %vm1014_vm4 = vcmp.eq.s32.totalorder %v5571_v42, 2  ;;  %vm2425_vm5 = vcmp.eq.s32.totalorder %v5573_v52, 2 }
 0x13c   : > { %v1138_v29 = vshrl.u32 %v4903_v49, %v1137_v62  ;;  %vm1155_vm6 = vcmp.lt.s32.totalorder %v1135_v17, 2  ;;  %v1159_v41 = vsel %vm1157_vm15, %v1147_v3, 2102212464  ;;  %v1162_v16 = vsel %vm1154_vm0, %v1141_v0, %v1144_v18 }
 0x13d   : > { %v881_v6 = vclz %v4102_v63  ;;  %vm1011_vm7 = vcmp.eq.s32.totalorder %v5571_v42, 0  ;;  %vm2422_vm8 = vcmp.eq.s32.totalorder %v5573_v52, 0  ;;  %vm1156_vm9 = vcmp.lt.s32.totalorder %v1135_v17, 3 }
 0x13e   : > { %v1163_v27 = vsel %vm1157_vm15, %v1150_v61, 920167782  ;;  %v1166_v48 = vsel %vm1154_vm0, %v1144_v18, %v1147_v3  ;;  %vm1010_vm10 = vcmp.lt.s32.totalorder %v5571_v42, 2  ;;  %vm2421_vm11 = vcmp.lt.s32.totalorder %v5573_v52, 2 }
 0x13f   : > { %v4103_v11 = vadd.s32 4294967294, %v881_v6  ;;  %v1158_v40 = vsel %vm1154_vm0, %v1138_v29, %v1141_v0  ;;  %v1164_v10 = vsel %vm1156_vm9, %v1147_v3, %v1163_v27  ;;  %v1167_v31 = vsel %vm1157_vm15, %v1153_v24, 1326507024 }
 0x140   : > { %v1029_v32 = vadd.s32 1, %v4109_v50  ;;  %vm1008_vm12 = vweird.f32 %v5215_v36  ;;  %v1160_v46 = vsel %vm1156_vm9, %v1144_v18, %v1159_v41  ;;  %v1165_v59 = vsel %vm1155_vm6, %v1162_v16, %v1164_v10 }
 0x141   : > { %vm4104_vm13 = vcmp.lt.s32.totalorder %v4103_v11, 0  ;;  %v1168_v28 = vsel %vm1156_vm9, %v1150_v61, %v1167_v31  ;;  %v5625_v62 = vmul.u32.u64.low %v5598_v37, %v1165_v59  ;;  %v5626_v25 = vmul.u32.u64.high %v5598_v37, %v1165_v59, %v5625_v62 }
 0x142   : > { %v884_v35 = vsel %vm4104_vm13, 0, %v4103_v11  ;;  %v1169_v9 = vsel %vm1155_vm6, %v1166_v48, %v1168_v28  ;;  %v900_v4 = vsel %vm815_vm1, %v899_v39, %v5569_v30  ;;  %vm1030_vm14 = vcmp.gt.s32.totalorder %v1029_v32, 0 }
 0x143   : > { %v885_v15 = vsub.s32 32, %v884_v35  ;;  %v889_v34 = vsub.s32 4294967266, %v884_v35  ;;  %v1161_v54 = vsel %vm1155_vm6, %v1158_v40, %v1160_v46  ;;  %v1031_v2 = vsel %vm1030_vm14, %v1029_v32, 0 }
 0x144   : > { %v4733_v19 = vpop.eup %4732  ;;  %v5634_v38 = vmul.u32.u64.low %v5598_v37, %v1169_v9  ;;  %v5635_v47 = vmul.u32.u64.high %v5598_v37, %v1169_v9, %v5634_v38  ;;  %v886_v21 = vshll.u32 %v5579_v33, %v884_v35  ;;  %v902_v58 = vsel %vm5603_vm3, 0, %v900_v4 }
 0x145   : > { %v4735_v12 = vpop.eup %4734  ;;  %v1015_v14 = vxor.u32 2147483648, %v4733_v19  ;;  %v887_v13 = vshrl.u32 %v869_v56, %v885_v15  ;;  %v890_v8 = vadd.s32 127, %v889_v34  ;;  %v1180_v30 = vadd.s32 1, %v5626_v25 }
 0x146   : > { %v1012_v45 = vxor.u32 2147483648, %v4735_v12  ;;  %v1033_v20 = vand.u32 31, %v1031_v2  ;;  %v1177_v56 = vmul.u32 %v5598_v37, %v1161_v54  ;;  %vm1179_vm2 = vc.u32 %v5635_v47, %v5625_v62 }
 0x147   : > { %v1016_v17 = vsel %vm1014_vm4, %v1015_v14, %v4735_v12  ;;  %v2427_v23 = vsel %vm2425_vm5, %v1015_v14, %v4735_v12  ;;  %v888_v0 = vor.u32 %v887_v13, %v886_v21  ;;  %v891_v18 = vshll.u32 %v890_v8, 23 }
 0x148   : > { %v1013_v33 = vsel %vm1011_vm7, %v4733_v19, %v1012_v45  ;;  %v2424_v3 = vsel %vm2422_vm8, %v4733_v19, %v1012_v45  ;;  %v1181_v29 = vsel %vm1179_vm2, %v1180_v30, %v5626_v25  ;;  %v1034_v37 = vsub.s32 32, %v1033_v20 }
 0x149   : > { %v1017_v63 = vsel %vm1010_vm10, %v1013_v33, %v1016_v17  ;;  %v2428_v61 = vsel %vm2421_vm11, %v2424_v3, %v2427_v23  ;;  %v892_v24 = vor.u32 4788187, %v891_v18  ;;  %v895_v50 = vcvt.s32.f32 %v888_v0  ;;  %v365_v23 = vpop.permute.xlu1 %364 }
 0x14a   : > { %v1018_v6 = vsel %vm1008_vm12, nan, %v1017_v63  ;;  %v2429_v39 = vsel %vm1008_vm12, nan, %v2428_v61  ;;  %v1182_v27 = vadd.s32 %v1181_v29, %v1177_v56  ;;  %v1026_v42 = vand.u32 8388607, %v1019_v26 }
 0x14b   : > { %v4309_v41 = vpack.c.bf16 %v1018_v6, %v1018_v6  ;;  %v4322_v16 = vpack.c.bf16 %v2429_v39, %v2429_v39  ;;  %v893_v11 = vand.u32 2147483647, %v892_v24  ;;  %v2315_v48 = vadd.s32 3, %v902_v58 }
 0x14c   : > { %v1183_v40 = vadd.s32 536870912, %v1182_v27  ;;  %v1037_v10 = vshrl.u32 %v4904_v51, %v1034_v37  ;;  %v5664_v31 = vshrl.u32 %v1031_v2, 5  ;;  %v1040_v36 = vshrl.u32 %v4905_v53, %v1034_v37 }
 0x14d   : > { %1798 = vst [vmem:[#allocation2 + $0x28] sm:$0xf] %v4309_v41  ;;  %3216 = vst [vmem:[#allocation2 + $0x2c] sm:$0xf] %v4322_v16  ;;  %v896_v52 = vmul.f32 %v895_v50, %v893_v11  ;;  %v1043_v32 = vshrl.u32 %v4906_v55, %v1034_v37  ;;  %v1046_v46 = vshrl.u32 %v4907_v57, %v1034_v37  ;;  %vm1124_vm0 = vcmp.lt.s32.totalorder %v5483_v43, 0 }
 0x14e   : > { %v1184_v28 = vshrl.u32 %v1183_v40, 30  ;;  %v1036_v35 = vshll.u32 %v4903_v49, %v1033_v20  ;;  %v1042_v9 = vshll.u32 %v4905_v53, %v1033_v20  ;;  %v1039_v25 = vshll.u32 %v4904_v51, %v1033_v20 }
 0x14f   : > { %v897_v59 = vxor.u32 2147483648, %v896_v52  ;;  %v1045_v15 = vshll.u32 %v4906_v55, %v1033_v20  ;;  %v1048_v34 = vshll.u32 %v4907_v57, %v1033_v20  ;;  %v1049_v4 = vshrl.u32 %v4908_v1, %v1034_v37 }
 0x150   : > { %v1185_v54 = vshll.u32 %v1184_v28, 30  ;;  %v1038_v38 = vor.u32 %v1037_v10, %v1036_v35  ;;  %v1044_v2 = vor.u32 %v1043_v32, %v1042_v9  ;;  %v1041_v14 = vor.u32 %v1040_v36, %v1039_v25 }
 0x151   : > { %v898_v19 = vsel %vm815_vm1, %v897_v59, %v896_v52  ;;  %v1047_v21 = vor.u32 %v1046_v46, %v1045_v15  ;;  %v1050_v13 = vor.u32 %v1049_v4, %v1048_v34  ;;  %v5681_v8 = vand.u32 3, %v902_v58 }
 0x152   : > { %v901_v12 = vsel %vm5603_vm3, %v5358_v60, %v898_v19  ;;  %v5683_v45 = vsub.s32 %v1182_v27, %v1185_v54  ;;  %v1027_v30 = vor.u32 8388608, %v1026_v42  ;;  %v5685_v20 = vand.u32 3, %v2315_v48 }
 0x153   : > { %4736 = vcosq.f32 %v901_v12  ;;  %v1035_v17 = vshrl.u32 %v4903_v49, %v1034_v37  ;;  %vm1054_vm1 = vcmp.lt.s32.totalorder %v5664_v31, 4  ;;  %vm5691_vm3 = vcmp.le.f32.partialorder %v1122_v22, 0.7853982 }
 0x154   : > { %4738 = vsinq.f32 %v901_v12  ;;  %v1188_v58 = vsub.s32 0, %v5683_v45  ;;  %v1208_v0 = vsub.s32 4, %v1184_v28  ;;  %vm1051_vm15 = vcmp.lt.s32.totalorder %v5664_v31, 1 }
 0x155   : > { %v1056_v18 = vsel %vm1054_vm1, %v1044_v2, 2102212464  ;;  %v1059_v33 = vsel %vm1051_vm15, %v1038_v38, %v1041_v14  ;;  %v1060_v3 = vsel %vm1054_vm1, %v1047_v21, 920167782  ;;  %v1063_v56 = vsel %vm1051_vm15, %v1041_v14, %v1044_v2 }
 0x156   : > { %v1064_v63 = vsel %vm1054_vm1, %v1050_v13, 1326507024  ;;  %v4114_v61 = vmin.u32 %v1188_v58, %v5683_v45  ;;  %vm1053_vm4 = vcmp.lt.s32.totalorder %v5664_v31, 3  ;;  %v1067_v24 = vshll.u32 %v1027_v30, 8 }
 0x157   : > { %v5700_v22 = vmul.f32 %v5480_v44, %v365_v23  ;;  %vm1052_vm5 = vcmp.lt.s32.totalorder %v5664_v31, 2  ;;  %v1055_v50 = vsel %vm1051_vm15, %v1035_v17, %v1038_v38  ;;  %v1061_v6 = vsel %vm1053_vm4, %v1044_v2, %v1060_v3 }
 0x158   : > { %v1065_v39 = vsel %vm1053_vm4, %v1047_v21, %v1064_v63  ;;  %vm907_vm6 = vcmp.lt.s32.totalorder %v5681_v8, 2  ;;  %v1190_v29 = vclz %v4114_v61  ;;  %v1057_v37 = vsel %vm1053_vm4, %v1041_v14, %v1056_v18 }
 0x159   : > { %v1062_v41 = vsel %vm1052_vm5, %v1059_v33, %v1061_v6  ;;  %v1066_v16 = vsel %vm1052_vm5, %v1063_v56, %v1065_v39  ;;  %vm905_vm7 = vweird.f32 %v5358_v60  ;;  %vm908_vm8 = vcmp.eq.s32.totalorder %v5681_v8, 0 }
 0x15a   : > { %vm911_vm9 = vcmp.eq.s32.totalorder %v5681_v8, 2  ;;  %vm2317_vm10 = vcmp.lt.s32.totalorder %v5685_v20, 2  ;;  %v1209_v11 = vsel %vm1124_vm0, %v1208_v0, %v1184_v28  ;;  %v4115_v27 = vadd.s32 4294967294, %v1190_v29 }
 0x15b   : > { %v5714_v42 = vmul.u32.u64.low %v1067_v24, %v1066_v16  ;;  %v5715_v52 = vmul.u32.u64.high %v1067_v24, %v1066_v16, %v5714_v42  ;;  %v1331_v48 = vand.u32 2139095040, %v5700_v22  ;;  %vm2318_vm11 = vcmp.eq.s32.totalorder %v5685_v20, 0 }
 0x15c   : > { %v1058_v40 = vsel %vm1052_vm5, %v1055_v50, %v1057_v37  ;;  %v5721_v10 = vmul.u32.u64.low %v1067_v24, %v1062_v41  ;;  %v5722_v36 = vmul.u32.u64.high %v1067_v24, %v1062_v41, %v5721_v10  ;;  %vm2321_vm12 = vcmp.eq.s32.totalorder %v5685_v20, 2  ;;  %v360_v20 = vpop.permute.xlu0 %359 }
 0x15d   : > { %v4737_v32 = vpop.eup %4736  ;;  %v1178_v46 = vadd.s32 %v5625_v62, %v5635_v47  ;;  %vm4116_vm13 = vcmp.lt.s32.totalorder %v4115_v27, 0  ;;  %v1328_v59 = vand.u32 2147483647, %v5700_v22  ;;  %v1211_v31 = vsel %vm5691_vm3, 0, %v1209_v11 }
 0x15e   : > { %v4739_v28 = vpop.eup %4738  ;;  %v912_v35 = vxor.u32 2147483648, %v4737_v32  ;;  %v1193_v9 = vsel %vm4116_vm13, 0, %v4115_v27  ;;  %v1332_v25 = vshrl.u32 %v1331_v48, 23  ;;  %v1074_v19 = vmul.u32 %v1067_v24, %v1058_v40 }
 0x15f   : > { %v909_v15 = vxor.u32 2147483648, %v4739_v28  ;;  %v1194_v34 = vsub.s32 32, %v1193_v9  ;;  %v1198_v4 = vsub.s32 4294967266, %v1193_v9  ;;  %v1195_v47 = vshll.u32 %v5683_v45, %v1193_v9 }
 0x160   : > { %v913_v54 = vsel %vm911_vm9, %v912_v35, %v4739_v28  ;;  %v2323_v62 = vsel %vm2321_vm12, %v912_v35, %v4739_v28  ;;  %vm1076_vm14 = vc.u32 %v5715_v52, %v5721_v10  ;;  %v1077_v30 = vadd.s32 1, %v5722_v36 }
 0x161   : > { %v910_v38 = vsel %vm908_vm8, %v4737_v32, %v909_v15  ;;  %v2320_v2 = vsel %vm2318_vm11, %v4737_v32, %v909_v15  ;;  %v1196_v12 = vshrl.u32 %v1178_v46, %v1194_v34  ;;  %v1199_v14 = vadd.s32 127, %v1198_v4 }
 0x162   : > { %v914_v21 = vsel %vm907_vm6, %v910_v38, %v913_v54  ;;  %v2324_v13 = vsel %vm2317_vm10, %v2320_v2, %v2323_v62  ;;  %v4121_v45 = vadd.s32 4294967169, %v1332_v25  ;;  %v1078_v3 = vsel %vm1076_vm14, %v1077_v30, %v5722_v36 }
 0x163   : > { %v915_v17 = vsel %vm905_vm7, nan, %v914_v21  ;;  %v2325_v23 = vsel %vm905_vm7, nan, %v2324_v13  ;;  %v1197_v58 = vor.u32 %v1196_v12, %v1195_v47  ;;  %v1200_v0 = vshll.u32 %v1199_v14, 23 }
 0x164   : > { %v4308_v18 = vpack.c.bf16 %v915_v17, %v915_v17  ;;  %v4321_v33 = vpack.c.bf16 %v2325_v23, %v2325_v23  ;;  %v1338_v8 = vadd.s32 1, %v4121_v45  ;;  %v1079_v63 = vadd.s32 %v1078_v3, %v1074_v19 }
 0x165   : > { %v1201_v56 = vor.u32 4788187, %v1200_v0  ;;  %v2627_v61 = vadd.s32 3, %v1211_v31  ;;  %v1335_v24 = vand.u32 8388607, %v1328_v59  ;;  %v1204_v60 = vcvt.s32.f32 %v1197_v58 }
 0x166   : > { %1797 = vst [vmem:[#allocation2 + $0x20] sm:$0xf] %v4308_v18  ;;  %3215 = vst [vmem:[#allocation2 + $0x24] sm:$0xf] %v4321_v33  ;;  %vm1339_vm2 = vcmp.gt.s32.totalorder %v1338_v8, 0  ;;  %v1080_v6 = vadd.s32 536870912, %v1079_v63  ;;  %v5755_v37 = vmul.f32 %v5480_v44, %v360_v20  ;;  %v1075_v5 = vadd.s32 %v5721_v10, %v5715_v52 }
 0x167   : > { %v1202_v50 = vand.u32 2147483647, %v1201_v56  ;;  %v1340_v39 = vsel %vm1339_vm2, %v1338_v8, 0  ;;  %v5757_v11 = vand.u32 3, %v1211_v31  ;;  %vm1021_vm1 = vcmp.lt.s32.totalorder %v5524_v7, 0 }
 0x168   : > { %v1342_v29 = vand.u32 31, %v1340_v39  ;;  %v1081_v16 = vshrl.u32 %v1080_v6, 30  ;;  %v5760_v48 = vand.u32 3, %v2627_v61  ;;  %v1336_v36 = vor.u32 8388608, %v1335_v24 }
 0x169   : > { %v1205_v41 = vmul.f32 %v1204_v60, %v1202_v50  ;;  %v5762_v32 = vshrl.u32 %v1340_v39, 5  ;;  %v1228_v35 = vand.u32 2139095040, %v5755_v37  ;;  %vm1217_vm6 = vcmp.eq.s32.totalorder %v5757_v11, 0 }
 0x16a   : > { %v1343_v27 = vsub.s32 32, %v1342_v29  ;;  %v1082_v40 = vshll.u32 %v1081_v16, 30  ;;  %v1345_v4 = vshll.u32 %v4903_v49, %v1342_v29  ;;  %v1348_v19 = vshll.u32 %v4904_v51, %v1342_v29 }
 0x16b   : > { %v1206_v42 = vxor.u32 2147483648, %v1205_v41  ;;  %v1351_v54 = vshll.u32 %v4905_v53, %v1342_v29  ;;  %v1105_v47 = vsub.s32 4, %v1081_v16  ;;  %v1354_v38 = vshll.u32 %v4906_v55, %v1342_v29 }
 0x16c   : > { %v1346_v46 = vshrl.u32 %v4904_v51, %v1343_v27  ;;  %v1349_v28 = vshrl.u32 %v4905_v53, %v1343_v27  ;;  %v5769_v31 = vsub.s32 %v1079_v63, %v1082_v40  ;;  %v1352_v25 = vshrl.u32 %v4906_v55, %v1343_v27 }
 0x16d   : > { %v1207_v9 = vsel %vm1124_vm0, %v1206_v42, %v1205_v41  ;;  %v1355_v15 = vshrl.u32 %v4907_v57, %v1343_v27  ;;  %vm5783_vm0 = vcmp.le.f32.partialorder %v1019_v26, 0.7853982  ;;  %v5789_v14 = vshll.u32 %v1336_v36, 8 }
 0x16e   : > { %v1210_v34 = vsel %vm5691_vm3, %v5483_v43, %v1207_v9  ;;  %v1085_v62 = vsub.s32 0, %v5769_v31  ;;  %v1347_v12 = vor.u32 %v1346_v46, %v1345_v4  ;;  %v1350_v13 = vor.u32 %v1349_v28, %v1348_v19 }
 0x16f   : > { %4740 = vcosq.f32 %v1210_v34  ;;  %v1353_v30 = vor.u32 %v1352_v25, %v1351_v54  ;;  %v1356_v45 = vor.u32 %v1355_v15, %v1354_v38  ;;  %v1344_v17 = vshrl.u32 %v4903_v49, %v1343_v27 }
 0x170   : > { %4742 = vsinq.f32 %v1210_v34  ;;  %v4110_v21 = vmin.u32 %v1085_v62, %v5769_v31  ;;  %v1357_v23 = vshll.u32 %v4907_v57, %v1342_v29  ;;  %v1358_v26 = vshrl.u32 %v4908_v1, %v1343_v27  ;;  %v4665_v62 = vld [vmem:[%s6467_s2 + $0x40] sm:$0xff]  }
 0x171   : > { %v1229_v58 = vshrl.u32 %v1228_v35, 23  ;;  %vm1220_vm3 = vcmp.eq.s32.totalorder %v5757_v11, 2  ;;  %vm2633_vm15 = vcmp.eq.s32.totalorder %v5760_v48, 2  ;;  %v1106_v10 = vsel %vm1021_vm1, %v1105_v47, %v1081_v16  ;;  %4427 = vmatprep.subr.bf16.mxu0 %v4665_v62 }
 0x172   : > { %v1087_v52 = vclz %v4110_v21  ;;  %vm1360_vm4 = vcmp.lt.s32.totalorder %v5762_v32, 1  ;;  %vm1361_vm5 = vcmp.lt.s32.totalorder %v5762_v32, 2  ;;  %vm2630_vm7 = vcmp.eq.s32.totalorder %v5760_v48, 0  ;;  %v4666_v21 = vld [vmem:[%s6467_s2] sm:$0xff]  }
 0x173   : > { %v1359_v0 = vor.u32 %v1358_v26, %v1357_v23  ;;  %vm1362_vm8 = vcmp.lt.s32.totalorder %v5762_v32, 3  ;;  %vm1363_vm9 = vcmp.lt.s32.totalorder %v5762_v32, 4  ;;  %v1364_v18 = vsel %vm1360_vm4, %v1344_v17, %v1347_v12  ;;  %4428 = vmatpush3.bf16.msra.mxu0 %v4666_v21 }
 0x174   : > { %vm1216_vm10 = vcmp.lt.s32.totalorder %v5757_v11, 2  ;;  %vm2629_vm11 = vcmp.lt.s32.totalorder %v5760_v48, 2  ;;  %v4111_v33 = vadd.s32 4294967294, %v1087_v52  ;;  %v1365_v3 = vsel %vm1363_vm9, %v1353_v30, 2102212464  ;;  %v4667_v11 = vld [vmem:[%s6467_s2 + $0x48] sm:$0xff]  }
 0x175   : > { %v1368_v8 = vsel %vm1360_vm4, %v1347_v12, %v1350_v13  ;;  %v1369_v56 = vsel %vm1363_vm9, %v1356_v45, 920167782  ;;  %vm1214_vm12 = vweird.f32 %v5483_v43  ;;  %v1366_v63 = vsel %vm1362_vm8, %v1350_v13, %v1365_v3  ;;  %4429 = vmatprep.subr.bf16.mxu0 %v4667_v11 }
 0x176   : > { %v1370_v20 = vsel %vm1362_vm8, %v1353_v30, %v1369_v56  ;;  %v1372_v61 = vsel %vm1360_vm4, %v1350_v13, %v1353_v30  ;;  %v1373_v24 = vsel %vm1363_vm9, %v1359_v0, 1326507024  ;;  %vm4112_vm13 = vcmp.lt.s32.totalorder %v4111_v33, 0 }
 0x177   : > { %v1371_v50 = vsel %vm1361_vm5, %v1368_v8, %v1370_v20  ;;  %v1374_v60 = vsel %vm1362_vm8, %v1356_v45, %v1373_v24  ;;  %v1225_v6 = vand.u32 2147483647, %v5755_v37  ;;  %v1090_v39 = vsel %vm4112_vm13, 0, %v4111_v33  ;;  %v4668_v33 = vld [vmem:[%s6467_s2 + $0x8] sm:$0xff]   ;;  %v4669_v24 = vld [vmem:[%s6467_s2 + $0x50] sm:$0xff]  }
 0x178   : > { %v1375_v29 = vsel %vm1361_vm5, %v1372_v61, %v1374_v60  ;;  %v5826_v41 = vmul.u32.u64.low %v5789_v14, %v1371_v50  ;;  %v5827_v16 = vmul.u32.u64.high %v5789_v14, %v1371_v50, %v5826_v41  ;;  %v1091_v42 = vsub.s32 32, %v1090_v39  ;;  %4430 = vmatpush3.bf16.msra.mxu0 %v4668_v33 }
 0x179   : > { %v4741_v27 = vpop.eup %4740  ;;  %v1095_v40 = vsub.s32 4294967266, %v1090_v39  ;;  %v1108_v36 = vsel %vm5783_vm0, 0, %v1106_v10  ;;  %v1367_v46 = vsel %vm1361_vm5, %v1364_v18, %v1366_v63  ;;  %v4117_v15 = vadd.s32 4294967169, %v1229_v58  ;;  %v375_v63 = vpop.permute.xlu1 %374  ;;  %4431 = vmatprep.subr.bf16.mxu0 %v4669_v24  ;;  %v4676_v24 = vld [vmem:[%s6467_s2 + $0x28] sm:$0xff]  }
 0x17a   : > { %v4743_v28 = vpop.eup %4742  ;;  %v1221_v35 = vxor.u32 2147483648, %v4741_v27  ;;  %v5835_v9 = vmul.u32.u64.low %v5789_v14, %v1375_v29  ;;  %v5836_v25 = vmul.u32.u64.high %v5789_v14, %v1375_v29, %v5835_v9  ;;  %v1092_v4 = vshll.u32 %v5769_v31, %v1090_v39  ;;  %v4670_v29 = vld [vmem:[%s6467_s2 + $0x10] sm:$0xff]  }
 0x17b   : > { %v1218_v34 = vxor.u32 2147483648, %v4743_v28  ;;  %v1093_v19 = vshrl.u32 %v1075_v5, %v1091_v42  ;;  %v1096_v54 = vadd.s32 127, %v1095_v40  ;;  %v1386_v38 = vadd.s32 1, %v5827_v16 }
 0x17c   : > { %v1222_v32 = vsel %vm1220_vm3, %v1221_v35, %v4743_v28  ;;  %v2635_v47 = vsel %vm2633_vm15, %v1221_v35, %v4743_v28  ;;  %v1235_v12 = vadd.s32 1, %v4117_v15  ;;  %v2523_v23 = vadd.s32 3, %v1108_v36  ;;  %4432 = vmatpush3.bf16.msra.mxu0 %v4670_v29 }
 0x17d   : > { %v1219_v31 = vsel %vm1217_vm6, %v4741_v27, %v1218_v34  ;;  %v2632_v5 = vsel %vm2630_vm7, %v4741_v27, %v1218_v34  ;;  %v1094_v13 = vor.u32 %v1093_v19, %v1092_v4  ;;  %v1097_v30 = vshll.u32 %v1096_v54, 23  ;;  %v4671_v4 = vld [vmem:[%s6467_s2 + $0x58] sm:$0xff]  }
 0x17e   : > { %v1223_v45 = vsel %vm1216_vm10, %v1219_v31, %v1222_v32  ;;  %v2636_v17 = vsel %vm2629_vm11, %v2632_v5, %v2635_v47  ;;  %vm1385_vm14 = vc.u32 %v5836_v25, %v5826_v41  ;;  %v1383_v10 = vmul.u32 %v5789_v14, %v1367_v46  ;;  %v4672_v47 = vld [vmem:[%s6467_s2 + $0x18] sm:$0xff]   ;;  %4433 = vmatprep.subr.bf16.mxu0 %v4671_v4 }
 0x17f   : > { %v1224_v26 = vsel %vm1214_vm12, nan, %v1223_v45  ;;  %v2637_v58 = vsel %vm1214_vm12, nan, %v2636_v17  ;;  %v1098_v52 = vor.u32 4788187, %v1097_v30  ;;  %v1387_v18 = vsel %vm1385_vm14, %v1386_v38, %v5827_v16 }
 0x180   : > { %v4311_v48 = vpack.c.bf16 %v1224_v26, %v1224_v26  ;;  %v4324_v0 = vpack.c.bf16 %v2637_v58, %v2637_v58  ;;  %vm1236_vm2 = vcmp.gt.s32.totalorder %v1235_v12, 0  ;;  %v1101_v8 = vcvt.s32.f32 %v1094_v13  ;;  %4434 = vmatpush3.bf16.msra.mxu0 %v4672_v47  ;;  %v4673_v26 = vld [vmem:[%s6467_s2 + $0x60] sm:$0xff]  }
 0x181   : > { %v1099_v3 = vand.u32 2147483647, %v1098_v52  ;;  %v1388_v43 = vadd.s32 %v1387_v18, %v1383_v10  ;;  %v1237_v56 = vsel %vm1236_vm2, %v1235_v12, 0  ;;  %v5877_v50 = vand.u32 8388607, %v1225_v6  ;;  %v4674_v10 = vld [vmem:[%s6467_s2 + $0x20] sm:$0xff]   ;;  %4435 = vmatprep.subr.bf16.mxu0 %v4673_v26 }
 0x182   : > { %1800 = vst [vmem:[#allocation2 + $0x38] sm:$0xf] %v4311_v48  ;;  %3218 = vst [vmem:[#allocation2 + $0x3c] sm:$0xf] %v4324_v0  ;;  %v1239_v14 = vand.u32 31, %v1237_v56  ;;  %v5880_v39 = vmul.f32 %v5480_v44, %v375_v63  ;;  %v5885_v27 = vand.u32 3, %v1108_v36  ;;  %vm1111_vm11 = vweird.f32 %v5524_v7 }
 0x183   : > { %v1102_v20 = vmul.f32 %v1101_v8, %v1099_v3  ;;  %v1389_v61 = vadd.s32 536870912, %v1388_v43  ;;  %v5887_v42 = vand.u32 3, %v2523_v23  ;;  %v5903_v54 = vshrl.u32 %v1237_v56, 5  ;;  %v4675_v63 = vld [vmem:[%s6467_s2 + $0x68] sm:$0xff]   ;;  %v4679_v26 = vld [vmem:[%s6467_s2 + $0x78] sm:$0xff]  }
 0x184   : > { %v1240_v60 = vsub.s32 32, %v1239_v14  ;;  %v1242_v46 = vshll.u32 %v4903_v49, %v1239_v14  ;;  %v1245_v36 = vshll.u32 %v4904_v51, %v1239_v14  ;;  %v1248_v62 = vshll.u32 %v4905_v53, %v1239_v14  ;;  %4436 = vmatpush3.bf16.msra.mxu0 %v4674_v10 }
 0x185   : > { %v1103_v16 = vxor.u32 2147483648, %v1102_v20  ;;  %v1390_v40 = vshrl.u32 %v1389_v61, 30  ;;  %v1251_v32 = vshll.u32 %v4906_v55, %v1239_v14  ;;  %v1233_v17 = vor.u32 8388608, %v5877_v50  ;;  %4437 = vmatprep.subr.bf16.mxu0 %v4675_v63 }
 0x186   : > { %v1243_v28 = vshrl.u32 %v4904_v51, %v1240_v60  ;;  %v1246_v35 = vshrl.u32 %v4905_v53, %v1240_v60  ;;  %v1249_v44 = vshrl.u32 %v4906_v55, %v1240_v60  ;;  %v1252_v34 = vshrl.u32 %v4907_v57, %v1240_v60 }
 0x187   : > { %v1104_v9 = vsel %vm1021_vm1, %v1103_v16, %v1102_v20  ;;  %v1391_v15 = vshll.u32 %v1390_v40, 30  ;;  %vm5914_vm1 = vcmp.le.f32.partialorder %v1328_v59, 0.7853982  ;;  %v1255_v13 = vshrl.u32 %v4908_v1, %v1240_v60 }
 0x188   : > { %v1107_v19 = vsel %vm5783_vm0, %v5524_v7, %v1104_v9  ;;  %v1244_v12 = vor.u32 %v1243_v28, %v1242_v46  ;;  %v1247_v21 = vor.u32 %v1246_v35, %v1245_v36  ;;  %v1250_v31 = vor.u32 %v1249_v44, %v1248_v62  ;;  %4438 = vmatpush3.bf16.msra.mxu0 %v4676_v24  ;;  %v4684_v24 = vld [vmem:[#allocation2 + $0x14] ss:$8 sps:$4 sm:$0xff]  }
 0x189   : > { %4744 = vcosq.f32 %v1107_v19  ;;  %v5910_v38 = vsub.s32 %v1388_v43, %v1391_v15  ;;  %v1253_v5 = vor.u32 %v1252_v34, %v1251_v32  ;;  %v1414_v45 = vsub.s32 4, %v1390_v40  ;;  %v4677_v15 = vld [vmem:[%s6467_s2 + $0x70] sm:$0xff]  }
 0x18a   : > { %4746 = vsinq.f32 %v1107_v19  ;;  %v1254_v23 = vshll.u32 %v4907_v57, %v1239_v14  ;;  %vm1330_vm0 = vcmp.lt.s32.totalorder %v5700_v22, 0  ;;  %v1241_v59 = vshrl.u32 %v4903_v49, %v1240_v60  ;;  %v4678_v32 = vld [vmem:[%s6467_s2 + $0x30] sm:$0xff]   ;;  %4439 = vmatprep.subr.bf16.mxu0 %v4677_v15 }
 0x18b   : > { %v1394_v30 = vsub.s32 0, %v5910_v38  ;;  %v1534_v58 = vand.u32 2147483647, %v5880_v39  ;;  %v1537_v52 = vand.u32 2139095040, %v5880_v39  ;;  %vm1117_vm3 = vcmp.eq.s32.totalorder %v5885_v27, 2 }
 0x18c   : > { %vm2529_vm15 = vcmp.eq.s32.totalorder %v5887_v42, 2  ;;  %v1256_v48 = vor.u32 %v1255_v13, %v1254_v23  ;;  %vm1257_vm4 = vcmp.lt.s32.totalorder %v5903_v54, 1  ;;  %vm1260_vm5 = vcmp.lt.s32.totalorder %v5903_v54, 4  ;;  %4440 = vmatpush3.bf16.msra.mxu0 %v4678_v32 }
 0x18d   : > { %v4122_v11 = vmin.u32 %v1394_v30, %v5910_v38  ;;  %vm1114_vm6 = vcmp.eq.s32.totalorder %v5885_v27, 0  ;;  %vm2526_vm7 = vcmp.eq.s32.totalorder %v5887_v42, 0  ;;  %vm1259_vm8 = vcmp.lt.s32.totalorder %v5903_v54, 3  ;;  %4441 = vmatprep.subr.bf16.mxu0 %v4679_v26 }
 0x18e   : > { %v1262_v0 = vsel %vm1260_vm5, %v1250_v31, 2102212464  ;;  %v1265_v18 = vsel %vm1257_vm4, %v1244_v12, %v1247_v21  ;;  %v1266_v33 = vsel %vm1260_vm5, %v1253_v5, 920167782  ;;  %vm1113_vm9 = vcmp.lt.s32.totalorder %v5885_v27, 2 }
 0x18f   : > { %vm2525_vm10 = vcmp.lt.s32.totalorder %v5887_v42, 2  ;;  %v1396_v3 = vclz %v4122_v11  ;;  %v1415_v8 = vsel %vm1330_vm0, %v1414_v45, %v1390_v40  ;;  %v1267_v43 = vsel %vm1259_vm8, %v1250_v31, %v1266_v33  ;;  %v4680_v11 = vld [vmem:[%s6467_s2 + $0x38] sm:$0xff]  }
 0x190   : > { %v5952_v56 = vshll.u32 %v1233_v17, 8  ;;  %vm1258_vm12 = vcmp.lt.s32.totalorder %v5903_v54, 2  ;;  %v1261_v14 = vsel %vm1257_vm4, %v1241_v59, %v1244_v12  ;;  %v1263_v20 = vsel %vm1259_vm8, %v1247_v21, %v1262_v0  ;;  %4442 = vmatpush3.bf16.msra.mxu0 %v4680_v11 }
 0x191   : > { %v1269_v61 = vsel %vm1257_vm4, %v1247_v21, %v1250_v31  ;;  %v1384_v50 = vadd.s32 %v5826_v41, %v5836_v25  ;;  %v4123_v60 = vadd.s32 4294967294, %v1396_v3  ;;  %v1268_v29 = vsel %vm1258_vm12, %v1265_v18, %v1267_v43  ;;  %v4681_v43 = vld [vmem:[#allocation2] ss:$8 sps:$4 sm:$0xff]  }
 0x192   : > { %v1270_v16 = vsel %vm1260_vm5, %v1256_v48, 1326507024  ;;  %v5977_v46 = vmul.u32.u64.low %v5952_v56, %v1268_v29  ;;  %v5978_v28 = vmul.u32.u64.high %v5952_v56, %v1268_v29, %v5977_v46  ;;  %v1538_v35 = vshrl.u32 %v1537_v52, 23 }
 0x193   : > { %v1271_v40 = vsel %vm1259_vm8, %v1253_v5, %v1270_v16  ;;  %v4745_v44 = vpop.eup %4744  ;;  %vm4124_vm13 = vcmp.lt.s32.totalorder %v4123_v60, 0  ;;  %v5983_v41 = vsel %vm5914_vm1, 0, %v1415_v8  ;;  %v1264_v25 = vsel %vm1258_vm12, %v1261_v14, %v1263_v20  ;;  %v370_v20 = vpop.permute.xlu0 %369 }
 0x194   : > { %v1272_v9 = vsel %vm1258_vm12, %v1269_v61, %v1271_v40  ;;  %v4747_v36 = vpop.eup %4746  ;;  %v1118_v34 = vxor.u32 2147483648, %v4745_v44  ;;  %v1399_v4 = vsel %vm4124_vm13, 0, %v4123_v60  ;;  %v1283_v13 = vadd.s32 1, %v5978_v28 }
 0x195   : > { %v5993_v19 = vmul.u32.u64.low %v5952_v56, %v1272_v9  ;;  %v5994_v62 = vmul.u32.u64.high %v5952_v56, %v1272_v9, %v5993_v19  ;;  %v1115_v47 = vxor.u32 2147483648, %v4747_v36  ;;  %v1400_v12 = vsub.s32 32, %v1399_v4 }
 0x196   : > { %v1401_v54 = vshll.u32 %v5910_v38, %v1399_v4  ;;  %v1404_v21 = vsub.s32 4294967266, %v1399_v4  ;;  %v1119_v31 = vsel %vm1117_vm3, %v1118_v34, %v4747_v36  ;;  %v2531_v5 = vsel %vm2529_vm15, %v1118_v34, %v4747_v36 }
 0x197   : > { %v4129_v30 = vadd.s32 4294967169, %v1538_v35  ;;  %v1116_v45 = vsel %vm1114_vm6, %v4745_v44, %v1115_v47  ;;  %v2528_v17 = vsel %vm2526_vm7, %v4745_v44, %v1115_v47  ;;  %v1402_v23 = vshrl.u32 %v1384_v50, %v1400_v12 }
 0x198   : > { %v1405_v38 = vadd.s32 127, %v1404_v21  ;;  %v1120_v59 = vsel %vm1113_vm9, %v1116_v45, %v1119_v31  ;;  %v2532_v52 = vsel %vm2525_vm10, %v2528_v17, %v2531_v5  ;;  %v1280_v10 = vmul.u32 %v5952_v56, %v1264_v25  ;;  %v4683_v56 = vld [vmem:[#allocation2 + $0x4] ss:$8 sps:$4 sm:$0xff]  }
 0x199   : > { %vm1282_vm14 = vc.u32 %v5994_v62, %v5977_v46  ;;  %v1121_v48 = vsel %vm1111_vm11, nan, %v1120_v59  ;;  %v2533_v0 = vsel %vm1111_vm11, nan, %v2532_v52  ;;  %v1403_v27 = vor.u32 %v1402_v23, %v1401_v54  ;;  %3471 = vmatprep.mubr.bf16.mxu0 %v4683_v56 }
 0x19a   : > { %v1406_v18 = vshll.u32 %v1405_v38, 23  ;;  %v4310_v42 = vpack.c.bf16 %v1121_v48, %v1121_v48  ;;  %v4323_v33 = vpack.c.bf16 %v2533_v0, %v2533_v0  ;;  %v1284_v3 = vsel %vm1282_vm14, %v1283_v13, %v5978_v28  ;;  %3472 = vmatmul.mubr.bf16.vlgmr.msra.gmra.mrb[0].mxu0 %v4681_v43  ;;  %v6033_v28 = vld [vmem:[%s6466_s1] ss:$0 sm:$0xff]  ;;  %v4686_v13 = vld [vmem:[#allocation2 + $0x10] ss:$8 sps:$4 sm:$0xff]  }
 0x19b   : > { %v1544_v8 = vadd.s32 1, %v4129_v30  ;;  %v1285_v14 = vadd.s32 %v1284_v3, %v1280_v10  ;;  %v2835_v61 = vadd.s32 3, %v5983_v41  ;;  %v1541_v7 = vand.u32 8388607, %v1534_v58  ;;  %3479 = vmatprep.mubr.bf16.mxu0 %v4684_v24  ;;  %v4687_v38 = vld [vmem:[#allocation2 + $0x24] ss:$8 sps:$4 sm:$0xff]  }
 0x19c   : > { %v1407_v63 = vor.u32 4788187, %v1406_v18  ;;  %1799 = vst [vmem:[#allocation2 + $0x30] sm:$0xf] %v4310_v42  ;;  %3217 = vst [vmem:[#allocation2 + $0x34] sm:$0xf] %v4323_v33  ;;  %v1410_v60 = vcvt.s32.f32 %v1403_v27  ;;  %v6036_v35 = vmul.f32 %v6033_v28, %v370_v20  ;;  %v1281_v10 = vadd.s32 %v5977_v46, %v5994_v62 }
 0x19d   : > { %vm1545_vm2 = vcmp.gt.s32.totalorder %v1544_v8, 0  ;;  %v1286_v29 = vadd.s32 536870912, %v1285_v14  ;;  %v6039_v9 = vand.u32 3, %v5983_v41  ;;  %vm1227_vm3 = vcmp.lt.s32.totalorder %v5755_v37, 0 }
 0x19e   : > { %v1408_v50 = vand.u32 2147483647, %v1407_v63  ;;  %v1546_v16 = vsel %vm1545_vm2, %v1544_v8, 0  ;;  %v6042_v34 = vand.u32 3, %v2835_v61  ;;  %v1542_v19 = vor.u32 8388608, %v1541_v7 }
 0x19f   : > { %v1548_v40 = vand.u32 31, %v1546_v16  ;;  %v1287_v25 = vshrl.u32 %v1286_v29, 30  ;;  %v6044_v32 = vshrl.u32 %v1546_v16, 5  ;;  %v1434_v54 = vand.u32 2139095040, %v6036_v35  ;;  %v4689_v63 = vld [vmem:[#allocation2 + $0x20] ss:$8 sps:$4 sm:$0xff]  }
 0x1a0   : > { %v1411_v44 = vmul.f32 %v1410_v60, %v1408_v50  ;;  %v6071_v48 = vshll.u32 %v1542_v19, 8  ;;  %vm2841_vm15 = vcmp.eq.s32.totalorder %v6042_v34, 2  ;;  %vm1423_vm6 = vcmp.eq.s32.totalorder %v6039_v9, 0 }
 0x1a1   : > { %v1549_v15 = vsub.s32 32, %v1548_v40  ;;  %v1288_v4 = vshll.u32 %v1287_v25, 30  ;;  %v1551_v45 = vshll.u32 %v4903_v49, %v1548_v40  ;;  %v1554_v17 = vshll.u32 %v4904_v51, %v1548_v40 }
 0x1a2   : > { %v1412_v36 = vxor.u32 2147483648, %v1411_v44  ;;  %v1557_v23 = vshll.u32 %v4905_v53, %v1548_v40  ;;  %v1311_v59 = vsub.s32 4, %v1287_v25  ;;  %v1560_v52 = vshll.u32 %v4906_v55, %v1548_v40  ;;  %3480 = vmatmul.mubr.bf16.gmra.mrb[4].mxu0 %v4686_v13 }
 0x1a3   : > { %v1552_v47 = vshrl.u32 %v4904_v51, %v1549_v15  ;;  %v1555_v12 = vshrl.u32 %v4905_v53, %v1549_v15  ;;  %v6051_v21 = vsub.s32 %v1285_v14, %v1288_v4  ;;  %v1558_v31 = vshrl.u32 %v4906_v55, %v1549_v15  ;;  %3487 = vmatprep.mubr.bf16.mxu0 %v4687_v38  ;;  %v4690_v16 = vld [vmem:[#allocation2 + $0x34] ss:$8 sps:$4 sm:$0xff]  }
 0x1a4   : > { %v1413_v41 = vsel %vm1330_vm0, %v1412_v36, %v1411_v44  ;;  %v1561_v5 = vshrl.u32 %v4907_v57, %v1549_v15  ;;  %vm6065_vm0 = vcmp.le.f32.partialorder %v1225_v6, 0.7853982  ;;  %v1550_v33 = vshrl.u32 %v4903_v49, %v1549_v15 }
 0x1a5   : > { %v1416_v30 = vsel %vm5914_vm1, %v5700_v22, %v1413_v41  ;;  %v1291_v26 = vsub.s32 0, %v6051_v21  ;;  %v1553_v11 = vor.u32 %v1552_v47, %v1551_v45  ;;  %v1556_v27 = vor.u32 %v1555_v12, %v1554_v17 }
 0x1a6   : > { %4748 = vcosq.f32 %v1416_v30  ;;  %v1559_v18 = vor.u32 %v1558_v31, %v1557_v23  ;;  %v1562_v42 = vor.u32 %v1561_v5, %v1560_v52  ;;  %v1563_v3 = vshll.u32 %v4907_v57, %v1548_v40 }
 0x1a7   : > { %4750 = vsinq.f32 %v1416_v30  ;;  %v4118_v0 = vmin.u32 %v1291_v26, %v6051_v21  ;;  %v1564_v6 = vshrl.u32 %v4908_v1, %v1549_v15  ;;  %v1435_v8 = vshrl.u32 %v1434_v54, 23 }
 0x1a8   : > { %vm1426_vm1 = vcmp.eq.s32.totalorder %v6039_v9, 2  ;;  %v1312_v62 = vsel %vm1227_vm3, %v1311_v59, %v1287_v25  ;;  %vm1566_vm4 = vcmp.lt.s32.totalorder %v6044_v32, 1  ;;  %vm1567_vm5 = vcmp.lt.s32.totalorder %v6044_v32, 2 }
 0x1a9   : > { %v1293_v46 = vclz %v4118_v0  ;;  %vm2838_vm7 = vcmp.eq.s32.totalorder %v6042_v34, 0  ;;  %v1565_v43 = vor.u32 %v1564_v6, %v1563_v3  ;;  %vm1568_vm8 = vcmp.lt.s32.totalorder %v6044_v32, 3 }
 0x1aa   : > { %vm1569_vm9 = vcmp.lt.s32.totalorder %v6044_v32, 4  ;;  %v1570_v56 = vsel %vm1566_vm4, %v1550_v33, %v1553_v11  ;;  %vm1422_vm10 = vcmp.lt.s32.totalorder %v6039_v9, 2  ;;  %vm2837_vm11 = vcmp.lt.s32.totalorder %v6042_v34, 2  ;;  %3488 = vmatmul.mubr.bf16.gmra.mrb[8].mxu0 %v4689_v63 }
 0x1ab   : > { %v4119_v14 = vadd.s32 4294967294, %v1293_v46  ;;  %v1571_v20 = vsel %vm1569_vm9, %v1559_v18, 2102212464  ;;  %v1574_v61 = vsel %vm1566_vm4, %v1553_v11, %v1556_v27  ;;  %v1575_v7 = vsel %vm1569_vm9, %v1562_v42, 920167782  ;;  %3495 = vmatprep.mubr.bf16.mxu0 %v4690_v16 }
 0x1ac   : > { %vm1420_vm12 = vweird.f32 %v5700_v22  ;;  %v1572_v24 = vsel %vm1568_vm8, %v1556_v27, %v1571_v20  ;;  %v1576_v50 = vsel %vm1568_vm8, %v1559_v18, %v1575_v7  ;;  %v1578_v60 = vsel %vm1566_vm4, %v1556_v27, %v1559_v18 }
 0x1ad   : > { %v1579_v29 = vsel %vm1569_vm9, %v1565_v43, 1326507024  ;;  %vm4120_vm13 = vcmp.lt.s32.totalorder %v4119_v14, 0  ;;  %v1577_v40 = vsel %vm1567_vm5, %v1574_v61, %v1576_v50  ;;  %v1431_v25 = vand.u32 2147483647, %v6036_v35 }
 0x1ae   : > { %v1580_v44 = vsel %vm1568_vm8, %v1562_v42, %v1579_v29  ;;  %v1296_v15 = vsel %vm4120_vm13, 0, %v4119_v14  ;;  %v6108_v4 = vmul.u32.u64.low %v6071_v48, %v1577_v40  ;;  %v6109_v19 = vmul.u32.u64.high %v6071_v48, %v1577_v40, %v6108_v4 }
 0x1af   : > { %v1581_v36 = vsel %vm1567_vm5, %v1578_v60, %v1580_v44  ;;  %v1297_v12 = vsub.s32 32, %v1296_v15  ;;  %v1301_v54 = vsub.s32 4294967266, %v1296_v15  ;;  %v1314_v41 = vsel %vm6065_vm0, 0, %v1312_v62 }
 0x1b0   : > { %v4749_v47 = vpop.eup %4748  ;;  %v1573_v31 = vsel %vm1567_vm5, %v1570_v56, %v1572_v24  ;;  %v6117_v30 = vmul.u32.u64.low %v6071_v48, %v1581_v36  ;;  %v6118_v45 = vmul.u32.u64.high %v6071_v48, %v1581_v36, %v6117_v30  ;;  %v4125_v17 = vadd.s32 4294967169, %v1435_v8 }
 0x1b1   : > { %v4751_v5 = vpop.eup %4750  ;;  %v1427_v13 = vxor.u32 2147483648, %v4749_v47  ;;  %v1298_v38 = vshll.u32 %v6051_v21, %v1296_v15  ;;  %v1299_v26 = vshrl.u32 %v1281_v10, %v1297_v12  ;;  %v1302_v59 = vadd.s32 127, %v1301_v54  ;;  %v4692_v21 = vld [vmem:[#allocation2 + $0x30] ss:$8 sps:$4 sm:$0xff]  }
 0x1b2   : > { %v1424_v23 = vxor.u32 2147483648, %v4751_v5  ;;  %v1592_v32 = vadd.s32 1, %v6109_v19  ;;  %v1441_v0 = vadd.s32 1, %v4125_v17  ;;  %v2731_v6 = vadd.s32 3, %v1314_v41  ;;  %3496 = vmatmul.mubr.bf16.gmra.mrb[12].mxu0 %v4692_v21  ;;  %v380_v17 = vpop.permute.xlu0 %379 }
 0x1b3   : > { %v1428_v52 = vsel %vm1426_vm1, %v1427_v13, %v4751_v5  ;;  %v2843_v11 = vsel %vm2841_vm15, %v1427_v13, %v4751_v5  ;;  %v1300_v42 = vor.u32 %v1299_v26, %v1298_v38  ;;  %v1303_v33 = vshll.u32 %v1302_v59, 23 }
 0x1b4   : > { %v1425_v27 = vsel %vm1423_vm6, %v4749_v47, %v1424_v23  ;;  %v2840_v18 = vsel %vm2838_vm7, %v4749_v47, %v1424_v23  ;;  %vm1591_vm14 = vc.u32 %v6118_v45, %v6108_v4  ;;  %v1589_v43 = vmul.u32 %v6071_v48, %v1573_v31 }
 0x1b5   : > { %v1429_v10 = vsel %vm1422_vm10, %v1425_v27, %v1428_v52  ;;  %v2844_v3 = vsel %vm2837_vm11, %v2840_v18, %v2843_v11  ;;  %v1304_v62 = vor.u32 4788187, %v1303_v33  ;;  %v1593_v63 = vsel %vm1591_vm14, %v1592_v32, %v6109_v19 }
 0x1b6   : > { %v1430_v8 = vsel %vm1420_vm12, nan, %v1429_v10  ;;  %v2845_v46 = vsel %vm1420_vm12, nan, %v2844_v3  ;;  %vm1442_vm2 = vcmp.gt.s32.totalorder %v1441_v0, 0  ;;  %v1307_v14 = vcvt.s32.f32 %v1300_v42 }
 0x1b7   : > { %v4313_v56 = vpack.c.bf16 %v1430_v8, %v1430_v8  ;;  %v4326_v9 = vpack.c.bf16 %v2845_v46, %v2845_v46  ;;  %v1305_v34 = vand.u32 2147483647, %v1304_v62  ;;  %v1594_v20 = vadd.s32 %v1593_v63, %v1589_v43 }
 0x1b8   : > { %v1443_v61 = vsel %vm1442_vm2, %v1441_v0, 0  ;;  %v1438_v22 = vand.u32 8388607, %v1431_v25  ;;  %v6144_v29 = vand.u32 3, %v1314_v41  ;;  %v6146_v16 = vand.u32 3, %v2731_v6 }
 0x1b9   : > { %1802 = vst [vmem:[#allocation2 + $0x48] sm:$0xf] %v4313_v56  ;;  %3220 = vst [vmem:[#allocation2 + $0x4c] sm:$0xf] %v4326_v9  ;;  %v1445_v7 = vand.u32 31, %v1443_v61  ;;  %v1308_v24 = vmul.f32 %v1307_v14, %v1305_v34  ;;  %v1595_v50 = vadd.s32 536870912, %v1594_v20  ;;  %v6167_v27 = vmul.f32 %v6033_v28, %v380_v17 }
 0x1ba   : > { %v1444_v5 = vshrl.u32 %v1443_v61, 5  ;;  %v1439_v2 = vor.u32 8388608, %v1438_v22  ;;  %vm2737_vm1 = vcmp.eq.s32.totalorder %v6146_v16, 2  ;;  %vm1320_vm5 = vcmp.eq.s32.totalorder %v6144_v29, 0 }
 0x1bb   : > { %v1446_v60 = vsub.s32 32, %v1445_v7  ;;  %v1309_v48 = vxor.u32 2147483648, %v1308_v24  ;;  %v1596_v40 = vshrl.u32 %v1595_v50, 30  ;;  %v1448_v44 = vshll.u32 %v4903_v49, %v1445_v7 }
 0x1bc   : > { %v1451_v54 = vshll.u32 %v4904_v51, %v1445_v7  ;;  %v1454_v13 = vshll.u32 %v4905_v53, %v1445_v7  ;;  %v1457_v30 = vshll.u32 %v4906_v55, %v1445_v7  ;;  %v1460_v0 = vshll.u32 %v4907_v57, %v1445_v7 }
 0x1bd   : > { %v1449_v15 = vshrl.u32 %v4904_v51, %v1446_v60  ;;  %v1452_v36 = vshrl.u32 %v4905_v53, %v1446_v60  ;;  %v1455_v19 = vshrl.u32 %v4906_v55, %v1446_v60  ;;  %v1310_v47 = vsel %vm1227_vm3, %v1309_v48, %v1308_v24 }
 0x1be   : > { %v1597_v12 = vshll.u32 %v1596_v40, 30  ;;  %v1458_v41 = vshrl.u32 %v4907_v57, %v1446_v60  ;;  %v1313_v31 = vsel %vm6065_vm0, %v5755_v37, %v1310_v47  ;;  %v1461_v11 = vshrl.u32 %v4908_v1, %v1446_v60 }
 0x1bf   : > { %4752 = vcosq.f32 %v1313_v31  ;;  %v1450_v38 = vor.u32 %v1449_v15, %v1448_v44  ;;  %v1453_v26 = vor.u32 %v1452_v36, %v1451_v54  ;;  %v1456_v59 = vor.u32 %v1455_v19, %v1454_v13 }
 0x1c0   : > { %v6161_v23 = vsub.s32 %v1594_v20, %v1597_v12  ;;  %4754 = vsinq.f32 %v1313_v31  ;;  %v1459_v52 = vor.u32 %v1458_v41, %v1457_v30  ;;  %vm1536_vm3 = vcmp.lt.s32.totalorder %v5880_v39, 0 }
 0x1c1   : > { %v1620_v18 = vsub.s32 4, %v1596_v40  ;;  %v1447_v42 = vshrl.u32 %v4903_v49, %v1446_v60  ;;  %vm1323_vm0 = vcmp.eq.s32.totalorder %v6144_v29, 2  ;;  %v1462_v21 = vor.u32 %v1461_v11, %v1460_v0 }
 0x1c2   : > { %v1600_v32 = vsub.s32 0, %v6161_v23  ;;  %vm1463_vm15 = vcmp.lt.s32.totalorder %v1444_v5, 1  ;;  %vm1466_vm4 = vcmp.lt.s32.totalorder %v1444_v5, 4  ;;  %vm2734_vm6 = vcmp.eq.s32.totalorder %v6146_v16, 0 }
 0x1c3   : > { %vm1465_vm7 = vcmp.lt.s32.totalorder %v1444_v5, 3  ;;  %v1468_v28 = vsel %vm1466_vm4, %v1456_v59, 2102212464  ;;  %v1471_v10 = vsel %vm1463_vm15, %v1450_v38, %v1453_v26  ;;  %v1472_v3 = vsel %vm1466_vm4, %v1459_v52, 920167782 }
 0x1c4   : > { %v4130_v33 = vmin.u32 %v1600_v32, %v6161_v23  ;;  %vm1319_vm8 = vcmp.lt.s32.totalorder %v6144_v29, 2  ;;  %vm2733_vm9 = vcmp.lt.s32.totalorder %v6146_v16, 2  ;;  %v1473_v8 = vsel %vm1465_vm7, %v1456_v59, %v1472_v3 }
 0x1c5   : > { %v1479_v46 = vshll.u32 %v1439_v2, 8  ;;  %v1640_v62 = vand.u32 2139095040, %v6167_v27  ;;  %vm1317_vm10 = vweird.f32 %v5755_v37  ;;  %vm1464_vm11 = vcmp.lt.s32.totalorder %v1444_v5, 2 }
 0x1c6   : > { %v1602_v6 = vclz %v4130_v33  ;;  %v1467_v43 = vsel %vm1463_vm15, %v1447_v42, %v1450_v38  ;;  %v1469_v56 = vsel %vm1465_vm7, %v1453_v26, %v1468_v28  ;;  %v1475_v9 = vsel %vm1463_vm15, %v1453_v26, %v1456_v59 }
 0x1c7   : > { %v1590_v63 = vadd.s32 %v6108_v4, %v6118_v45  ;;  %v1474_v14 = vsel %vm1464_vm11, %v1471_v10, %v1473_v8  ;;  %v1476_v20 = vsel %vm1466_vm4, %v1462_v21, 1326507024  ;;  %v1621_v61 = vsel %vm1536_vm3, %v1620_v18, %v1596_v40 }
 0x1c8   : > { %v4131_v34 = vadd.s32 4294967294, %v1602_v6  ;;  %v1477_v7 = vsel %vm1465_vm7, %v1459_v52, %v1476_v20  ;;  %v6193_v24 = vmul.u32.u64.low %v1479_v46, %v1474_v14  ;;  %v6194_v50 = vmul.u32.u64.high %v1479_v46, %v1474_v14, %v6193_v24 }
 0x1c9   : > { %v4753_v22 = vpop.eup %4752  ;;  %v1470_v60 = vsel %vm1464_vm11, %v1467_v43, %v1469_v56  ;;  %v1478_v48 = vsel %vm1464_vm11, %v1475_v9, %v1477_v7  ;;  %v1641_v44 = vshrl.u32 %v1640_v62, 23  ;;  %vm6223_vm14 = vcmp.le.f32.partialorder %v1534_v58, 0.7853982 }
 0x1ca   : > { %vm4132_vm12 = vcmp.lt.s32.totalorder %v4131_v34, 0  ;;  %v4755_v15 = vpop.eup %4754  ;;  %v1324_v4 = vxor.u32 2147483648, %v4753_v22  ;;  %v6197_v36 = vmul.u32.u64.low %v1479_v46, %v1478_v48  ;;  %v6198_v19 = vmul.u32.u64.high %v1479_v46, %v1478_v48, %v6197_v36 }
 0x1cb   : > { %v1605_v45 = vsel %vm4132_vm12, 0, %v4131_v34  ;;  %v1321_v47 = vxor.u32 2147483648, %v4755_v15  ;;  %v1489_v5 = vadd.s32 1, %v6194_v50  ;;  %v4133_v13 = vadd.s32 4294967169, %v1641_v44 }
 0x1cc   : > { %v1606_v12 = vsub.s32 32, %v1605_v45  ;;  %v1607_v40 = vshll.u32 %v6161_v23, %v1605_v45  ;;  %v1610_v54 = vsub.s32 4294967266, %v1605_v45  ;;  %v1325_v41 = vsel %vm1323_vm0, %v1324_v4, %v4755_v15 }
 0x1cd   : > { %v2739_v31 = vsel %vm2737_vm1, %v1324_v4, %v4755_v15  ;;  %v1322_v30 = vsel %vm1320_vm5, %v4753_v22, %v1321_v47  ;;  %v2736_v17 = vsel %vm2734_vm6, %v4753_v22, %v1321_v47  ;;  %v1486_v52 = vmul.u32 %v1479_v46, %v1470_v60 }
 0x1ce   : > { %v1608_v38 = vshrl.u32 %v1590_v63, %v1606_v12  ;;  %v1611_v26 = vadd.s32 127, %v1610_v54  ;;  %v1326_v23 = vsel %vm1319_vm8, %v1322_v30, %v1325_v41  ;;  %v2740_v59 = vsel %vm2733_vm9, %v2736_v17, %v2739_v31 }
 0x1cf   : > { %vm1488_vm13 = vc.u32 %v6198_v19, %v6193_v24  ;;  %v1327_v11 = vsel %vm1317_vm10, nan, %v1326_v23  ;;  %v2741_v32 = vsel %vm1317_vm10, nan, %v2740_v59  ;;  %v1647_v28 = vadd.s32 1, %v4133_v13 }
 0x1d0   : > { %v1609_v2 = vor.u32 %v1608_v38, %v1607_v40  ;;  %v1612_v0 = vshll.u32 %v1611_v26, 23  ;;  %v4312_v18 = vpack.c.bf16 %v1327_v11, %v1327_v11  ;;  %v4325_v42 = vpack.c.bf16 %v2741_v32, %v2741_v32 }
 0x1d1   : > { %v1490_v29 = vsel %vm1488_vm13, %v1489_v5, %v6194_v50  ;;  %v1623_v37 = vsel %vm6223_vm14, 0, %v1621_v61  ;;  %vm1648_vm2 = vcmp.gt.s32.totalorder %v1647_v28, 0  ;;  %v1637_v56 = vand.u32 2147483647, %v6167_v27 }
 0x1d2   : > { %v1613_v33 = vor.u32 4788187, %v1612_v0  ;;  %v1491_v21 = vadd.s32 %v1490_v29, %v1486_v52  ;;  %1801 = vst [vmem:[#allocation2 + $0x40] sm:$0xf] %v4312_v18  ;;  %3219 = vst [vmem:[#allocation2 + $0x44] sm:$0xf] %v4325_v42  ;;  %v1616_v3 = vcvt.s32.f32 %v1609_v2  ;;  %v1487_v54 = vadd.s32 %v6193_v24, %v6198_v19 }
 0x1d3   : > { %v1649_v8 = vsel %vm1648_vm2, %v1647_v28, 0  ;;  %v3043_v62 = vadd.s32 3, %v1623_v37  ;;  %v6235_v20 = vand.u32 3, %v1623_v37  ;;  %v1644_v60 = vand.u32 8388607, %v1637_v56 }
 0x1d4   : > { %v1614_v10 = vand.u32 2147483647, %v1613_v33  ;;  %v1492_v6 = vadd.s32 536870912, %v1491_v21  ;;  %v1651_v58 = vand.u32 31, %v1649_v8  ;;  %v1650_v45 = vshrl.u32 %v1649_v8, 5 }
 0x1d5   : > { %v6237_v61 = vand.u32 3, %v3043_v62  ;;  %vm1629_vm1 = vcmp.eq.s32.totalorder %v6235_v20, 0  ;;  %vm1628_vm6 = vcmp.lt.s32.totalorder %v6235_v20, 2  ;;  %vm1626_vm11 = vweird.f32 %v5880_v39 }
 0x1d6   : > { %v1617_v46 = vmul.f32 %v1616_v3, %v1614_v10  ;;  %v6229_v43 = vshrl.u32 %v1492_v6, 30  ;;  %v1652_v34 = vsub.s32 32, %v1651_v58  ;;  %v1654_v36 = vshll.u32 %v4903_v49, %v1651_v58 }
 0x1d7   : > { %v1657_v47 = vshll.u32 %v4904_v51, %v1651_v58  ;;  %v1660_v12 = vshll.u32 %v4905_v53, %v1651_v58  ;;  %v1663_v31 = vshll.u32 %v4906_v55, %v1651_v58  ;;  %vm3049_vm0 = vcmp.eq.s32.totalorder %v6237_v61, 2 }
 0x1d8   : > { %v1618_v9 = vxor.u32 2147483648, %v1617_v46  ;;  %v1494_v63 = vshll.u32 %v6229_v43, 30  ;;  %v1655_v48 = vshrl.u32 %v4904_v51, %v1652_v34  ;;  %v1658_v44 = vshrl.u32 %v4905_v53, %v1652_v34 }
 0x1d9   : > { %v4693_v50 = vld [vmem:[#allocation2 + $0x44] ss:$8 sps:$4 sm:$0xff]   ;;  %v4695_v15 = vld [vmem:[#allocation2 + $0x40] ss:$8 sps:$4 sm:$0xff]   ;;  %v1661_v40 = vshrl.u32 %v4906_v55, %v1652_v34  ;;  %v1664_v17 = vshrl.u32 %v4907_v57, %v1652_v34  ;;  %v1645_v53 = vor.u32 8388608, %v1644_v60  ;;  %v1666_v38 = vshll.u32 %v4907_v57, %v1651_v58 }
 0x1da   : > { %v1619_v14 = vsel %vm1536_vm3, %v1618_v9, %v1617_v46  ;;  %v6239_v7 = vsub.s32 %v1491_v21, %v1494_v63  ;;  %3503 = vmatprep.mubr.bf16.mxu0 %v4693_v50  ;;  %v1656_v5 = vor.u32 %v1655_v48, %v1654_v36  ;;  %v1659_v13 = vor.u32 %v1658_v44, %v1657_v47 }
 0x1db   : > { %v1622_v22 = vsel %vm6223_vm14, %v5880_v39, %v1619_v14  ;;  %3504 = vmatmul.mubr.bf16.gmra.mrb[16].mxu0 %v4695_v15  ;;  %v1662_v30 = vor.u32 %v1661_v40, %v1660_v12  ;;  %vm1632_vm3 = vcmp.eq.s32.totalorder %v6235_v20, 2  ;;  %v1667_v26 = vshrl.u32 %v4908_v1, %v1652_v34 }
 0x1dc   : > { %4756 = vcosq.f32 %v1622_v22  ;;  %v1497_v4 = vsub.s32 0, %v6239_v7  ;;  %vm3046_vm15 = vcmp.eq.s32.totalorder %v6237_v61, 0  ;;  %v1653_v55 = vshrl.u32 %v4903_v49, %v1652_v34 }
 0x1dd   : > { %4758 = vsinq.f32 %v1622_v22  ;;  %v1665_v24 = vor.u32 %v1664_v17, %v1663_v31  ;;  %vm1669_vm4 = vcmp.lt.s32.totalorder %v1650_v45, 1  ;;  %vm1670_vm5 = vcmp.lt.s32.totalorder %v1650_v45, 2 }
 0x1de   : > { %v4126_v41 = vmin.u32 %v1497_v4, %v6239_v7  ;;  %vm3045_vm7 = vcmp.lt.s32.totalorder %v6237_v61, 2  ;;  %v1668_v23 = vor.u32 %v1667_v26, %v1666_v38  ;;  %vm1671_vm8 = vcmp.lt.s32.totalorder %v1650_v45, 3 }
 0x1df   : > { %vm1672_vm9 = vcmp.lt.s32.totalorder %v1650_v45, 4  ;;  %v1673_v57 = vsel %vm1669_vm4, %v1653_v55, %v1656_v5  ;;  %v1677_v1 = vsel %vm1669_vm4, %v1656_v5, %v1659_v13  ;;  %v1681_v32 = vsel %vm1669_vm4, %v1659_v13, %v1662_v30 }
 0x1e0   : > { %v1499_v51 = vclz %v4126_v41  ;;  %v1674_v59 = vsel %vm1672_vm9, %v1662_v30, 2102212464  ;;  %v1678_v52 = vsel %vm1672_vm9, %v1665_v24, 920167782  ;;  %v1682_v18 = vsel %vm1672_vm9, %v1668_v23, 1326507024 }
 0x1e1   : > { %v1675_v11 = vsel %vm1671_vm8, %v1659_v13, %v1674_v59  ;;  %v1679_v49 = vsel %vm1671_vm8, %v1662_v30, %v1678_v52  ;;  %v1685_v42 = vshll.u32 %v1645_v53, 8  ;;  %v1683_v28 = vsel %vm1671_vm8, %v1665_v24, %v1682_v18 }
 0x1e2   : > { %v4127_v19 = vadd.s32 4294967294, %v1499_v51  ;;  %v1680_v0 = vsel %vm1670_vm5, %v1677_v1, %v1679_v49  ;;  %v1676_v21 = vsel %vm1670_vm5, %v1673_v57, %v1675_v11  ;;  %v1684_v3 = vsel %vm1670_vm5, %v1681_v32, %v1683_v28 }
 0x1e3   : > { %v6273_v6 = vmul.u32.u64.low %v1685_v42, %v1680_v0  ;;  %v6274_v8 = vmul.u32.u64.high %v1685_v42, %v1680_v0, %v6273_v6  ;;  %v6282_v14 = vmul.u32.u64.low %v1685_v42, %v1684_v3  ;;  %v6283_v50 = vmul.u32.u64.high %v1685_v42, %v1684_v3, %v6282_v14 }
 0x1e4   : > { %vm4128_vm10 = vcmp.lt.s32.totalorder %v4127_v19, 0  ;;  %v1517_v5 = vsub.s32 4, %v6229_v43  ;;  %vm1433_vm13 = vcmp.lt.s32.totalorder %v6036_v35, 0  ;;  %vm1432_vm14 = vcmp.le.f32.partialorder %v1431_v25, 0.7853982 }
 0x1e5   : > { %v1502_v2 = vsel %vm4128_vm10, 0, %v4127_v19  ;;  %v1695_v4 = vadd.s32 1, %v6274_v8  ;;  %vm1694_vm12 = vc.u32 %v6283_v50, %v6273_v6  ;;  %vm1638_vm8 = vcmp.le.f32.partialorder %v1637_v56, 0.7853982 }
 0x1e6   : > { %v4757_v29 = vpop.eup %4756  ;;  %v1503_v16 = vsub.s32 32, %v1502_v2  ;;  %v1507_v33 = vsub.s32 4294967266, %v1502_v2  ;;  %v1504_v62 = vshll.u32 %v6239_v7, %v1502_v2  ;;  %v1518_v53 = vsel %vm1433_vm13, %v1517_v5, %v6229_v43 }
 0x1e7   : > { %v4759_v37 = vpop.eup %4758  ;;  %v1633_v10 = vxor.u32 2147483648, %v4757_v29  ;;  %v1696_v39 = vsel %vm1694_vm12, %v1695_v4, %v6274_v8  ;;  %v1520_v55 = vsel %vm1432_vm14, 0, %v1518_v53 }
 0x1e8   : > { %v1630_v46 = vxor.u32 2147483648, %v4759_v37  ;;  %v1505_v58 = vshrl.u32 %v1487_v54, %v1503_v16  ;;  %v1508_v9 = vadd.s32 127, %v1507_v33  ;;  %v1692_v54 = vmul.u32 %v1685_v42, %v1676_v21 }
 0x1e9   : > { %v1634_v63 = vsel %vm1632_vm3, %v1633_v10, %v4759_v37  ;;  %v3051_v34 = vsel %vm3049_vm0, %v1633_v10, %v4759_v37  ;;  %v2939_v23 = vadd.s32 3, %v1520_v55  ;;  %v1524_v59 = vand.u32 3, %v1520_v55  ;;  %v4702_v55 = vld [vmem:[%s6469_s4 + $0x8] sm:$0xff]  }
 0x1ea   : > { %v1631_v22 = vsel %vm1629_vm1, %v4757_v29, %v1630_v46  ;;  %v3048_v60 = vsel %vm3046_vm15, %v4757_v29, %v1630_v46  ;;  %v1506_v48 = vor.u32 %v1505_v58, %v1504_v62  ;;  %v1509_v44 = vshll.u32 %v1508_v9, 23 }
 0x1eb   : > { %v1635_v7 = vsel %vm1628_vm6, %v1631_v22, %v1634_v63  ;;  %v3052_v15 = vsel %vm3045_vm7, %v3048_v60, %v3051_v34  ;;  %v1697_v20 = vadd.s32 %v1696_v39, %v1692_v54  ;;  %v2940_v52 = vand.u32 3, %v2939_v23  ;;  %v4704_v23 = vld [vmem:[%s6469_s4 + $0x18] sm:$0xff]  }
 0x1ec   : > { %v1636_v45 = vsel %vm1626_vm11, nan, %v1635_v7  ;;  %v3053_v36 = vsel %vm1626_vm11, nan, %v3052_v15  ;;  %v1510_v47 = vor.u32 4788187, %v1509_v44  ;;  %v1513_v31 = vcvt.s32.f32 %v1506_v48 }
 0x1ed   : > { %v4315_v12 = vpack.c.bf16 %v1636_v45, %v1636_v45  ;;  %v4328_v40 = vpack.c.bf16 %v3053_v36, %v3053_v36  ;;  %v1698_v13 = vadd.s32 536870912, %v1697_v20  ;;  %vm1525_vm2 = vcmp.lt.s32.totalorder %v1524_v59, 2 }
 0x1ee   : > { %v1511_v41 = vand.u32 2147483647, %v1510_v47  ;;  %vm1526_vm3 = vcmp.eq.s32.totalorder %v1524_v59, 0  ;;  %vm1529_vm0 = vcmp.eq.s32.totalorder %v1524_v59, 2  ;;  %vm2942_vm15 = vcmp.eq.s32.totalorder %v2940_v52, 0  ;;  %v4705_v59 = vld [vmem:[%s6469_s4 + $0x20] sm:$0xff]  }
 0x1ef   : > { %1804 = vst [vmem:[#allocation2 + $0x58] sm:$0xf] %v4315_v12  ;;  %3222 = vst [vmem:[#allocation2 + $0x5c] sm:$0xf] %v4328_v40  ;;  %v1699_v17 = vshrl.u32 %v1698_v13, 30  ;;  %vm2945_vm4 = vcmp.eq.s32.totalorder %v2940_v52, 2  ;;  %v1693_v42 = vadd.s32 %v6273_v6, %v6283_v50  ;;  %vm1523_vm6 = vweird.f32 %v6036_v35 }
 0x1f0   : > { %v1514_v61 = vmul.f32 %v1513_v31, %v1511_v41  ;;  %vm2941_vm5 = vcmp.lt.s32.totalorder %v2940_v52, 2  ;;  %vm1639_vm7 = vcmp.lt.s32.totalorder %v6167_v27, 0  ;;  %v4909_v39 = vmov 0.0  }
 0x1f1   : > { %v1700_v26 = vshll.u32 %v1699_v17, 30  ;;  %v1723_v60 = vsub.s32 4, %v1699_v17  ;;  %4500 = vmatprep.subr.bf16.mxu1 %v4909_v39 }
 0x1f2   : > { %v1515_v30 = vxor.u32 2147483648, %v1514_v61 }
 0x1f3   : > { %v1701_v24 = vsub.s32 %v1697_v20, %v1700_v26  ;;  %v1724_v15 = vsel %vm1639_vm7, %v1723_v60, %v1699_v17 }
 0x1f4   : > { %v1516_v51 = vsel %vm1433_vm13, %v1515_v30, %v1514_v61  ;;  %v1726_v45 = vsel %vm1638_vm8, 0, %v1724_v15  ;;  %v4701_v61 = vld [vmem:[%s6469_s4] sm:$0xff]  }
 0x1f5   : > { %v1519_v38 = vsel %vm1432_vm14, %v6036_v35, %v1516_v51  ;;  %v1703_v19 = vsub.s32 0, %v1701_v24  ;;  %v3147_v36 = vadd.s32 3, %v1726_v45  ;;  %v1730_v47 = vand.u32 3, %v1726_v45  ;;  %4501 = vmatpush3.bf16.msra.mxu1 %v4701_v61 }
 0x1f6   : > { %4760 = vcosq.f32 %v1519_v38  ;;  %4502 = vmatprep.subr.bf16.mxu1 %v4909_v39 }
 0x1f7   : > { %4762 = vsinq.f32 %v1519_v38  ;;  %v4134_v57 = vmin.u32 %v1703_v19, %v1701_v24  ;;  %v3148_v12 = vand.u32 3, %v3147_v36  ;;  %vm1735_vm9 = vcmp.eq.s32.totalorder %v1730_v47, 2 }
 0x1f8   : > { %vm1732_vm11 = vcmp.eq.s32.totalorder %v1730_v47, 0  ;;  %vm1731_vm13 = vcmp.lt.s32.totalorder %v1730_v47, 2 }
 0x1f9   : > { %v1705_v1 = vclz %v4134_v57  ;;  %vm3153_vm10 = vcmp.eq.s32.totalorder %v3148_v12, 2  ;;  %vm3150_vm12 = vcmp.eq.s32.totalorder %v3148_v12, 0  ;;  %vm3149_vm14 = vcmp.lt.s32.totalorder %v3148_v12, 2  ;;  %4503 = vmatpush3.bf16.msra.mxu1 %v4702_v55 }
 0x1fa   : > { %4504 = vmatprep.subr.bf16.mxu1 %v4909_v39 }
 0x1fb   : > { %v4135_v11 = vadd.s32 4294967294, %v1705_v1  ;;  %v4706_v1 = vld [vmem:[%s6469_s4 + $0x28] sm:$0xff]  }
 0x1fd   : > { %vm4136_vm1 = vcmp.lt.s32.totalorder %v4135_v11, 0 }
 0x1fe   : > { %v1708_v2 = vsel %vm4136_vm1, 0, %v4135_v11  ;;  %v6341_v11 = vld [vmem:[%s6468_s3] ss:$0 sm:$0xff] }
 0x1ff   : > { %v1709_v29 = vsub.s32 32, %v1708_v2  ;;  %v1713_v21 = vsub.s32 4294967266, %v1708_v2  ;;  %v1710_v46 = vshll.u32 %v1701_v24, %v1708_v2 }
 0x200   : > { %v4761_v49 = vpop.eup %4760 }
 0x201   : > { %v4763_v25 = vpop.eup %4762  ;;  %v1530_v43 = vxor.u32 2147483648, %v4761_v49  ;;  %v1711_v10 = vshrl.u32 %v1693_v42, %v1709_v29  ;;  %v1714_v62 = vadd.s32 127, %v1713_v21 }
 0x202   : > { %v1527_v32 = vxor.u32 2147483648, %v4763_v25 }
 0x203   : > { %v1531_v0 = vsel %vm1529_vm0, %v1530_v43, %v4763_v25  ;;  %v2947_v18 = vsel %vm2945_vm4, %v1530_v43, %v4763_v25  ;;  %v1712_v63 = vor.u32 %v1711_v10, %v1710_v46  ;;  %v1715_v34 = vshll.u32 %v1714_v62, 23 }
 0x204   : > { %v1528_v16 = vsel %vm1526_vm3, %v4761_v49, %v1527_v32  ;;  %v2944_v33 = vsel %vm2942_vm15, %v4761_v49, %v1527_v32  ;;  %vm4910_vm3 = vmmov 0  }
 0x205   : > { %v1532_v28 = vsel %vm1525_vm2, %v1528_v16, %v1531_v0  ;;  %v2948_v37 = vsel %vm2941_vm5, %v2944_v33, %v2947_v18  ;;  %v1716_v6 = vor.u32 4788187, %v1715_v34  ;;  %v1719_v50 = vcvt.s32.f32 %v1712_v63  ;;  %4516 = vmatprep.mubr.msk.bf16.mxu1 %vm4910_vm3, %v4909_v39 }
 0x206   : > { %v1533_v3 = vsel %vm1523_vm6, nan, %v1532_v28  ;;  %v2949_v8 = vsel %vm1523_vm6, nan, %v2948_v37  ;;  %vm1729_vm2 = vweird.f32 %v6167_v27 }
 0x207   : > { %v4314_v58 = vpack.c.bf16 %v1533_v3, %v1533_v3  ;;  %v4327_v9 = vpack.c.bf16 %v2949_v8, %v2949_v8  ;;  %v1717_v14 = vand.u32 2147483647, %v1716_v6 }
 0x209   : > { %1803 = vst [vmem:[#allocation2 + $0x50] sm:$0xf] %v4314_v58  ;;  %3221 = vst [vmem:[#allocation2 + $0x54] sm:$0xf] %v4327_v9  ;;  %v1720_v22 = vmul.f32 %v1719_v50, %v1717_v14 }
 0x20b   : > { %v1721_v35 = vxor.u32 2147483648, %v1720_v22 }
 0x20d   : > { %v1722_v7 = vsel %vm1639_vm7, %v1721_v35, %v1720_v22 }
 0x20e   : > { %v1725_v4 = vsel %vm1638_vm8, %v6167_v27, %v1722_v7  ;;  %v4703_v27 = vld [vmem:[%s6469_s4 + $0x10] sm:$0xff]  }
 0x20f   : > { %4764 = vcosq.f32 %v1725_v4  ;;  %4505 = vmatpush3.bf16.msra.mxu1 %v4703_v27 }
 0x210   : > { %v4696_v48 = vld [vmem:[#allocation2 + $0x54] ss:$8 sps:$4 sm:$0xff]   ;;  %v4698_v44 = vld [vmem:[#allocation2 + $0x50] ss:$8 sps:$4 sm:$0xff]   ;;  %4766 = vsinq.f32 %v1725_v4  ;;  %4506 = vmatprep.subr.bf16.mxu1 %v4909_v39 }
 0x211   : > { %3511 = vmatprep.mubr.bf16.mxu0 %v4696_v48 }
 0x212   : > { %3512 = vmatmul.mubr.bf16.gmra.mrb[20].mxu0 %v4698_v44  ;;  %v4707_v44 = vld [vmem:[%s6469_s4 + $0x30] sm:$0xff]  }
 0x213   : > { %4507 = vmatpush3.bf16.msra.mxu1 %v4704_v23 }
 0x214   : > { %4508 = vmatprep.subr.bf16.mxu1 %v4909_v39 }
 0x217   : > { %4509 = vmatpush3.bf16.msra.mxu1 %v4705_v59 }
 0x218   : > { %4510 = vmatprep.subr.bf16.mxu1 %v4909_v39 }
 0x219   : > { %v4765_v40 = vpop.eup %4764 }
 0x21a   : > { %v4767_v54 = vpop.eup %4766  ;;  %v1736_v41 = vxor.u32 2147483648, %v4765_v40 }
 0x21b   : > { %v1733_v31 = vxor.u32 2147483648, %v4767_v54  ;;  %4511 = vmatpush3.bf16.msra.mxu1 %v4706_v1 }
 0x21c   : > { %v1737_v56 = vsel %vm1735_vm9, %v1736_v41, %v4767_v54  ;;  %v3155_v20 = vsel %vm3153_vm10, %v1736_v41, %v4767_v54  ;;  %4512 = vmatprep.subr.bf16.mxu1 %v4909_v39 }
 0x21d   : > { %v1734_v5 = vsel %vm1732_vm11, %v4765_v40, %v1733_v31  ;;  %v3152_v13 = vsel %vm3150_vm12, %v4765_v40, %v1733_v31  ;;  %v4708_v31 = vld [vmem:[%s6469_s4 + $0x38] sm:$0xff]  }
 0x21e   : > { %v1738_v30 = vsel %vm1731_vm13, %v1734_v5, %v1737_v56  ;;  %v3156_v17 = vsel %vm3149_vm14, %v3152_v13, %v3155_v20 }
 0x21f   : > { %v1739_v51 = vsel %vm1729_vm2, nan, %v1738_v30  ;;  %v3157_v53 = vsel %vm1729_vm2, nan, %v3156_v17  ;;  %4513 = vmatpush3.bf16.msra.mxu1 %v4707_v44 }
 0x220   : > { %v4316_v38 = vpack.c.bf16 %v1739_v51, %v1739_v51  ;;  %v4329_v26 = vpack.c.bf16 %v3157_v53, %v3157_v53  ;;  %4514 = vmatprep.subr.bf16.mxu1 %v4909_v39 }
 0x222   : > { %1805 = vst [vmem:[#allocation2 + $0x60] sm:$0xf] %v4316_v38  ;;  %3223 = vst [vmem:[#allocation2 + $0x64] sm:$0xf] %v4329_v26 }
 0x223   : > { %4515 = vmatpush3.bf16.msra.mxu1 %v4708_v31 }
 0x229   : > { %v3236_v24 = vld [vmem:[#allocation2 + $0x60] sm:$0xff] }
 0x22a   : > { %v4229_v19 = vcombine.high %v3236_v24, %v3236_v24  ;;  %v4228_v57 = vcombine.low %v3236_v24, %v3236_v24 }
 0x22c   : > { %3519 = vmatprep.mubr.bf16.mxu0 %v4229_v19 }
 0x22d   : > { %3520 = vmatmul.mubr.bf16.gmra.mrb[24].mxu0 %v4228_v57 }
 0x26d   : > { %v4443_v52 = vpop.f32.mrb[0].mxu0 }
 0x26e   : > { %v4444_v49 = vpop.f32.mrb[1].mxu0 }
 0x26f   : > { %v4445_v25 = vadd.f32 %v4444_v49, %v4443_v52  ;;  %v4446_v43 = vpop.f32.mrb[2].mxu0 }
 0x270   : > { %v4447_v32 = vpop.f32.mrb[3].mxu0 }
 0x271   : > { %v6344_v2 = vadd.f32 %v4445_v25, %v6341_v11  ;;  %v4448_v0 = vadd.f32 %v4447_v32, %v4446_v43 }
 0x273   : > { %v4246_v18 = vmul.f32 -1.442695, %v6344_v2  ;;  %v3477_v42 = vadd.f32 %v4448_v0, %v6341_v11 }
 0x275   : > { %4768 = vpow2.f32 %v4246_v18  ;;  %v4247_v29 = vmul.f32 -1.442695, %v3477_v42  ;;  %v4449_v16 = vpop.f32.mrb[4].mxu0 }
 0x276   : > { %v4450_v33 = vpop.f32.mrb[5].mxu0 }
 0x277   : > { %4770 = vpow2.f32 %v4247_v29  ;;  %v4451_v21 = vadd.f32 %v4450_v33, %v4449_v16  ;;  %v4452_v28 = vpop.f32.mrb[6].mxu0 }
 0x278   : > { %v4453_v37 = vpop.f32.mrb[7].mxu0 }
 0x279   : > { %v6349_v10 = vadd.f32 %v4451_v21, %v6341_v11  ;;  %v4454_v3 = vadd.f32 %v4453_v37, %v4452_v28 }
 0x27b   : > { %v4248_v8 = vmul.f32 -1.442695, %v6349_v10  ;;  %v6353_v46 = vadd.f32 %v4454_v3, %v6341_v11 }
 0x27d   : > { %4772 = vpow2.f32 %v4248_v8  ;;  %v4249_v62 = vmul.f32 -1.442695, %v6353_v46  ;;  %v4455_v58 = vpop.f32.mrb[8].mxu0 }
 0x27e   : > { %v4456_v9 = vpop.f32.mrb[9].mxu0 }
 0x27f   : > { %v4769_v63 = vpop.eup %4768  ;;  %4774 = vpow2.f32 %v4249_v62  ;;  %v4457_v34 = vadd.f32 %v4456_v9, %v4455_v58  ;;  %v4458_v6 = vpop.f32.mrb[10].mxu0 }
 0x280   : > { %v3566_v14 = vadd.f32 1.0, %v4769_v63  ;;  %v4459_v50 = vpop.f32.mrb[11].mxu0 }
 0x281   : > { %v4771_v22 = vpop.eup %4770  ;;  %v6357_v60 = vadd.f32 %v4457_v34, %v6341_v11  ;;  %v4460_v35 = vadd.f32 %v4459_v50, %v4458_v6 }
 0x282   : > { %4776 = vrcp.f32 %v3566_v14  ;;  %v3567_v48 = vadd.f32 1.0, %v4771_v22 }
 0x283   : > { %v4250_v7 = vmul.f32 -1.442695, %v6357_v60  ;;  %v3493_v15 = vadd.f32 %v4460_v35, %v6341_v11 }
 0x284   : > { %4778 = vrcp.f32 %v3567_v48 }
 0x285   : > { %4780 = vpow2.f32 %v4250_v7  ;;  %v4251_v4 = vmul.f32 -1.442695, %v3493_v15  ;;  %v4461_v45 = vpop.f32.mrb[12].mxu0 }
 0x286   : > { %v4462_v36 = vpop.f32.mrb[13].mxu0 }
 0x287   : > { %v4773_v47 = vpop.eup %4772  ;;  %4782 = vpow2.f32 %v4251_v4  ;;  %v4463_v12 = vadd.f32 %v4462_v36, %v4461_v45  ;;  %v4464_v40 = vpop.f32.mrb[14].mxu0 }
 0x288   : > { %v3568_v54 = vadd.f32 1.0, %v4773_v47  ;;  %v4465_v41 = vpop.f32.mrb[15].mxu0 }
 0x289   : > { %v4775_v56 = vpop.eup %4774  ;;  %v3498_v20 = vadd.f32 %v4463_v12, %v6341_v11  ;;  %v4466_v61 = vadd.f32 %v4465_v41, %v4464_v40 }
 0x28a   : > { %4784 = vrcp.f32 %v3568_v54  ;;  %v3569_v5 = vadd.f32 1.0, %v4775_v56 }
 0x28b   : > { %v4252_v13 = vmul.f32 -1.442695, %v3498_v20  ;;  %v3501_v30 = vadd.f32 %v4466_v61, %v6341_v11 }
 0x28c   : > { %v4777_v17 = vpop.eup %4776  ;;  %4786 = vrcp.f32 %v3569_v5 }
 0x28d   : > { %4788 = vpow2.f32 %v4252_v13  ;;  %v4253_v51 = vmul.f32 -1.442695, %v3501_v30  ;;  %v3605_v26 = vmul.f32 %v4777_v17, %v6344_v2 }
 0x28e   : > { %v4779_v53 = vpop.eup %4778 }
 0x28f   : > { %v4781_v38 = vpop.eup %4780  ;;  %v3606_v55 = vmul.f32 %v4779_v53, %v3477_v42  ;;  %4790 = vpow2.f32 %v4253_v51 }
 0x290   : > { %v3570_v27 = vadd.f32 1.0, %v4781_v38 }
 0x291   : > { %v4783_v24 = vpop.eup %4782  ;;  %v4360_v19 = vpack.c.bf16 %v3606_v55, %v3605_v26 }
 0x292   : > { %4792 = vrcp.f32 %v3570_v27  ;;  %v3571_v23 = vadd.f32 1.0, %v4783_v24 }
 0x293   : > { %4361 = vst [vmem:[#allocation3] sm:$0xff] %v4360_v19  }
 0x294   : > { %v4785_v57 = vpop.eup %4784  ;;  %4794 = vrcp.f32 %v3571_v23 }
 0x295   : > { %v3607_v52 = vmul.f32 %v4785_v57, %v6349_v10 }
 0x296   : > { %v4787_v59 = vpop.eup %4786 }
 0x297   : > { %v4789_v1 = vpop.eup %4788  ;;  %v3608_v49 = vmul.f32 %v4787_v59, %v6353_v46 }
 0x298   : > { %v3572_v25 = vadd.f32 1.0, %v4789_v1 }
 0x299   : > { %v4791_v43 = vpop.eup %4790  ;;  %v4365_v32 = vpack.c.bf16 %v3608_v49, %v3607_v52 }
 0x29a   : > { %4796 = vrcp.f32 %v3572_v25  ;;  %v3573_v2 = vadd.f32 1.0, %v4791_v43  ;;  %v4709_v0 = vld [vmem:[#allocation3] sm:$0xff]  }
 0x29b   : > { %4417 = vst [vmem:[#allocation3 + $0x8] sm:$0xff] %v4365_v32   ;;  %4517 = vmatmul.mubr.bf16.vlgmr.msra.gmra.mrb[0].mxu1 %v4709_v0 }
 0x29c   : > { %v4793_v18 = vpop.eup %4792  ;;  %4798 = vrcp.f32 %v3573_v2  ;;  %4520 = vmatprep.mubr.msk.bf16.mxu1 %vm4910_vm3, %v4909_v39 }
 0x29d   : > { %v3609_v29 = vmul.f32 %v4793_v18, %v6357_v60 }
 0x29e   : > { %v4795_v42 = vpop.eup %4794 }
 0x29f   : > { %v3610_v16 = vmul.f32 %v4795_v42, %v3493_v15 }
 0x2a1   : > { %v4370_v33 = vpack.c.bf16 %v3610_v16, %v3609_v29 }
 0x2a2   : > { %v4710_v21 = vld [vmem:[#allocation3 + $0x8] sm:$0xff]  }
 0x2a3   : > { %4418 = vst [vmem:[#allocation3 + $0x10] sm:$0xff] %v4370_v33   ;;  %4521 = vmatmul.mubr.bf16.gmra.mrb[4].mxu1 %v4710_v21 }
 0x2a4   : > { %v4797_v28 = vpop.eup %4796  ;;  %4524 = vmatprep.mubr.msk.bf16.mxu1 %vm4910_vm3, %v4909_v39 }
 0x2a5   : > { %v3611_v10 = vmul.f32 %v4797_v28, %v3498_v20 }
 0x2a6   : > { %v4799_v37 = vpop.eup %4798 }
 0x2a7   : > { %v3612_v3 = vmul.f32 %v4799_v37, %v3501_v30 }
 0x2a9   : > { %v4375_v8 = vpack.c.bf16 %v3612_v3, %v3611_v10 }
 0x2aa   : > { %v4711_v46 = vld [vmem:[#allocation3 + $0x10] sm:$0xff]  }
 0x2ab   : > { %4419 = vst [vmem:[#allocation3 + $0x18] sm:$0xff] %v4375_v8   ;;  %4525 = vmatmul.mubr.bf16.gmra.mrb[8].mxu1 %v4711_v46 }
 0x2ac   : > { %4528 = vmatprep.mubr.msk.bf16.mxu1 %vm4910_vm3, %v4909_v39 }
 0x2ae   : > { %v4467_v62 = vpop.f32.mrb[16].mxu0 }
 0x2af   : > { %v4468_v58 = vpop.f32.mrb[17].mxu0 }
 0x2b0   : > { %v4469_v9 = vadd.f32 %v4468_v58, %v4467_v62  ;;  %v4470_v63 = vpop.f32.mrb[18].mxu0 }
 0x2b1   : > { %v4471_v34 = vpop.f32.mrb[19].mxu0 }
 0x2b2   : > { %v3506_v6 = vadd.f32 %v4469_v9, %v6341_v11  ;;  %v4472_v14 = vadd.f32 %v4471_v34, %v4470_v63  ;;  %v4712_v60 = vld [vmem:[#allocation3 + $0x18] sm:$0xff]  }
 0x2b3   : > { %4529 = vmatmul.mubr.bf16.gmra.mrb[12].mxu1 %v4712_v60 }
 0x2b4   : > { %v4254_v50 = vmul.f32 -1.442695, %v3506_v6  ;;  %v3509_v22 = vadd.f32 %v4472_v14, %v6341_v11  ;;  %4532 = vmatprep.mubr.msk.bf16.mxu1 %vm4910_vm3, %v4909_v39 }
 0x2b6   : > { %4800 = vpow2.f32 %v4254_v50  ;;  %v4255_v35 = vmul.f32 -1.442695, %v3509_v22 }
 0x2b8   : > { %4802 = vpow2.f32 %v4255_v35 }
 0x2c0   : > { %v4801_v48 = vpop.eup %4800 }
 0x2c1   : > { %v3574_v44 = vadd.f32 1.0, %v4801_v48 }
 0x2c2   : > { %v4803_v7 = vpop.eup %4802 }
 0x2c3   : > { %4804 = vrcp.f32 %v3574_v44  ;;  %v3575_v15 = vadd.f32 1.0, %v4803_v7 }
 0x2c5   : > { %4806 = vrcp.f32 %v3575_v15 }
 0x2cd   : > { %v4805_v4 = vpop.eup %4804 }
 0x2ce   : > { %v3613_v36 = vmul.f32 %v4805_v4, %v3506_v6 }
 0x2cf   : > { %v4807_v45 = vpop.eup %4806 }
 0x2d0   : > { %v3614_v47 = vmul.f32 %v4807_v45, %v3509_v22 }
 0x2d2   : > { %v4380_v12 = vpack.c.bf16 %v3614_v47, %v3613_v36 }
 0x2d4   : > { %4420 = vst [vmem:[#allocation3 + $0x20] sm:$0xff] %v4380_v12  }
 0x2db   : > { %v4713_v40 = vld [vmem:[#allocation3 + $0x20] sm:$0xff]  }
 0x2dc   : > { %4533 = vmatmul.mubr.bf16.gmra.mrb[16].mxu1 %v4713_v40 }
 0x2dd   : > { %4536 = vmatprep.mubr.msk.bf16.mxu1 %vm4910_vm3, %v4909_v39 }
 0x2e5   : > { %v4473_v54 = vpop.f32.mrb[20].mxu0 }
 0x2e6   : > { %v4474_v41 = vpop.f32.mrb[21].mxu0 }
 0x2e7   : > { %v4475_v31 = vadd.f32 %v4474_v41, %v4473_v54  ;;  %v4476_v56 = vpop.f32.mrb[22].mxu0 }
 0x2e8   : > { %v4477_v20 = vpop.f32.mrb[23].mxu0 }
 0x2e9   : > { %v3514_v61 = vadd.f32 %v4475_v31, %v6341_v11  ;;  %v4478_v5 = vadd.f32 %v4477_v20, %v4476_v56 }
 0x2eb   : > { %v4256_v13 = vmul.f32 -1.442695, %v3514_v61  ;;  %v3517_v30 = vadd.f32 %v4478_v5, %v6341_v11 }
 0x2ed   : > { %4808 = vpow2.f32 %v4256_v13  ;;  %v4257_v17 = vmul.f32 -1.442695, %v3517_v30 }
 0x2ef   : > { %4810 = vpow2.f32 %v4257_v17 }
 0x2f7   : > { %v4809_v51 = vpop.eup %4808 }
 0x2f8   : > { %v3576_v53 = vadd.f32 1.0, %v4809_v51 }
 0x2f9   : > { %v4811_v38 = vpop.eup %4810 }
 0x2fa   : > { %4812 = vrcp.f32 %v3576_v53  ;;  %v3577_v26 = vadd.f32 1.0, %v4811_v38 }
 0x2fc   : > { %4814 = vrcp.f32 %v3577_v26 }
 0x300   : > { %v4479_v27 = vpop.f32.mrb[24].mxu0 }
 0x301   : > { %v4480_v24 = vpop.f32.mrb[25].mxu0 }
 0x302   : > { %v4481_v23 = vadd.f32 %v4480_v24, %v4479_v27  ;;  %v4482_v57 = vpop.f32.mrb[26].mxu0 }
 0x303   : > { %v4483_v52 = vpop.f32.mrb[27].mxu0 }
 0x304   : > { %v4813_v55 = vpop.eup %4812  ;;  %v3522_v49 = vadd.f32 %v4481_v23, %v6341_v11  ;;  %v4272_v11 = vld [vmem:[%s6470_s5] ss:$0 sm:$0xff] }
 0x305   : > { %v3615_v59 = vmul.f32 %v4813_v55, %v3514_v61 }
 0x306   : > { %v4815_v19 = vpop.eup %4814  ;;  %v4258_v43 = vmul.f32 -1.442695, %v3522_v49 }
 0x307   : > { %v3616_v1 = vmul.f32 %v4815_v19, %v3517_v30 }
 0x308   : > { %4816 = vpow2.f32 %v4258_v43 }
 0x309   : > { %v4385_v25 = vpack.c.bf16 %v3616_v1, %v3615_v59 }
 0x30b   : > { %4421 = vst [vmem:[#allocation3 + $0x28] sm:$0xff] %v4385_v25  }
 0x312   : > { %v4714_v32 = vld [vmem:[#allocation3 + $0x28] sm:$0xff]   ;;  %v4817_v2 = vpop.eup %4816 }
 0x313   : > { %4537 = vmatmul.mubr.bf16.gmra.mrb[20].mxu1 %v4714_v32  ;;  %v3578_v0 = vadd.f32 1.0, %v4817_v2 }
 0x314   : > { %4540 = vmatprep.mubr.msk.bf16.mxu1 %vm4910_vm3, %v4909_v39 }
 0x315   : > { %4818 = vrcp.f32 %v3578_v0 }
 0x31f   : > { %v4819_v18 = vpop.eup %4818 }
 0x320   : > { %v3617_v42 = vmul.f32 %v4819_v18, %v3522_v49 }
 0x322   : > { %v4342_v29 = vpack.c.bf16 %v3617_v42, %v3617_v42 }
 0x324   : > { %3683 = vst [vmem:[#allocation3 + $0x30] sm:$0xf] %v4342_v29 }
 0x32b   : > { %v4715_v16 = vld [vmem:[#allocation3 + $0x30] ss:$0 sps:$4 sm:$0xff]  }
 0x32c   : > { %4541 = vmatmul.mubr.bf16.gmra.mrb[24].mxu1 %v4715_v16 }
 0x36e   : > { %v3842_v33 = vpop.f32.mrb[0].mxu1 }
 0x36f   : > { %v4518_v21 = vpop.f32.mrb[1].mxu1  ;;  %v3843_v39 = vadd.f32 %v4272_v11, %v3842_v33 }
 0x370   : > { %v3845_v28 = vpop.f32.mrb[2].mxu1 }
 0x371   : > { %v3846_v37 = vadd.f32 %v4272_v11, %v3845_v28  ;;  %v4519_v10 = vpop.f32.mrb[3].mxu1 }
 0x373   : > { %v4390_v3 = vpack.c.bf16 %v3846_v37, %v3843_v39 }
 0x375   : > { %4391 = vst [vmem:[%s6399_s20] sm:$0xff] %v4390_v3  }
 0x376   : > { %v3850_v8 = vpop.f32.mrb[4].mxu1 }
 0x377   : > { %v4522_v46 = vpop.f32.mrb[5].mxu1  ;;  %v3851_v58 = vadd.f32 %v4272_v11, %v3850_v8 }
 0x378   : > { %v3853_v62 = vpop.f32.mrb[6].mxu1 }
 0x379   : > { %v3854_v9 = vadd.f32 %v4272_v11, %v3853_v62  ;;  %v4523_v63 = vpop.f32.mrb[7].mxu1 }
 0x37b   : > { %v4395_v34 = vpack.c.bf16 %v3854_v9, %v3851_v58 }
 0x37d   : > { %4422 = vst [vmem:[%s6399_s20 + $0x8] sm:$0xff] %v4395_v34  }
 0x37e   : > { %v3858_v6 = vpop.f32.mrb[8].mxu1 }
 0x37f   : > { %v4526_v14 = vpop.f32.mrb[9].mxu1  ;;  %v3859_v22 = vadd.f32 %v4272_v11, %v3858_v6 }
 0x380   : > { %v3861_v50 = vpop.f32.mrb[10].mxu1 }
 0x381   : > { %v3862_v60 = vadd.f32 %v4272_v11, %v3861_v50  ;;  %v4527_v35 = vpop.f32.mrb[11].mxu1 }
 0x383   : > { %v4400_v48 = vpack.c.bf16 %v3862_v60, %v3859_v22 }
 0x385   : > { %4423 = vst [vmem:[%s6399_s20 + $0x10] sm:$0xff] %v4400_v48  }
 0x386   : > { %v3866_v44 = vpop.f32.mrb[12].mxu1 }
 0x387   : > { %v4530_v7 = vpop.f32.mrb[13].mxu1  ;;  %v3867_v4 = vadd.f32 %v4272_v11, %v3866_v44 }
 0x388   : > { %v3869_v15 = vpop.f32.mrb[14].mxu1 }
 0x389   : > { %v3870_v45 = vadd.f32 %v4272_v11, %v3869_v15  ;;  %v4531_v36 = vpop.f32.mrb[15].mxu1 }
 0x38b   : > { %v4405_v47 = vpack.c.bf16 %v3870_v45, %v3867_v4 }
 0x38d   : > { %4424 = vst [vmem:[%s6399_s20 + $0x18] sm:$0xff] %v4405_v47  }
 0x3af   : > { %v3874_v12 = vpop.f32.mrb[16].mxu1 }
 0x3b0   : > { %v4534_v40 = vpop.f32.mrb[17].mxu1  ;;  %v3875_v41 = vadd.f32 %v4272_v11, %v3874_v12 }
 0x3b1   : > { %v3877_v54 = vpop.f32.mrb[18].mxu1 }
 0x3b2   : > { %v3878_v31 = vadd.f32 %v4272_v11, %v3877_v54  ;;  %v4535_v56 = vpop.f32.mrb[19].mxu1 }
 0x3b4   : > { %v4410_v20 = vpack.c.bf16 %v3878_v31, %v3875_v41 }
 0x3b6   : > { %4425 = vst [vmem:[%s6399_s20 + $0x20] sm:$0xff] %v4410_v20  }
 0x3e6   : > { %v3882_v61 = vpop.f32.mrb[20].mxu1 }
 0x3e7   : > { %v4538_v5 = vpop.f32.mrb[21].mxu1  ;;  %v3883_v30 = vadd.f32 %v4272_v11, %v3882_v61 }
 0x3e8   : > { %v3885_v13 = vpop.f32.mrb[22].mxu1 }
 0x3e9   : > { %v3886_v17 = vadd.f32 %v4272_v11, %v3885_v13  ;;  %v4539_v51 = vpop.f32.mrb[23].mxu1 }
 0x3eb   : > { %v4415_v53 = vpack.c.bf16 %v3886_v17, %v3883_v30 }
 0x3ed   : > { %4426 = vst [vmem:[%s6399_s20 + $0x28] sm:$0xff] %v4415_v53  }
 0x3ff   : > { %v3890_v38 = vpop.f32.mrb[24].mxu1 }
 0x400   : > { %v3891_v26 = vadd.f32 %v4272_v11, %v3890_v38  ;;  %v4542_v55 = vpop.f32.mrb[25].mxu1 }
 0x401   : > { %v3893_v27 = vpop.f32.mrb[26].mxu1 }
 0x402   : > { %v4355_v24 = vpack.c.bf16 %v3891_v26, %v3891_v26  ;;  %v4543_v19 = vpop.f32.mrb[27].mxu1 }
 0x404   : > { %3961 = vst [vmem:[%s6399_s20 + $0x30] sm:$0xf] %v4355_v24 }
 0x405   : > { %4835 = shalt.err (!%p4832_p5)
}
 0x406   : > { %s4836_s16 = scalar_lea.hbm %s6414_s11, 832  ;;  %s4840_s19 = scalar_lea.hbm %s6471_s6, 1664 }
 0x407   : > { %p4837_p6 = scmp.ne.s32.totalorder %s6414_s11, %s4836_s16  ;;  %p4841_p10 = scmp.lt.u32.totalorder %s6414_s11, %s6471_s6 }
 0x408   : > { %p4842_p11 = scmp.lt.u32.totalorder %s4840_s19, %s4836_s16  ;;  %p4844_p13 = scmp.lt.u32.totalorder %s4836_s16, %s6414_s11 }
 0x409   : > { %p4838_p7 = pnand %p4837_p6, %p4989_p4 }
 0x40a   : > { %p4843_p12 = por %p4842_p11, %p4841_p10 }
 0x40b   : > { %p4839_p9 = pneg %p4838_p7 }
 0x40c   : > { %p4845_p0 = por %p4844_p13, %p4843_p12 }
 0x40e   : > { %p4846_p1 = pnand %p4845_p0, %p4839_p9 }
 0x410   : > { %4849 = shalt.err (!%p4846_p1)
}
 0x411   : > { %s4912_s30 = smov 64   ;;  %s4913_s8 = smov 4  }
 0x412   : > { %4597 = dma.vmem_to_hbm [thread:$0]  (%p4989_p4), %s6409_s28, 832, %s6414_s11, %s6419_s24, %s4912_s30, %s4912_s30, %s4913_s8  }
 0x413 PF: > { %p4603_p2 = scmp.ge.s32.totalorder %s4900_s26, 2  ;;  %s3992_s12 = sand.u32 1, %s4880_s21  }
 0x414   : > { %s3993_s13 = scalar_lea.sflag [#allocation5], %s3992_s12 }
 0x415   : > { %p4600_p3 = pnand %p4603_p2, %p4996_p8 }
 0x417   : > { %4875 = dma.done.wait (!%p4600_p3), %s3993_s13, 832  }
 0x418   : > { %4877 = vsyncadd (!%p4600_p3), %s3993_s13, 4294966464  ;;  %s19_s26 = sadd.s32 1, %s4900_s26   ;;  %s6496_s21 = smov %s4884_s22 }
 0x419   : > { %p16_p5 = scmp.ge.s32.totalorder %s19_s26, 4   ;;  %s6497_s22 = smov %s4888_s23 }
 0x41a   : > { %s6498_s23 = smov %s5002_s10  ;;  %s6499_s24 = smov %s4896_s25 }
 0x41b   : > { %s6500_s25 = smov %s6502_s29  ;;  %18 = sbr.rel (!%p16_p5) target bundleno = 4 (0x4), region = 89 }
 0x422   :  { %3998 = vsyncpa [#allocation5], 1 }
 0x423   :  { %4000 = vsyncpa [#allocation5 + $0x1], 1 }

</bundles_post_ra>
